<compile_context>
chip_gen: v7x
topology: tpu7x:2x2x1
jax: 0.10.0
libtpu: 0.0.40
codegen_flags: <defaults>
</compile_context>

<pallas_src>
import math

import numpy as np
import jax
import jax.numpy as jnp
from jax.experimental import pallas as pl
from jax.experimental.pallas import tpu as pltpu

# ---------------- configuration (matching module defaults, small) -----------
HIDDEN_DIM = 32
NUM_LAYERS = 2
SAMPLING_POINTS = 8
DEGREE = 3
QUERY_NUM = 10
NUM_POINTS = 2
EVAL_IDX = -1              # -> NUM_LAYERS - 1
NUM_CLASSES = 4
FFN_DIM = 64
BATCH = 2
POLY_DIM = 2 * (DEGREE + 1)
LN_EPS = 1e-5


def _round_up(x, m):
    return ((x + m - 1) // m) * m


# ---------------- host-side weight packing: one VMEM slab --------------------
def _pack_weights(params, eval_idx):
    """Pack every weight/bias of the eval forward into ONE f32 slab.

    index[name] = (row0, rows, cols).  Row ranges are 8-aligned; biases / LN
    vectors are stored as single (1, out) rows.  The 1/sqrt(C) attention scale
    is folded into every q-projection (weights + bias) at pack time.
    """
    c = HIDDEN_DIM
    n_layers = eval_idx + 1
    scale = 1.0 / math.sqrt(c)

    entries = []

    def add(name, arr):
        a = np.asarray(arr, dtype=np.float32)
        if a.ndim == 1:
            a = a.reshape(1, -1)
        entries.append((name, a))

    (w1, b1), (w2, b2) = params['query_pos_head']
    add('qp_w1', w1); add('qp_b1', b1)
    add('qp_w2', w2); add('qp_b2', b2)

    for li in range(n_layers):
        p = params['layers'][li]
        wq, bq = p['sa_q']; wk, bk = p['sa_k']; wv, bv = p['sa_v']
        wq_s = np.asarray(wq, np.float32) * scale
        bq_s = np.asarray(bq, np.float32) * scale
        add(f'l{li}_sa_qkv_w',
            np.concatenate([wq_s, np.asarray(wk, np.float32),
                            np.asarray(wv, np.float32)], axis=1))
        add(f'l{li}_sa_qkv_b',
            np.concatenate([bq_s, np.asarray(bk, np.float32),
                            np.asarray(bv, np.float32)]))
        add(f'l{li}_sa_o_w', p['sa_o'][0]); add(f'l{li}_sa_o_b', p['sa_o'][1])
        add(f'l{li}_ln1_g', p['ln1'][0]);   add(f'l{li}_ln1_b', p['ln1'][1])

        wcq, bcq = p['ca_q']
        wcq_s = np.asarray(wcq, np.float32) * scale
        bcq_s = np.asarray(bcq, np.float32) * scale
        add(f'l{li}_ca_q_w', wcq_s); add(f'l{li}_ca_q_b', bcq_s)
        add(f'l{li}_ca_o_w', p['ca_o'][0]); add(f'l{li}_ca_o_b', p['ca_o'][1])
        add(f'l{li}_ln2_g', p['ln2'][0]);   add(f'l{li}_ln2_b', p['ln2'][1])

        add(f'l{li}_ffn1_w', p['ffn1'][0]); add(f'l{li}_ffn1_b', p['ffn1'][1])
        add(f'l{li}_ffn2_w', p['ffn2'][0]); add(f'l{li}_ffn2_b', p['ffn2'][1])
        add(f'l{li}_ln3_g', p['ln3'][0]);   add(f'l{li}_ln3_b', p['ln3'][1])

        # packed query-pos projection [Wq_sa*s | Wk_sa | Wq_ca*s]; used to hoist
        # the (out + qpos) projections off the serial chain (distributivity).
        add(f'l{li}_qpos_w',
            np.concatenate([wq_s, np.asarray(wk, np.float32), wcq_s], axis=1))

    # layer-invariant cross-attn K/V projection of memory: ALL layers packed
    # into one lane-dense (C, 2*C*n_layers) matrix (=(32,128) for 2 layers).
    ca_kv_w = np.concatenate(
        [np.concatenate([np.asarray(params['layers'][li]['ca_k'][0], np.float32),
                         np.asarray(params['layers'][li]['ca_v'][0], np.float32)],
                        axis=1) for li in range(n_layers)], axis=1)
    ca_kv_b = np.concatenate(
        [np.concatenate([np.asarray(params['layers'][li]['ca_k'][1], np.float32),
                         np.asarray(params['layers'][li]['ca_v'][1], np.float32)])
         for li in range(n_layers)])
    add('ca_kv_w', ca_kv_w); add('ca_kv_b', ca_kv_b)

    bbox_layers = params['bbox_head'][eval_idx]
    for j, (w, b) in enumerate(bbox_layers):
        add(f'bbox_w{j}', w); add(f'bbox_b{j}', b)
    w, b = params['score_head'][eval_idx][0]
    add('score_w', w); add('score_b', b)

    width = _round_up(max(a.shape[1] for _, a in entries), 128)
    index, row = {}, 0
    for name, a in entries:
        index[name] = (row, a.shape[0], a.shape[1])
        row += _round_up(a.shape[0], 8)
    total_rows = _round_up(row, 8)
    slab = np.zeros((total_rows, width), np.float32)
    for name, a in entries:
        r0, r, cdim = index[name]
        slab[r0:r0 + r, :cdim] = a
    return jnp.asarray(slab), index, len(bbox_layers), n_layers


# ---------------- the fused decoder kernel ----------------------------------
def _make_fused_kernel(index, n_layers, n_bbox, batch, q_real, qp, c,
                       mem_real, memp):
    def kernel(x_ref, poly_ref, mem_ref, w_ref, out_ref):
        def W(name):
            r0, rows, cols = index[name]
            return w_ref[r0:r0 + rows, 0:cols]   # static slice of resident slab

        def linear(x, wname, bname):
            return jnp.dot(x, W(wname), preferred_element_type=jnp.float32) + W(bname)

        def layer_norm(x, gname, bname):
            mu = jnp.mean(x, axis=-1, keepdims=True)
            var = jnp.mean((x - mu) ** 2, axis=-1, keepdims=True)
            return (x - mu) * jax.lax.rsqrt(var + LN_EPS) * W(gname) + W(bname)

        def softmax(s):
            s = s - jnp.max(s, axis=-1, keepdims=True)
            p = jnp.exp(s)
            return p / jnp.sum(p, axis=-1, keepdims=True)

        def attend(qh, kh, vh, mask):
            s = jax.lax.dot_general(qh, kh, (((1,), (1,)), ((), ())),
                                    preferred_element_type=jnp.float32)
            if mask is not None:
                s = s + mask
            return jnp.dot(softmax(s), vh, preferred_element_type=jnp.float32)

        out = x_ref[...]        # (B*QP, C)   batch folded onto sublanes
        polys = poly_ref[...]   # (B*QP, POLY_DIM)
        mem = mem_ref[...]      # (B*MEMP, C)

        # key masks for padded rows: built in-kernel from Python literals
        # (no captured traced constants).
        sa_mask = None
        if qp > q_real:
            col = jax.lax.broadcasted_iota(jnp.int32, (qp, qp), 1)
            sa_mask = jnp.where(col < q_real, 0.0, -1e9).astype(jnp.float32)
        ca_mask = None
        if memp > mem_real:
            colm = jax.lax.broadcasted_iota(jnp.int32, (qp, memp), 1)
            ca_mask = jnp.where(colm < mem_real, 0.0, -1e9).astype(jnp.float32)

        # ---- loop-invariant work, hoisted off the serial `out` chain ----
        hq = jax.nn.relu(linear(polys, 'qp_w1', 'qp_b1'))
        qpos = linear(hq, 'qp_w2', 'qp_b2')                        # (B*QP, C)
        qpos_proj = [jnp.dot(qpos, W(f'l{li}_qpos_w'),
                             preferred_element_type=jnp.float32)   # (B*QP, 3C)
                     for li in range(n_layers)]
        kv_all = linear(mem, 'ca_kv_w', 'ca_kv_b')                 # (B*MEMP, 2C*L)

        for li in range(n_layers):
            qe = qpos_proj[li]

            # --- self-attention: one packed q|k|v GEMM from `out` ---
            qkv = linear(out, f'l{li}_sa_qkv_w', f'l{li}_sa_qkv_b')
            sq = qkv[:, 0:c] + qe[:, 0:c]            # scale pre-folded into Wq
            sk = qkv[:, c:2 * c] + qe[:, c:2 * c]
            sv = qkv[:, 2 * c:3 * c]
            a = jnp.concatenate(
                [attend(sq[bi * qp:(bi + 1) * qp], sk[bi * qp:(bi + 1) * qp],
                        sv[bi * qp:(bi + 1) * qp], sa_mask)
                 for bi in range(batch)], axis=0)
            a = linear(a, f'l{li}_sa_o_w', f'l{li}_sa_o_b')
            out = layer_norm(out + a, f'l{li}_ln1_g', f'l{li}_ln1_b')

            # --- cross-attention over hoisted memory K/V ---
            cq = linear(out, f'l{li}_ca_q_w', f'l{li}_ca_q_b') + qe[:, 2 * c:3 * c]
            k0 = li * 2 * c
            a = jnp.concatenate(
                [attend(cq[bi * qp:(bi + 1) * qp],
                        kv_all[bi * memp:(bi + 1) * memp, k0:k0 + c],
                        kv_all[bi * memp:(bi + 1) * memp, k0 + c:k0 + 2 * c],
                        ca_mask)
                 for bi in range(batch)], axis=0)
            a = linear(a, f'l{li}_ca_o_w', f'l{li}_ca_o_b')
            out = layer_norm(out + a, f'l{li}_ln2_g', f'l{li}_ln2_b')

            # --- FFN ---
            f = jax.nn.relu(linear(out, f'l{li}_ffn1_w', f'l{li}_ffn1_b'))
            f = linear(f, f'l{li}_ffn2_w', f'l{li}_ffn2_b')
            out = layer_norm(out + f, f'l{li}_ln3_g', f'l{li}_ln3_b')

        # --- heads (eval layer only), single fused output store ---
        hb = out
        for j in range(n_bbox):
            hb = linear(hb, f'bbox_w{j}', f'bbox_b{j}')
            if j < n_bbox - 1:
                hb = jax.nn.relu(hb)
        logits = linear(out, 'score_w', 'score_b')
        out_ref[...] = jnp.concatenate([hb + polys, logits], axis=-1)

    return kernel


# ---------------- TransformerDecoder.forward (eval mode, atten_type='poly') --
def transformer_decoder_forward(params, tgt, ref_polys, ref_levels, memory,
                                memory_spatial_shapes, memory_level_start_index):
    # poly attention path: spatial level bookkeeping is unused.
    del ref_levels, memory_spatial_shapes, memory_level_start_index
    num_layers = NUM_LAYERS
    eval_idx = EVAL_IDX if EVAL_IDX >= 0 else num_layers + EVAL_IDX

    # TODO(synk): the injected `decoder_layer` class is not provided; the fused
    # kernel implements a standard single-head self-attn + cross-attn + FFN
    # decoder layer.  The poly_attn ref_points_input (consumed only by a
    # deformable-style layer) is therefore not computed at all.

    b, q, c = tgt.shape
    mem_len = memory.shape[1]
    qp = _round_up(q, 8)            # pad queries to a multiple of 8 sublanes
    memp = _round_up(mem_len, 8)

    tgt_p = jnp.pad(tgt.astype(jnp.float32),
                    ((0, 0), (0, qp - q), (0, 0))).reshape(b * qp, c)
    poly_p = jnp.pad(ref_polys.astype(jnp.float32),
                     ((0, 0), (0, qp - q), (0, 0))).reshape(b * qp, POLY_DIM)
    mem_p = jnp.pad(memory.astype(jnp.float32),
                    ((0, 0), (0, memp - mem_len), (0, 0))).reshape(b * memp, c)

    slab, index, n_bbox, n_layers = _pack_weights(params, eval_idx)

    kernel = _make_fused_kernel(index, n_layers, n_bbox, b, q, qp, c,
                                mem_len, memp)

    out_width = POLY_DIM + NUM_CLASSES
    fused = pl.pallas_call(
        kernel,
        grid=(1,),
        out_shape=jax.ShapeDtypeStruct((b * qp, out_width), jnp.float32),
        in_specs=[pl.BlockSpec((b * qp, c), lambda i: (0, 0)),
                  pl.BlockSpec((b * qp, POLY_DIM), lambda i: (0, 0)),
                  pl.BlockSpec((b * memp, c), lambda i: (0, 0)),
                  pl.BlockSpec(slab.shape, lambda i: (0, 0))],
        out_specs=pl.BlockSpec((b * qp, out_width), lambda i: (0, 0)),
        compiler_params=pltpu.CompilerParams(
            dimension_semantics=("arbitrary",)),
    )(tgt_p, poly_p, mem_p, slab)

    fused = fused.reshape(b, qp, out_width)[:, :q, :]
    dec_out_bboxes = fused[:, :, :POLY_DIM][None]     # eval path: eval_idx only
    dec_out_logits = fused[:, :, POLY_DIM:][None]
    return dec_out_bboxes, dec_out_logits, None, None


# ---------------- plain-JAX reference (for correctness check) ---------------
def _reference_forward(params, tgt, ref_polys, memory, eval_idx):
    def linear(x, wb):
        w, b = wb
        return x @ w + b

    def mlp(x, layers):
        for i, wb in enumerate(layers):
            x = linear(x, wb)
            if i < len(layers) - 1:
                x = jax.nn.relu(x)
        return x

    def layer_norm(x, g, b):
        mu = x.mean(-1, keepdims=True)
        var = ((x - mu) ** 2).mean(-1, keepdims=True)
        return (x - mu) / jnp.sqrt(var + LN_EPS) * g + b

    def attention(q, k, v, scale):
        s = jnp.einsum('bqd,bkd->bqk', q, k) * scale
        p = jax.nn.softmax(s, axis=-1)
        return jnp.einsum('bqk,bkd->bqd', p, v)

    c = tgt.shape[-1]
    scale = 1.0 / math.sqrt(c)
    qpos = mlp(ref_polys, params['query_pos_head'])
    out = tgt
    for li in range(eval_idx + 1):
        p = params['layers'][li]
        x = out + qpos
        q = linear(x, p['sa_q']); k = linear(x, p['sa_k']); v = linear(out, p['sa_v'])
        a = linear(attention(q, k, v, scale), p['sa_o'])
        out = layer_norm(out + a, *p['ln1'])
        q = linear(out + qpos, p['ca_q'])
        k = linear(memory, p['ca_k']); v = linear(memory, p['ca_v'])
        a = linear(attention(q, k, v, scale), p['ca_o'])
        out = layer_norm(out + a, *p['ln2'])
        f = linear(jax.nn.relu(linear(out, p['ffn1'])), p['ffn2'])
        out = layer_norm(out + f, *p['ln3'])
    bbox = mlp(out, params['bbox_head'][eval_idx]) + ref_polys
    logits = mlp(out, params['score_head'][eval_idx])
    return bbox, logits


# ---------------- deterministic parameter construction ----------------------
def make_params(key):
    keys = jax.random.split(key, 128)
    counter = iter(range(128))

    def lin(i, o):
        w = 0.05 * jax.random.normal(keys[next(counter)], (i, o), jnp.float32)
        b = jnp.zeros((o,), jnp.float32)
        return (w, b)

    def ln():
        return (jnp.ones((HIDDEN_DIM,), jnp.float32),
                jnp.zeros((HIDDEN_DIM,), jnp.float32))

    lamdaz = jnp.linspace(0.0, 1.0, SAMPLING_POINTS, dtype=jnp.float32)
    lambdas = jnp.stack([lamdaz ** i for i in range(DEGREE, -1, -1)], axis=1)

    params = {
        'lambdas': lambdas,
        'query_pos_head': [lin(POLY_DIM, HIDDEN_DIM), lin(HIDDEN_DIM, HIDDEN_DIM)],
        # sampler_head exists in __init__ but is only used by deform attention;
        # initialized for completeness, unused with atten_type='poly'.
        'sampler_head': [lin(HIDDEN_DIM, HIDDEN_DIM), lin(HIDDEN_DIM, 2 * NUM_POINTS)],
        'bbox_head': [[lin(HIDDEN_DIM, HIDDEN_DIM), lin(HIDDEN_DIM, HIDDEN_DIM),
                       lin(HIDDEN_DIM, POLY_DIM)] for _ in range(NUM_LAYERS)],
        'score_head': [[lin(HIDDEN_DIM, NUM_CLASSES)] for _ in range(NUM_LAYERS)],
        'layers': [],
    }
    for _ in range(NUM_LAYERS):
        params['layers'].append({
            'sa_q': lin(HIDDEN_DIM, HIDDEN_DIM), 'sa_k': lin(HIDDEN_DIM, HIDDEN_DIM),
            'sa_v': lin(HIDDEN_DIM, HIDDEN_DIM), 'sa_o': lin(HIDDEN_DIM, HIDDEN_DIM),
            'ln1': ln(),
            'ca_q': lin(HIDDEN_DIM, HIDDEN_DIM), 'ca_k': lin(HIDDEN_DIM, HIDDEN_DIM),
            'ca_v': lin(HIDDEN_DIM, HIDDEN_DIM), 'ca_o': lin(HIDDEN_DIM, HIDDEN_DIM),
            'ln2': ln(),
            'ffn1': lin(HIDDEN_DIM, FFN_DIM), 'ffn2': lin(FFN_DIM, HIDDEN_DIM),
            'ln3': ln(),
        })
    return params


# ---------------- main -------------------------------------------------------
if __name__ == "__main__":
    key = jax.random.PRNGKey(0)
    k_params, k_tgt, k_poly, k_mem = jax.random.split(key, 4)

    params = make_params(k_params)

    tgt = jax.random.normal(k_tgt, (BATCH, QUERY_NUM, HIDDEN_DIM), jnp.float32)
    ref_polys = jax.random.uniform(k_poly, (BATCH, QUERY_NUM, POLY_DIM), jnp.float32)
    ref_levels = jnp.zeros((BATCH, QUERY_NUM), jnp.int32)
    memory_spatial_shapes = ((8, 8), (4, 4))
    memory_level_start_index = (0, 64)
    total_tokens = sum(h * w for h, w in memory_spatial_shapes)
    memory = jax.random.normal(k_mem, (BATCH, total_tokens, HIDDEN_DIM), jnp.float32)

    bboxes, logits, _, _ = transformer_decoder_forward(
        params, tgt, ref_polys, ref_levels, memory,
        memory_spatial_shapes, memory_level_start_index)
    jax.block_until_ready((bboxes, logits))

    assert bboxes.shape == (1, BATCH, QUERY_NUM, POLY_DIM), bboxes.shape
    assert logits.shape == (1, BATCH, QUERY_NUM, NUM_CLASSES), logits.shape
    assert bool(jnp.isfinite(bboxes).all()) and bool(jnp.isfinite(logits).all())

    # numerical check against a plain-JAX reference of the same forward
    eval_idx = EVAL_IDX if EVAL_IDX >= 0 else NUM_LAYERS + EVAL_IDX
    ref_bbox, ref_logits = _reference_forward(params, tgt, ref_polys, memory, eval_idx)
    assert bool(jnp.allclose(bboxes[0], ref_bbox, atol=2e-2, rtol=2e-2))
    assert bool(jnp.allclose(logits[0], ref_logits, atol=2e-2, rtol=2e-2))

    print("KERNEL_OK")
</pallas_src>

<mosaic_0001>
module attributes {stable_mosaic.version = 11 : i64} {
  func.func @kernel(%arg0: i32, %arg1: memref<32x32xf32, #tpu.memory_space<vmem>>, %arg2: memref<32x8xf32, #tpu.memory_space<vmem>>, %arg3: memref<160x32xf32, #tpu.memory_space<vmem>>, %arg4: memref<960x128xf32, #tpu.memory_space<vmem>>, %arg5: memref<32x12xf32, #tpu.memory_space<vmem>>) attributes {dimension_semantics = [#tpu.dimension_semantics<arbitrary>], iteration_bounds = array<i64: 1>, scalar_prefetch = 0 : i64, scratch_operands = 0 : i64, tpu.core_type = #tpu.core_type<tc>, window_params = [{pipeline_mode = #tpu.pipeline_mode<synchronous>, transform_indices = @transform_0, window_bounds = array<i64: 32, 32>}, {pipeline_mode = #tpu.pipeline_mode<synchronous>, transform_indices = @transform_1, window_bounds = array<i64: 32, 8>}, {pipeline_mode = #tpu.pipeline_mode<synchronous>, transform_indices = @transform_2, window_bounds = array<i64: 160, 32>}, {pipeline_mode = #tpu.pipeline_mode<synchronous>, transform_indices = @transform_3, window_bounds = array<i64: 960, 128>}, {pipeline_mode = #tpu.pipeline_mode<synchronous>, transform_indices = @transform_4, window_bounds = array<i64: 32, 12>}]} {
    %c0 = arith.constant 0 : index
    %c0_0 = arith.constant 0 : index
    %0 = vector.load %arg1[%c0, %c0_0] : memref<32x32xf32, #tpu.memory_space<vmem>>, vector<32x32xf32>
    %c0_1 = arith.constant 0 : index
    %c0_2 = arith.constant 0 : index
    %1 = vector.load %arg2[%c0_1, %c0_2] : memref<32x8xf32, #tpu.memory_space<vmem>>, vector<32x8xf32>
    %c0_3 = arith.constant 0 : index
    %c0_4 = arith.constant 0 : index
    %2 = vector.load %arg3[%c0_3, %c0_4] : memref<160x32xf32, #tpu.memory_space<vmem>>, vector<160x32xf32>
    %3 = tpu.iota {dimensions = array<i32: 1>} : vector<16x16xi32>
    %c10_i32 = arith.constant 10 : i32
    %4 = vector.broadcast %c10_i32 : i32 to vector<16x16xi32>
    %5 = arith.cmpi slt, %3, %4 : vector<16x16xi32>
    %cst = arith.constant 0.000000e+00 : f32
    %cst_5 = arith.constant -1.000000e+09 : f32
    %6 = vector.broadcast %cst : f32 to vector<16x16xf32>
    %7 = vector.broadcast %cst_5 : f32 to vector<16x16xf32>
    %8 = arith.select %5, %6, %7 : vector<16x16xi1>, vector<16x16xf32>
    %c0_6 = arith.constant 0 : index
    %c0_7 = arith.constant 0 : index
    %9 = vector.load %arg4[%c0_6, %c0_7] : memref<960x128xf32, #tpu.memory_space<vmem>>, vector<8x32xf32>
    %cst_8 = arith.constant dense<0.000000e+00> : vector<32x32xf32>
    %10 = tpu.matmul %1, %9, %cst_8 {dimension_numbers = #tpu.dot_dimension_numbers<[1], [0], [0], [1], [0, 0, 1, 1], [], []>} : vector<32x8xf32>, vector<8x32xf32>, vector<32x32xf32> -> vector<32x32xf32>
    %c8 = arith.constant 8 : index
    %c0_9 = arith.constant 0 : index
    %11 = vector.load %arg4[%c8, %c0_9] : memref<960x128xf32, #tpu.memory_space<vmem>>, vector<1x32xf32>
    %12 = vector.broadcast %11 : vector<1x32xf32> to vector<32x32xf32>
    %13 = arith.addf %10, %12 : vector<32x32xf32>
    %cst_10 = arith.constant 0.000000e+00 : f32
    %14 = vector.broadcast %cst_10 : f32 to vector<32x32xf32>
    %15 = arith.maximumf %13, %14 : vector<32x32xf32>
    %c16 = arith.constant 16 : index
    %c0_11 = arith.constant 0 : index
    %16 = vector.load %arg4[%c16, %c0_11] : memref<960x128xf32, #tpu.memory_space<vmem>>, vector<32x32xf32>
    %cst_12 = arith.constant dense<0.000000e+00> : vector<32x32xf32>
    %17 = tpu.matmul %15, %16, %cst_12 {dimension_numbers = #tpu.dot_dimension_numbers<[1], [0], [0], [1], [0, 0, 1, 1], [], []>} : vector<32x32xf32>, vector<32x32xf32>, vector<32x32xf32> -> vector<32x32xf32>
    %c48 = arith.constant 48 : index
    %c0_13 = arith.constant 0 : index
    %18 = vector.load %arg4[%c48, %c0_13] : memref<960x128xf32, #tpu.memory_space<vmem>>, vector<1x32xf32>
    %19 = vector.broadcast %18 : vector<1x32xf32> to vector<32x32xf32>
    %20 = arith.addf %17, %19 : vector<32x32xf32>
    %c376 = arith.constant 376 : index
    %c0_14 = arith.constant 0 : index
    %21 = vector.load %arg4[%c376, %c0_14] : memref<960x128xf32, #tpu.memory_space<vmem>>, vector<32x96xf32>
    %cst_15 = arith.constant dense<0.000000e+00> : vector<32x96xf32>
    %22 = tpu.matmul %20, %21, %cst_15 {dimension_numbers = #tpu.dot_dimension_numbers<[1], [0], [0], [1], [0, 0, 1, 1], [], []>} : vector<32x32xf32>, vector<32x96xf32>, vector<32x96xf32> -> vector<32x96xf32>
    %c728 = arith.constant 728 : index
    %c0_16 = arith.constant 0 : index
    %23 = vector.load %arg4[%c728, %c0_16] : memref<960x128xf32, #tpu.memory_space<vmem>>, vector<32x96xf32>
    %cst_17 = arith.constant dense<0.000000e+00> : vector<32x96xf32>
    %24 = tpu.matmul %20, %23, %cst_17 {dimension_numbers = #tpu.dot_dimension_numbers<[1], [0], [0], [1], [0, 0, 1, 1], [], []>} : vector<32x32xf32>, vector<32x96xf32>, vector<32x96xf32> -> vector<32x96xf32>
    %c760 = arith.constant 760 : index
    %c0_18 = arith.constant 0 : index
    %25 = vector.load %arg4[%c760, %c0_18] : memref<960x128xf32, #tpu.memory_space<vmem>>, vector<32x128xf32>
    %cst_19 = arith.constant dense<0.000000e+00> : vector<160x128xf32>
    %26 = tpu.matmul %2, %25, %cst_19 {dimension_numbers = #tpu.dot_dimension_numbers<[1], [0], [0], [1], [0, 0, 1, 1], [], []>} : vector<160x32xf32>, vector<32x128xf32>, vector<160x128xf32> -> vector<160x128xf32>
    %c792 = arith.constant 792 : index
    %c0_20 = arith.constant 0 : index
    %27 = vector.load %arg4[%c792, %c0_20] : memref<960x128xf32, #tpu.memory_space<vmem>>, vector<1x128xf32>
    %28 = vector.broadcast %27 : vector<1x128xf32> to vector<160x128xf32>
    %29 = arith.addf %26, %28 : vector<160x128xf32>
    %c56 = arith.constant 56 : index
    %c0_21 = arith.constant 0 : index
    %30 = vector.load %arg4[%c56, %c0_21] : memref<960x128xf32, #tpu.memory_space<vmem>>, vector<32x96xf32>
    %cst_22 = arith.constant dense<0.000000e+00> : vector<32x96xf32>
    %31 = tpu.matmul %0, %30, %cst_22 {dimension_numbers = #tpu.dot_dimension_numbers<[1], [0], [0], [1], [0, 0, 1, 1], [], []>} : vector<32x32xf32>, vector<32x96xf32>, vector<32x96xf32> -> vector<32x96xf32>
    %c88 = arith.constant 88 : index
    %c0_23 = arith.constant 0 : index
    %32 = vector.load %arg4[%c88, %c0_23] : memref<960x128xf32, #tpu.memory_space<vmem>>, vector<1x96xf32>
    %33 = vector.broadcast %32 : vector<1x96xf32> to vector<32x96xf32>
    %34 = arith.addf %31, %33 : vector<32x96xf32>
    %35 = vector.extract_strided_slice %34 {offsets = [0, 0], sizes = [32, 32], strides = [1, 1]} : vector<32x96xf32> to vector<32x32xf32>
    %36 = vector.extract_strided_slice %22 {offsets = [0, 0], sizes = [32, 32], strides = [1, 1]} : vector<32x96xf32> to vector<32x32xf32>
    %37 = arith.addf %35, %36 : vector<32x32xf32>
    %38 = vector.extract_strided_slice %34 {offsets = [0, 32], sizes = [32, 32], strides = [1, 1]} : vector<32x96xf32> to vector<32x32xf32>
    %39 = vector.extract_strided_slice %22 {offsets = [0, 32], sizes = [32, 32], strides = [1, 1]} : vector<32x96xf32> to vector<32x32xf32>
    %40 = arith.addf %38, %39 : vector<32x32xf32>
    %41 = vector.extract_strided_slice %34 {offsets = [0, 64], sizes = [32, 32], strides = [1, 1]} : vector<32x96xf32> to vector<32x32xf32>
    %42 = vector.extract_strided_slice %37 {offsets = [0, 0], sizes = [16, 32], strides = [1, 1]} : vector<32x32xf32> to vector<16x32xf32>
    %43 = vector.extract_strided_slice %40 {offsets = [0, 0], sizes = [16, 32], strides = [1, 1]} : vector<32x32xf32> to vector<16x32xf32>
    %44 = vector.extract_strided_slice %41 {offsets = [0, 0], sizes = [16, 32], strides = [1, 1]} : vector<32x32xf32> to vector<16x32xf32>
    %cst_24 = arith.constant dense<0.000000e+00> : vector<16x16xf32>
    %45 = tpu.matmul %42, %43, %cst_24 {dimension_numbers = #tpu.dot_dimension_numbers<[1], [1], [0], [0], [0, 0, 1, 0], [], []>} : vector<16x32xf32>, vector<16x32xf32>, vector<16x16xf32> -> vector<16x16xf32>
    %46 = arith.addf %45, %8 : vector<16x16xf32>
    %cst_25 = arith.constant dense<0xFF800000> : vector<16xf32>
    %47 = vector.multi_reduction <maximumf>, %46, %cst_25 [1] : vector<16x16xf32> to vector<16xf32>
    %48 = vector.shape_cast %47 : vector<16xf32> to vector<16x1xf32>
    %49 = vector.broadcast %48 : vector<16x1xf32> to vector<16x16xf32>
    %50 = arith.subf %46, %49 : vector<16x16xf32>
    %51 = math.exp %50 : vector<16x16xf32>
    %cst_26 = arith.constant dense<0.000000e+00> : vector<16xf32>
    %52 = vector.multi_reduction <add>, %51, %cst_26 [1] : vector<16x16xf32> to vector<16xf32>
    %53 = vector.shape_cast %52 : vector<16xf32> to vector<16x1xf32>
    %54 = vector.broadcast %53 : vector<16x1xf32> to vector<16x16xf32>
    %55 = arith.divf %51, %54 : vector<16x16xf32>
    %cst_27 = arith.constant dense<0.000000e+00> : vector<16x32xf32>
    %56 = tpu.matmul %55, %44, %cst_27 {dimension_numbers = #tpu.dot_dimension_numbers<[1], [0], [0], [1], [0, 0, 1, 1], [], []>} : vector<16x16xf32>, vector<16x32xf32>, vector<16x32xf32> -> vector<16x32xf32>
    %57 = vector.extract_strided_slice %37 {offsets = [16, 0], sizes = [16, 32], strides = [1, 1]} : vector<32x32xf32> to vector<16x32xf32>
    %58 = vector.extract_strided_slice %40 {offsets = [16, 0], sizes = [16, 32], strides = [1, 1]} : vector<32x32xf32> to vector<16x32xf32>
    %59 = vector.extract_strided_slice %41 {offsets = [16, 0], sizes = [16, 32], strides = [1, 1]} : vector<32x32xf32> to vector<16x32xf32>
    %cst_28 = arith.constant dense<0.000000e+00> : vector<16x16xf32>
    %60 = tpu.matmul %57, %58, %cst_28 {dimension_numbers = #tpu.dot_dimension_numbers<[1], [1], [0], [0], [0, 0, 1, 0], [], []>} : vector<16x32xf32>, vector<16x32xf32>, vector<16x16xf32> -> vector<16x16xf32>
    %61 = arith.addf %60, %8 : vector<16x16xf32>
    %cst_29 = arith.constant dense<0xFF800000> : vector<16xf32>
    %62 = vector.multi_reduction <maximumf>, %61, %cst_29 [1] : vector<16x16xf32> to vector<16xf32>
    %63 = vector.shape_cast %62 : vector<16xf32> to vector<16x1xf32>
    %64 = vector.broadcast %63 : vector<16x1xf32> to vector<16x16xf32>
    %65 = arith.subf %61, %64 : vector<16x16xf32>
    %66 = math.exp %65 : vector<16x16xf32>
    %cst_30 = arith.constant dense<0.000000e+00> : vector<16xf32>
    %67 = vector.multi_reduction <add>, %66, %cst_30 [1] : vector<16x16xf32> to vector<16xf32>
    %68 = vector.shape_cast %67 : vector<16xf32> to vector<16x1xf32>
    %69 = vector.broadcast %68 : vector<16x1xf32> to vector<16x16xf32>
    %70 = arith.divf %66, %69 : vector<16x16xf32>
    %cst_31 = arith.constant dense<0.000000e+00> : vector<16x32xf32>
    %71 = tpu.matmul %70, %59, %cst_31 {dimension_numbers = #tpu.dot_dimension_numbers<[1], [0], [0], [1], [0, 0, 1, 1], [], []>} : vector<16x16xf32>, vector<16x32xf32>, vector<16x32xf32> -> vector<16x32xf32>
    %72 = tpu.concatenate %56, %71 in 0 : vector<16x32xf32>, vector<16x32xf32> -> vector<32x32xf32>
    %c96 = arith.constant 96 : index
    %c0_32 = arith.constant 0 : index
    %73 = vector.load %arg4[%c96, %c0_32] : memref<960x128xf32, #tpu.memory_space<vmem>>, vector<32x32xf32>
    %cst_33 = arith.constant dense<0.000000e+00> : vector<32x32xf32>
    %74 = tpu.matmul %72, %73, %cst_33 {dimension_numbers = #tpu.dot_dimension_numbers<[1], [0], [0], [1], [0, 0, 1, 1], [], []>} : vector<32x32xf32>, vector<32x32xf32>, vector<32x32xf32> -> vector<32x32xf32>
    %c128 = arith.constant 128 : index
    %c0_34 = arith.constant 0 : index
    %75 = vector.load %arg4[%c128, %c0_34] : memref<960x128xf32, #tpu.memory_space<vmem>>, vector<1x32xf32>
    %76 = vector.broadcast %75 : vector<1x32xf32> to vector<32x32xf32>
    %77 = arith.addf %74, %76 : vector<32x32xf32>
    %78 = arith.addf %0, %77 : vector<32x32xf32>
    %cst_35 = arith.constant dense<0.000000e+00> : vector<32xf32>
    %79 = vector.multi_reduction <add>, %78, %cst_35 [1] : vector<32x32xf32> to vector<32xf32>
    %80 = vector.shape_cast %79 : vector<32xf32> to vector<32x1xf32>
    %cst_36 = arith.constant 3.200000e+01 : f32
    %81 = vector.broadcast %cst_36 : f32 to vector<32x1xf32>
    %82 = arith.divf %80, %81 : vector<32x1xf32>
    %83 = vector.broadcast %82 : vector<32x1xf32> to vector<32x32xf32>
    %84 = arith.subf %78, %83 : vector<32x32xf32>
    %85 = arith.mulf %84, %84 : vector<32x32xf32>
    %cst_37 = arith.constant dense<0.000000e+00> : vector<32xf32>
    %86 = vector.multi_reduction <add>, %85, %cst_37 [1] : vector<32x32xf32> to vector<32xf32>
    %87 = vector.shape_cast %86 : vector<32xf32> to vector<32x1xf32>
    %cst_38 = arith.constant 3.200000e+01 : f32
    %88 = vector.broadcast %cst_38 : f32 to vector<32x1xf32>
    %89 = arith.divf %87, %88 : vector<32x1xf32>
    %90 = vector.broadcast %82 : vector<32x1xf32> to vector<32x32xf32>
    %91 = arith.subf %78, %90 : vector<32x32xf32>
    %cst_39 = arith.constant 9.99999974E-6 : f32
    %92 = vector.broadcast %cst_39 : f32 to vector<32x1xf32>
    %93 = arith.addf %89, %92 : vector<32x1xf32>
    %94 = math.rsqrt %93 : vector<32x1xf32>
    %95 = vector.broadcast %94 : vector<32x1xf32> to vector<32x32xf32>
    %96 = arith.mulf %91, %95 : vector<32x32xf32>
    %c136 = arith.constant 136 : index
    %c0_40 = arith.constant 0 : index
    %97 = vector.load %arg4[%c136, %c0_40] : memref<960x128xf32, #tpu.memory_space<vmem>>, vector<1x32xf32>
    %98 = vector.broadcast %97 : vector<1x32xf32> to vector<32x32xf32>
    %99 = arith.mulf %96, %98 : vector<32x32xf32>
    %c144 = arith.constant 144 : index
    %c0_41 = arith.constant 0 : index
    %100 = vector.load %arg4[%c144, %c0_41] : memref<960x128xf32, #tpu.memory_space<vmem>>, vector<1x32xf32>
    %101 = vector.broadcast %100 : vector<1x32xf32> to vector<32x32xf32>
    %102 = arith.addf %99, %101 : vector<32x32xf32>
    %c152 = arith.constant 152 : index
    %c0_42 = arith.constant 0 : index
    %103 = vector.load %arg4[%c152, %c0_42] : memref<960x128xf32, #tpu.memory_space<vmem>>, vector<32x32xf32>
    %cst_43 = arith.constant dense<0.000000e+00> : vector<32x32xf32>
    %104 = tpu.matmul %102, %103, %cst_43 {dimension_numbers = #tpu.dot_dimension_numbers<[1], [0], [0], [1], [0, 0, 1, 1], [], []>} : vector<32x32xf32>, vector<32x32xf32>, vector<32x32xf32> -> vector<32x32xf32>
    %c184 = arith.constant 184 : index
    %c0_44 = arith.constant 0 : index
    %105 = vector.load %arg4[%c184, %c0_44] : memref<960x128xf32, #tpu.memory_space<vmem>>, vector<1x32xf32>
    %106 = vector.broadcast %105 : vector<1x32xf32> to vector<32x32xf32>
    %107 = arith.addf %104, %106 : vector<32x32xf32>
    %108 = vector.extract_strided_slice %22 {offsets = [0, 64], sizes = [32, 32], strides = [1, 1]} : vector<32x96xf32> to vector<32x32xf32>
    %109 = arith.addf %107, %108 : vector<32x32xf32>
    %110 = vector.extract_strided_slice %109 {offsets = [0, 0], sizes = [16, 32], strides = [1, 1]} : vector<32x32xf32> to vector<16x32xf32>
    %111 = vector.extract_strided_slice %29 {offsets = [0, 0], sizes = [80, 32], strides = [1, 1]} : vector<160x128xf32> to vector<80x32xf32>
    %112 = vector.extract_strided_slice %29 {offsets = [0, 32], sizes = [80, 32], strides = [1, 1]} : vector<160x128xf32> to vector<80x32xf32>
    %cst_45 = arith.constant dense<0.000000e+00> : vector<16x80xf32>
    %113 = tpu.matmul %110, %111, %cst_45 {dimension_numbers = #tpu.dot_dimension_numbers<[1], [1], [0], [0], [0, 0, 1, 0], [], []>} : vector<16x32xf32>, vector<80x32xf32>, vector<16x80xf32> -> vector<16x80xf32>
    %cst_46 = arith.constant dense<0xFF800000> : vector<16xf32>
    %114 = vector.multi_reduction <maximumf>, %113, %cst_46 [1] : vector<16x80xf32> to vector<16xf32>
    %115 = vector.shape_cast %114 : vector<16xf32> to vector<16x1xf32>
    %116 = vector.broadcast %115 : vector<16x1xf32> to vector<16x80xf32>
    %117 = arith.subf %113, %116 : vector<16x80xf32>
    %118 = math.exp %117 : vector<16x80xf32>
    %cst_47 = arith.constant dense<0.000000e+00> : vector<16xf32>
    %119 = vector.multi_reduction <add>, %118, %cst_47 [1] : vector<16x80xf32> to vector<16xf32>
    %120 = vector.shape_cast %119 : vector<16xf32> to vector<16x1xf32>
    %121 = vector.broadcast %120 : vector<16x1xf32> to vector<16x80xf32>
    %122 = arith.divf %118, %121 : vector<16x80xf32>
    %cst_48 = arith.constant dense<0.000000e+00> : vector<16x32xf32>
    %123 = tpu.matmul %122, %112, %cst_48 {dimension_numbers = #tpu.dot_dimension_numbers<[1], [0], [0], [1], [0, 0, 1, 1], [], []>} : vector<16x80xf32>, vector<80x32xf32>, vector<16x32xf32> -> vector<16x32xf32>
    %124 = vector.extract_strided_slice %109 {offsets = [16, 0], sizes = [16, 32], strides = [1, 1]} : vector<32x32xf32> to vector<16x32xf32>
    %125 = vector.extract_strided_slice %29 {offsets = [80, 0], sizes = [80, 32], strides = [1, 1]} : vector<160x128xf32> to vector<80x32xf32>
    %126 = vector.extract_strided_slice %29 {offsets = [80, 32], sizes = [80, 32], strides = [1, 1]} : vector<160x128xf32> to vector<80x32xf32>
    %cst_49 = arith.constant dense<0.000000e+00> : vector<16x80xf32>
    %127 = tpu.matmul %124, %125, %cst_49 {dimension_numbers = #tpu.dot_dimension_numbers<[1], [1], [0], [0], [0, 0, 1, 0], [], []>} : vector<16x32xf32>, vector<80x32xf32>, vector<16x80xf32> -> vector<16x80xf32>
    %cst_50 = arith.constant dense<0xFF800000> : vector<16xf32>
    %128 = vector.multi_reduction <maximumf>, %127, %cst_50 [1] : vector<16x80xf32> to vector<16xf32>
    %129 = vector.shape_cast %128 : vector<16xf32> to vector<16x1xf32>
    %130 = vector.broadcast %129 : vector<16x1xf32> to vector<16x80xf32>
    %131 = arith.subf %127, %130 : vector<16x80xf32>
    %132 = math.exp %131 : vector<16x80xf32>
    %cst_51 = arith.constant dense<0.000000e+00> : vector<16xf32>
    %133 = vector.multi_reduction <add>, %132, %cst_51 [1] : vector<16x80xf32> to vector<16xf32>
    %134 = vector.shape_cast %133 : vector<16xf32> to vector<16x1xf32>
    %135 = vector.broadcast %134 : vector<16x1xf32> to vector<16x80xf32>
    %136 = arith.divf %132, %135 : vector<16x80xf32>
    %cst_52 = arith.constant dense<0.000000e+00> : vector<16x32xf32>
    %137 = tpu.matmul %136, %126, %cst_52 {dimension_numbers = #tpu.dot_dimension_numbers<[1], [0], [0], [1], [0, 0, 1, 1], [], []>} : vector<16x80xf32>, vector<80x32xf32>, vector<16x32xf32> -> vector<16x32xf32>
    %138 = tpu.concatenate %123, %137 in 0 : vector<16x32xf32>, vector<16x32xf32> -> vector<32x32xf32>
    %c192 = arith.constant 192 : index
    %c0_53 = arith.constant 0 : index
    %139 = vector.load %arg4[%c192, %c0_53] : memref<960x128xf32, #tpu.memory_space<vmem>>, vector<32x32xf32>
    %cst_54 = arith.constant dense<0.000000e+00> : vector<32x32xf32>
    %140 = tpu.matmul %138, %139, %cst_54 {dimension_numbers = #tpu.dot_dimension_numbers<[1], [0], [0], [1], [0, 0, 1, 1], [], []>} : vector<32x32xf32>, vector<32x32xf32>, vector<32x32xf32> -> vector<32x32xf32>
    %c224 = arith.constant 224 : index
    %c0_55 = arith.constant 0 : index
    %141 = vector.load %arg4[%c224, %c0_55] : memref<960x128xf32, #tpu.memory_space<vmem>>, vector<1x32xf32>
    %142 = vector.broadcast %141 : vector<1x32xf32> to vector<32x32xf32>
    %143 = arith.addf %140, %142 : vector<32x32xf32>
    %144 = arith.addf %102, %143 : vector<32x32xf32>
    %cst_56 = arith.constant dense<0.000000e+00> : vector<32xf32>
    %145 = vector.multi_reduction <add>, %144, %cst_56 [1] : vector<32x32xf32> to vector<32xf32>
    %146 = vector.shape_cast %145 : vector<32xf32> to vector<32x1xf32>
    %cst_57 = arith.constant 3.200000e+01 : f32
    %147 = vector.broadcast %cst_57 : f32 to vector<32x1xf32>
    %148 = arith.divf %146, %147 : vector<32x1xf32>
    %149 = vector.broadcast %148 : vector<32x1xf32> to vector<32x32xf32>
    %150 = arith.subf %144, %149 : vector<32x32xf32>
    %151 = arith.mulf %150, %150 : vector<32x32xf32>
    %cst_58 = arith.constant dense<0.000000e+00> : vector<32xf32>
    %152 = vector.multi_reduction <add>, %151, %cst_58 [1] : vector<32x32xf32> to vector<32xf32>
    %153 = vector.shape_cast %152 : vector<32xf32> to vector<32x1xf32>
    %cst_59 = arith.constant 3.200000e+01 : f32
    %154 = vector.broadcast %cst_59 : f32 to vector<32x1xf32>
    %155 = arith.divf %153, %154 : vector<32x1xf32>
    %156 = vector.broadcast %148 : vector<32x1xf32> to vector<32x32xf32>
    %157 = arith.subf %144, %156 : vector<32x32xf32>
    %cst_60 = arith.constant 9.99999974E-6 : f32
    %158 = vector.broadcast %cst_60 : f32 to vector<32x1xf32>
    %159 = arith.addf %155, %158 : vector<32x1xf32>
    %160 = math.rsqrt %159 : vector<32x1xf32>
    %161 = vector.broadcast %160 : vector<32x1xf32> to vector<32x32xf32>
    %162 = arith.mulf %157, %161 : vector<32x32xf32>
    %c232 = arith.constant 232 : index
    %c0_61 = arith.constant 0 : index
    %163 = vector.load %arg4[%c232, %c0_61] : memref<960x128xf32, #tpu.memory_space<vmem>>, vector<1x32xf32>
    %164 = vector.broadcast %163 : vector<1x32xf32> to vector<32x32xf32>
    %165 = arith.mulf %162, %164 : vector<32x32xf32>
    %c240 = arith.constant 240 : index
    %c0_62 = arith.constant 0 : index
    %166 = vector.load %arg4[%c240, %c0_62] : memref<960x128xf32, #tpu.memory_space<vmem>>, vector<1x32xf32>
    %167 = vector.broadcast %166 : vector<1x32xf32> to vector<32x32xf32>
    %168 = arith.addf %165, %167 : vector<32x32xf32>
    %c248 = arith.constant 248 : index
    %c0_63 = arith.constant 0 : index
    %169 = vector.load %arg4[%c248, %c0_63] : memref<960x128xf32, #tpu.memory_space<vmem>>, vector<32x64xf32>
    %cst_64 = arith.constant dense<0.000000e+00> : vector<32x64xf32>
    %170 = tpu.matmul %168, %169, %cst_64 {dimension_numbers = #tpu.dot_dimension_numbers<[1], [0], [0], [1], [0, 0, 1, 1], [], []>} : vector<32x32xf32>, vector<32x64xf32>, vector<32x64xf32> -> vector<32x64xf32>
    %c280 = arith.constant 280 : index
    %c0_65 = arith.constant 0 : index
    %171 = vector.load %arg4[%c280, %c0_65] : memref<960x128xf32, #tpu.memory_space<vmem>>, vector<1x64xf32>
    %172 = vector.broadcast %171 : vector<1x64xf32> to vector<32x64xf32>
    %173 = arith.addf %170, %172 : vector<32x64xf32>
    %cst_66 = arith.constant 0.000000e+00 : f32
    %174 = vector.broadcast %cst_66 : f32 to vector<32x64xf32>
    %175 = arith.maximumf %173, %174 : vector<32x64xf32>
    %c288 = arith.constant 288 : index
    %c0_67 = arith.constant 0 : index
    %176 = vector.load %arg4[%c288, %c0_67] : memref<960x128xf32, #tpu.memory_space<vmem>>, vector<64x32xf32>
    %cst_68 = arith.constant dense<0.000000e+00> : vector<32x32xf32>
    %177 = tpu.matmul %175, %176, %cst_68 {dimension_numbers = #tpu.dot_dimension_numbers<[1], [0], [0], [1], [0, 0, 1, 1], [], []>} : vector<32x64xf32>, vector<64x32xf32>, vector<32x32xf32> -> vector<32x32xf32>
    %c352 = arith.constant 352 : index
    %c0_69 = arith.constant 0 : index
    %178 = vector.load %arg4[%c352, %c0_69] : memref<960x128xf32, #tpu.memory_space<vmem>>, vector<1x32xf32>
    %179 = vector.broadcast %178 : vector<1x32xf32> to vector<32x32xf32>
    %180 = arith.addf %177, %179 : vector<32x32xf32>
    %181 = arith.addf %168, %180 : vector<32x32xf32>
    %cst_70 = arith.constant dense<0.000000e+00> : vector<32xf32>
    %182 = vector.multi_reduction <add>, %181, %cst_70 [1] : vector<32x32xf32> to vector<32xf32>
    %183 = vector.shape_cast %182 : vector<32xf32> to vector<32x1xf32>
    %cst_71 = arith.constant 3.200000e+01 : f32
    %184 = vector.broadcast %cst_71 : f32 to vector<32x1xf32>
    %185 = arith.divf %183, %184 : vector<32x1xf32>
    %186 = vector.broadcast %185 : vector<32x1xf32> to vector<32x32xf32>
    %187 = arith.subf %181, %186 : vector<32x32xf32>
    %188 = arith.mulf %187, %187 : vector<32x32xf32>
    %cst_72 = arith.constant dense<0.000000e+00> : vector<32xf32>
    %189 = vector.multi_reduction <add>, %188, %cst_72 [1] : vector<32x32xf32> to vector<32xf32>
    %190 = vector.shape_cast %189 : vector<32xf32> to vector<32x1xf32>
    %cst_73 = arith.constant 3.200000e+01 : f32
    %191 = vector.broadcast %cst_73 : f32 to vector<32x1xf32>
    %192 = arith.divf %190, %191 : vector<32x1xf32>
    %193 = vector.broadcast %185 : vector<32x1xf32> to vector<32x32xf32>
    %194 = arith.subf %181, %193 : vector<32x32xf32>
    %cst_74 = arith.constant 9.99999974E-6 : f32
    %195 = vector.broadcast %cst_74 : f32 to vector<32x1xf32>
    %196 = arith.addf %192, %195 : vector<32x1xf32>
    %197 = math.rsqrt %196 : vector<32x1xf32>
    %198 = vector.broadcast %197 : vector<32x1xf32> to vector<32x32xf32>
    %199 = arith.mulf %194, %198 : vector<32x32xf32>
    %c360 = arith.constant 360 : index
    %c0_75 = arith.constant 0 : index
    %200 = vector.load %arg4[%c360, %c0_75] : memref<960x128xf32, #tpu.memory_space<vmem>>, vector<1x32xf32>
    %201 = vector.broadcast %200 : vector<1x32xf32> to vector<32x32xf32>
    %202 = arith.mulf %199, %201 : vector<32x32xf32>
    %c368 = arith.constant 368 : index
    %c0_76 = arith.constant 0 : index
    %203 = vector.load %arg4[%c368, %c0_76] : memref<960x128xf32, #tpu.memory_space<vmem>>, vector<1x32xf32>
    %204 = vector.broadcast %203 : vector<1x32xf32> to vector<32x32xf32>
    %205 = arith.addf %202, %204 : vector<32x32xf32>
    %c408 = arith.constant 408 : index
    %c0_77 = arith.constant 0 : index
    %206 = vector.load %arg4[%c408, %c0_77] : memref<960x128xf32, #tpu.memory_space<vmem>>, vector<32x96xf32>
    %cst_78 = arith.constant dense<0.000000e+00> : vector<32x96xf32>
    %207 = tpu.matmul %205, %206, %cst_78 {dimension_numbers = #tpu.dot_dimension_numbers<[1], [0], [0], [1], [0, 0, 1, 1], [], []>} : vector<32x32xf32>, vector<32x96xf32>, vector<32x96xf32> -> vector<32x96xf32>
    %c440 = arith.constant 440 : index
    %c0_79 = arith.constant 0 : index
    %208 = vector.load %arg4[%c440, %c0_79] : memref<960x128xf32, #tpu.memory_space<vmem>>, vector<1x96xf32>
    %209 = vector.broadcast %208 : vector<1x96xf32> to vector<32x96xf32>
    %210 = arith.addf %207, %209 : vector<32x96xf32>
    %211 = vector.extract_strided_slice %210 {offsets = [0, 0], sizes = [32, 32], strides = [1, 1]} : vector<32x96xf32> to vector<32x32xf32>
    %212 = vector.extract_strided_slice %24 {offsets = [0, 0], sizes = [32, 32], strides = [1, 1]} : vector<32x96xf32> to vector<32x32xf32>
    %213 = arith.addf %211, %212 : vector<32x32xf32>
    %214 = vector.extract_strided_slice %210 {offsets = [0, 32], sizes = [32, 32], strides = [1, 1]} : vector<32x96xf32> to vector<32x32xf32>
    %215 = vector.extract_strided_slice %24 {offsets = [0, 32], sizes = [32, 32], strides = [1, 1]} : vector<32x96xf32> to vector<32x32xf32>
    %216 = arith.addf %214, %215 : vector<32x32xf32>
    %217 = vector.extract_strided_slice %210 {offsets = [0, 64], sizes = [32, 32], strides = [1, 1]} : vector<32x96xf32> to vector<32x32xf32>
    %218 = vector.extract_strided_slice %213 {offsets = [0, 0], sizes = [16, 32], strides = [1, 1]} : vector<32x32xf32> to vector<16x32xf32>
    %219 = vector.extract_strided_slice %216 {offsets = [0, 0], sizes = [16, 32], strides = [1, 1]} : vector<32x32xf32> to vector<16x32xf32>
    %220 = vector.extract_strided_slice %217 {offsets = [0, 0], sizes = [16, 32], strides = [1, 1]} : vector<32x32xf32> to vector<16x32xf32>
    %cst_80 = arith.constant dense<0.000000e+00> : vector<16x16xf32>
    %221 = tpu.matmul %218, %219, %cst_80 {dimension_numbers = #tpu.dot_dimension_numbers<[1], [1], [0], [0], [0, 0, 1, 0], [], []>} : vector<16x32xf32>, vector<16x32xf32>, vector<16x16xf32> -> vector<16x16xf32>
    %222 = arith.addf %221, %8 : vector<16x16xf32>
    %cst_81 = arith.constant dense<0xFF800000> : vector<16xf32>
    %223 = vector.multi_reduction <maximumf>, %222, %cst_81 [1] : vector<16x16xf32> to vector<16xf32>
    %224 = vector.shape_cast %223 : vector<16xf32> to vector<16x1xf32>
    %225 = vector.broadcast %224 : vector<16x1xf32> to vector<16x16xf32>
    %226 = arith.subf %222, %225 : vector<16x16xf32>
    %227 = math.exp %226 : vector<16x16xf32>
    %cst_82 = arith.constant dense<0.000000e+00> : vector<16xf32>
    %228 = vector.multi_reduction <add>, %227, %cst_82 [1] : vector<16x16xf32> to vector<16xf32>
    %229 = vector.shape_cast %228 : vector<16xf32> to vector<16x1xf32>
    %230 = vector.broadcast %229 : vector<16x1xf32> to vector<16x16xf32>
    %231 = arith.divf %227, %230 : vector<16x16xf32>
    %cst_83 = arith.constant dense<0.000000e+00> : vector<16x32xf32>
    %232 = tpu.matmul %231, %220, %cst_83 {dimension_numbers = #tpu.dot_dimension_numbers<[1], [0], [0], [1], [0, 0, 1, 1], [], []>} : vector<16x16xf32>, vector<16x32xf32>, vector<16x32xf32> -> vector<16x32xf32>
    %233 = vector.extract_strided_slice %213 {offsets = [16, 0], sizes = [16, 32], strides = [1, 1]} : vector<32x32xf32> to vector<16x32xf32>
    %234 = vector.extract_strided_slice %216 {offsets = [16, 0], sizes = [16, 32], strides = [1, 1]} : vector<32x32xf32> to vector<16x32xf32>
    %235 = vector.extract_strided_slice %217 {offsets = [16, 0], sizes = [16, 32], strides = [1, 1]} : vector<32x32xf32> to vector<16x32xf32>
    %cst_84 = arith.constant dense<0.000000e+00> : vector<16x16xf32>
    %236 = tpu.matmul %233, %234, %cst_84 {dimension_numbers = #tpu.dot_dimension_numbers<[1], [1], [0], [0], [0, 0, 1, 0], [], []>} : vector<16x32xf32>, vector<16x32xf32>, vector<16x16xf32> -> vector<16x16xf32>
    %237 = arith.addf %236, %8 : vector<16x16xf32>
    %cst_85 = arith.constant dense<0xFF800000> : vector<16xf32>
    %238 = vector.multi_reduction <maximumf>, %237, %cst_85 [1] : vector<16x16xf32> to vector<16xf32>
    %239 = vector.shape_cast %238 : vector<16xf32> to vector<16x1xf32>
    %240 = vector.broadcast %239 : vector<16x1xf32> to vector<16x16xf32>
    %241 = arith.subf %237, %240 : vector<16x16xf32>
    %242 = math.exp %241 : vector<16x16xf32>
    %cst_86 = arith.constant dense<0.000000e+00> : vector<16xf32>
    %243 = vector.multi_reduction <add>, %242, %cst_86 [1] : vector<16x16xf32> to vector<16xf32>
    %244 = vector.shape_cast %243 : vector<16xf32> to vector<16x1xf32>
    %245 = vector.broadcast %244 : vector<16x1xf32> to vector<16x16xf32>
    %246 = arith.divf %242, %245 : vector<16x16xf32>
    %cst_87 = arith.constant dense<0.000000e+00> : vector<16x32xf32>
    %247 = tpu.matmul %246, %235, %cst_87 {dimension_numbers = #tpu.dot_dimension_numbers<[1], [0], [0], [1], [0, 0, 1, 1], [], []>} : vector<16x16xf32>, vector<16x32xf32>, vector<16x32xf32> -> vector<16x32xf32>
    %248 = tpu.concatenate %232, %247 in 0 : vector<16x32xf32>, vector<16x32xf32> -> vector<32x32xf32>
    %c448 = arith.constant 448 : index
    %c0_88 = arith.constant 0 : index
    %249 = vector.load %arg4[%c448, %c0_88] : memref<960x128xf32, #tpu.memory_space<vmem>>, vector<32x32xf32>
    %cst_89 = arith.constant dense<0.000000e+00> : vector<32x32xf32>
    %250 = tpu.matmul %248, %249, %cst_89 {dimension_numbers = #tpu.dot_dimension_numbers<[1], [0], [0], [1], [0, 0, 1, 1], [], []>} : vector<32x32xf32>, vector<32x32xf32>, vector<32x32xf32> -> vector<32x32xf32>
    %c480 = arith.constant 480 : index
    %c0_90 = arith.constant 0 : index
    %251 = vector.load %arg4[%c480, %c0_90] : memref<960x128xf32, #tpu.memory_space<vmem>>, vector<1x32xf32>
    %252 = vector.broadcast %251 : vector<1x32xf32> to vector<32x32xf32>
    %253 = arith.addf %250, %252 : vector<32x32xf32>
    %254 = arith.addf %205, %253 : vector<32x32xf32>
    %cst_91 = arith.constant dense<0.000000e+00> : vector<32xf32>
    %255 = vector.multi_reduction <add>, %254, %cst_91 [1] : vector<32x32xf32> to vector<32xf32>
    %256 = vector.shape_cast %255 : vector<32xf32> to vector<32x1xf32>
    %cst_92 = arith.constant 3.200000e+01 : f32
    %257 = vector.broadcast %cst_92 : f32 to vector<32x1xf32>
    %258 = arith.divf %256, %257 : vector<32x1xf32>
    %259 = vector.broadcast %258 : vector<32x1xf32> to vector<32x32xf32>
    %260 = arith.subf %254, %259 : vector<32x32xf32>
    %261 = arith.mulf %260, %260 : vector<32x32xf32>
    %cst_93 = arith.constant dense<0.000000e+00> : vector<32xf32>
    %262 = vector.multi_reduction <add>, %261, %cst_93 [1] : vector<32x32xf32> to vector<32xf32>
    %263 = vector.shape_cast %262 : vector<32xf32> to vector<32x1xf32>
    %cst_94 = arith.constant 3.200000e+01 : f32
    %264 = vector.broadcast %cst_94 : f32 to vector<32x1xf32>
    %265 = arith.divf %263, %264 : vector<32x1xf32>
    %266 = vector.broadcast %258 : vector<32x1xf32> to vector<32x32xf32>
    %267 = arith.subf %254, %266 : vector<32x32xf32>
    %cst_95 = arith.constant 9.99999974E-6 : f32
    %268 = vector.broadcast %cst_95 : f32 to vector<32x1xf32>
    %269 = arith.addf %265, %268 : vector<32x1xf32>
    %270 = math.rsqrt %269 : vector<32x1xf32>
    %271 = vector.broadcast %270 : vector<32x1xf32> to vector<32x32xf32>
    %272 = arith.mulf %267, %271 : vector<32x32xf32>
    %c488 = arith.constant 488 : index
    %c0_96 = arith.constant 0 : index
    %273 = vector.load %arg4[%c488, %c0_96] : memref<960x128xf32, #tpu.memory_space<vmem>>, vector<1x32xf32>
    %274 = vector.broadcast %273 : vector<1x32xf32> to vector<32x32xf32>
    %275 = arith.mulf %272, %274 : vector<32x32xf32>
    %c496 = arith.constant 496 : index
    %c0_97 = arith.constant 0 : index
    %276 = vector.load %arg4[%c496, %c0_97] : memref<960x128xf32, #tpu.memory_space<vmem>>, vector<1x32xf32>
    %277 = vector.broadcast %276 : vector<1x32xf32> to vector<32x32xf32>
    %278 = arith.addf %275, %277 : vector<32x32xf32>
    %c504 = arith.constant 504 : index
    %c0_98 = arith.constant 0 : index
    %279 = vector.load %arg4[%c504, %c0_98] : memref<960x128xf32, #tpu.memory_space<vmem>>, vector<32x32xf32>
    %cst_99 = arith.constant dense<0.000000e+00> : vector<32x32xf32>
    %280 = tpu.matmul %278, %279, %cst_99 {dimension_numbers = #tpu.dot_dimension_numbers<[1], [0], [0], [1], [0, 0, 1, 1], [], []>} : vector<32x32xf32>, vector<32x32xf32>, vector<32x32xf32> -> vector<32x32xf32>
    %c536 = arith.constant 536 : index
    %c0_100 = arith.constant 0 : index
    %281 = vector.load %arg4[%c536, %c0_100] : memref<960x128xf32, #tpu.memory_space<vmem>>, vector<1x32xf32>
    %282 = vector.broadcast %281 : vector<1x32xf32> to vector<32x32xf32>
    %283 = arith.addf %280, %282 : vector<32x32xf32>
    %284 = vector.extract_strided_slice %24 {offsets = [0, 64], sizes = [32, 32], strides = [1, 1]} : vector<32x96xf32> to vector<32x32xf32>
    %285 = arith.addf %283, %284 : vector<32x32xf32>
    %286 = vector.extract_strided_slice %285 {offsets = [0, 0], sizes = [16, 32], strides = [1, 1]} : vector<32x32xf32> to vector<16x32xf32>
    %287 = vector.extract_strided_slice %29 {offsets = [0, 64], sizes = [80, 32], strides = [1, 1]} : vector<160x128xf32> to vector<80x32xf32>
    %288 = vector.extract_strided_slice %29 {offsets = [0, 96], sizes = [80, 32], strides = [1, 1]} : vector<160x128xf32> to vector<80x32xf32>
    %cst_101 = arith.constant dense<0.000000e+00> : vector<16x80xf32>
    %289 = tpu.matmul %286, %287, %cst_101 {dimension_numbers = #tpu.dot_dimension_numbers<[1], [1], [0], [0], [0, 0, 1, 0], [], []>} : vector<16x32xf32>, vector<80x32xf32>, vector<16x80xf32> -> vector<16x80xf32>
    %cst_102 = arith.constant dense<0xFF800000> : vector<16xf32>
    %290 = vector.multi_reduction <maximumf>, %289, %cst_102 [1] : vector<16x80xf32> to vector<16xf32>
    %291 = vector.shape_cast %290 : vector<16xf32> to vector<16x1xf32>
    %292 = vector.broadcast %291 : vector<16x1xf32> to vector<16x80xf32>
    %293 = arith.subf %289, %292 : vector<16x80xf32>
    %294 = math.exp %293 : vector<16x80xf32>
    %cst_103 = arith.constant dense<0.000000e+00> : vector<16xf32>
    %295 = vector.multi_reduction <add>, %294, %cst_103 [1] : vector<16x80xf32> to vector<16xf32>
    %296 = vector.shape_cast %295 : vector<16xf32> to vector<16x1xf32>
    %297 = vector.broadcast %296 : vector<16x1xf32> to vector<16x80xf32>
    %298 = arith.divf %294, %297 : vector<16x80xf32>
    %cst_104 = arith.constant dense<0.000000e+00> : vector<16x32xf32>
    %299 = tpu.matmul %298, %288, %cst_104 {dimension_numbers = #tpu.dot_dimension_numbers<[1], [0], [0], [1], [0, 0, 1, 1], [], []>} : vector<16x80xf32>, vector<80x32xf32>, vector<16x32xf32> -> vector<16x32xf32>
    %300 = vector.extract_strided_slice %285 {offsets = [16, 0], sizes = [16, 32], strides = [1, 1]} : vector<32x32xf32> to vector<16x32xf32>
    %301 = vector.extract_strided_slice %29 {offsets = [80, 64], sizes = [80, 32], strides = [1, 1]} : vector<160x128xf32> to vector<80x32xf32>
    %302 = vector.extract_strided_slice %29 {offsets = [80, 96], sizes = [80, 32], strides = [1, 1]} : vector<160x128xf32> to vector<80x32xf32>
    %cst_105 = arith.constant dense<0.000000e+00> : vector<16x80xf32>
    %303 = tpu.matmul %300, %301, %cst_105 {dimension_numbers = #tpu.dot_dimension_numbers<[1], [1], [0], [0], [0, 0, 1, 0], [], []>} : vector<16x32xf32>, vector<80x32xf32>, vector<16x80xf32> -> vector<16x80xf32>
    %cst_106 = arith.constant dense<0xFF800000> : vector<16xf32>
    %304 = vector.multi_reduction <maximumf>, %303, %cst_106 [1] : vector<16x80xf32> to vector<16xf32>
    %305 = vector.shape_cast %304 : vector<16xf32> to vector<16x1xf32>
    %306 = vector.broadcast %305 : vector<16x1xf32> to vector<16x80xf32>
    %307 = arith.subf %303, %306 : vector<16x80xf32>
    %308 = math.exp %307 : vector<16x80xf32>
    %cst_107 = arith.constant dense<0.000000e+00> : vector<16xf32>
    %309 = vector.multi_reduction <add>, %308, %cst_107 [1] : vector<16x80xf32> to vector<16xf32>
    %310 = vector.shape_cast %309 : vector<16xf32> to vector<16x1xf32>
    %311 = vector.broadcast %310 : vector<16x1xf32> to vector<16x80xf32>
    %312 = arith.divf %308, %311 : vector<16x80xf32>
    %cst_108 = arith.constant dense<0.000000e+00> : vector<16x32xf32>
    %313 = tpu.matmul %312, %302, %cst_108 {dimension_numbers = #tpu.dot_dimension_numbers<[1], [0], [0], [1], [0, 0, 1, 1], [], []>} : vector<16x80xf32>, vector<80x32xf32>, vector<16x32xf32> -> vector<16x32xf32>
    %314 = tpu.concatenate %299, %313 in 0 : vector<16x32xf32>, vector<16x32xf32> -> vector<32x32xf32>
    %c544 = arith.constant 544 : index
    %c0_109 = arith.constant 0 : index
    %315 = vector.load %arg4[%c544, %c0_109] : memref<960x128xf32, #tpu.memory_space<vmem>>, vector<32x32xf32>
    %cst_110 = arith.constant dense<0.000000e+00> : vector<32x32xf32>
    %316 = tpu.matmul %314, %315, %cst_110 {dimension_numbers = #tpu.dot_dimension_numbers<[1], [0], [0], [1], [0, 0, 1, 1], [], []>} : vector<32x32xf32>, vector<32x32xf32>, vector<32x32xf32> -> vector<32x32xf32>
    %c576 = arith.constant 576 : index
    %c0_111 = arith.constant 0 : index
    %317 = vector.load %arg4[%c576, %c0_111] : memref<960x128xf32, #tpu.memory_space<vmem>>, vector<1x32xf32>
    %318 = vector.broadcast %317 : vector<1x32xf32> to vector<32x32xf32>
    %319 = arith.addf %316, %318 : vector<32x32xf32>
    %320 = arith.addf %278, %319 : vector<32x32xf32>
    %cst_112 = arith.constant dense<0.000000e+00> : vector<32xf32>
    %321 = vector.multi_reduction <add>, %320, %cst_112 [1] : vector<32x32xf32> to vector<32xf32>
    %322 = vector.shape_cast %321 : vector<32xf32> to vector<32x1xf32>
    %cst_113 = arith.constant 3.200000e+01 : f32
    %323 = vector.broadcast %cst_113 : f32 to vector<32x1xf32>
    %324 = arith.divf %322, %323 : vector<32x1xf32>
    %325 = vector.broadcast %324 : vector<32x1xf32> to vector<32x32xf32>
    %326 = arith.subf %320, %325 : vector<32x32xf32>
    %327 = arith.mulf %326, %326 : vector<32x32xf32>
    %cst_114 = arith.constant dense<0.000000e+00> : vector<32xf32>
    %328 = vector.multi_reduction <add>, %327, %cst_114 [1] : vector<32x32xf32> to vector<32xf32>
    %329 = vector.shape_cast %328 : vector<32xf32> to vector<32x1xf32>
    %cst_115 = arith.constant 3.200000e+01 : f32
    %330 = vector.broadcast %cst_115 : f32 to vector<32x1xf32>
    %331 = arith.divf %329, %330 : vector<32x1xf32>
    %332 = vector.broadcast %324 : vector<32x1xf32> to vector<32x32xf32>
    %333 = arith.subf %320, %332 : vector<32x32xf32>
    %cst_116 = arith.constant 9.99999974E-6 : f32
    %334 = vector.broadcast %cst_116 : f32 to vector<32x1xf32>
    %335 = arith.addf %331, %334 : vector<32x1xf32>
    %336 = math.rsqrt %335 : vector<32x1xf32>
    %337 = vector.broadcast %336 : vector<32x1xf32> to vector<32x32xf32>
    %338 = arith.mulf %333, %337 : vector<32x32xf32>
    %c584 = arith.constant 584 : index
    %c0_117 = arith.constant 0 : index
    %339 = vector.load %arg4[%c584, %c0_117] : memref<960x128xf32, #tpu.memory_space<vmem>>, vector<1x32xf32>
    %340 = vector.broadcast %339 : vector<1x32xf32> to vector<32x32xf32>
    %341 = arith.mulf %338, %340 : vector<32x32xf32>
    %c592 = arith.constant 592 : index
    %c0_118 = arith.constant 0 : index
    %342 = vector.load %arg4[%c592, %c0_118] : memref<960x128xf32, #tpu.memory_space<vmem>>, vector<1x32xf32>
    %343 = vector.broadcast %342 : vector<1x32xf32> to vector<32x32xf32>
    %344 = arith.addf %341, %343 : vector<32x32xf32>
    %c600 = arith.constant 600 : index
    %c0_119 = arith.constant 0 : index
    %345 = vector.load %arg4[%c600, %c0_119] : memref<960x128xf32, #tpu.memory_space<vmem>>, vector<32x64xf32>
    %cst_120 = arith.constant dense<0.000000e+00> : vector<32x64xf32>
    %346 = tpu.matmul %344, %345, %cst_120 {dimension_numbers = #tpu.dot_dimension_numbers<[1], [0], [0], [1], [0, 0, 1, 1], [], []>} : vector<32x32xf32>, vector<32x64xf32>, vector<32x64xf32> -> vector<32x64xf32>
    %c632 = arith.constant 632 : index
    %c0_121 = arith.constant 0 : index
    %347 = vector.load %arg4[%c632, %c0_121] : memref<960x128xf32, #tpu.memory_space<vmem>>, vector<1x64xf32>
    %348 = vector.broadcast %347 : vector<1x64xf32> to vector<32x64xf32>
    %349 = arith.addf %346, %348 : vector<32x64xf32>
    %cst_122 = arith.constant 0.000000e+00 : f32
    %350 = vector.broadcast %cst_122 : f32 to vector<32x64xf32>
    %351 = arith.maximumf %349, %350 : vector<32x64xf32>
    %c640 = arith.constant 640 : index
    %c0_123 = arith.constant 0 : index
    %352 = vector.load %arg4[%c640, %c0_123] : memref<960x128xf32, #tpu.memory_space<vmem>>, vector<64x32xf32>
    %cst_124 = arith.constant dense<0.000000e+00> : vector<32x32xf32>
    %353 = tpu.matmul %351, %352, %cst_124 {dimension_numbers = #tpu.dot_dimension_numbers<[1], [0], [0], [1], [0, 0, 1, 1], [], []>} : vector<32x64xf32>, vector<64x32xf32>, vector<32x32xf32> -> vector<32x32xf32>
    %c704 = arith.constant 704 : index
    %c0_125 = arith.constant 0 : index
    %354 = vector.load %arg4[%c704, %c0_125] : memref<960x128xf32, #tpu.memory_space<vmem>>, vector<1x32xf32>
    %355 = vector.broadcast %354 : vector<1x32xf32> to vector<32x32xf32>
    %356 = arith.addf %353, %355 : vector<32x32xf32>
    %357 = arith.addf %344, %356 : vector<32x32xf32>
    %cst_126 = arith.constant dense<0.000000e+00> : vector<32xf32>
    %358 = vector.multi_reduction <add>, %357, %cst_126 [1] : vector<32x32xf32> to vector<32xf32>
    %359 = vector.shape_cast %358 : vector<32xf32> to vector<32x1xf32>
    %cst_127 = arith.constant 3.200000e+01 : f32
    %360 = vector.broadcast %cst_127 : f32 to vector<32x1xf32>
    %361 = arith.divf %359, %360 : vector<32x1xf32>
    %362 = vector.broadcast %361 : vector<32x1xf32> to vector<32x32xf32>
    %363 = arith.subf %357, %362 : vector<32x32xf32>
    %364 = arith.mulf %363, %363 : vector<32x32xf32>
    %cst_128 = arith.constant dense<0.000000e+00> : vector<32xf32>
    %365 = vector.multi_reduction <add>, %364, %cst_128 [1] : vector<32x32xf32> to vector<32xf32>
    %366 = vector.shape_cast %365 : vector<32xf32> to vector<32x1xf32>
    %cst_129 = arith.constant 3.200000e+01 : f32
    %367 = vector.broadcast %cst_129 : f32 to vector<32x1xf32>
    %368 = arith.divf %366, %367 : vector<32x1xf32>
    %369 = vector.broadcast %361 : vector<32x1xf32> to vector<32x32xf32>
    %370 = arith.subf %357, %369 : vector<32x32xf32>
    %cst_130 = arith.constant 9.99999974E-6 : f32
    %371 = vector.broadcast %cst_130 : f32 to vector<32x1xf32>
    %372 = arith.addf %368, %371 : vector<32x1xf32>
    %373 = math.rsqrt %372 : vector<32x1xf32>
    %374 = vector.broadcast %373 : vector<32x1xf32> to vector<32x32xf32>
    %375 = arith.mulf %370, %374 : vector<32x32xf32>
    %c712 = arith.constant 712 : index
    %c0_131 = arith.constant 0 : index
    %376 = vector.load %arg4[%c712, %c0_131] : memref<960x128xf32, #tpu.memory_space<vmem>>, vector<1x32xf32>
    %377 = vector.broadcast %376 : vector<1x32xf32> to vector<32x32xf32>
    %378 = arith.mulf %375, %377 : vector<32x32xf32>
    %c720 = arith.constant 720 : index
    %c0_132 = arith.constant 0 : index
    %379 = vector.load %arg4[%c720, %c0_132] : memref<960x128xf32, #tpu.memory_space<vmem>>, vector<1x32xf32>
    %380 = vector.broadcast %379 : vector<1x32xf32> to vector<32x32xf32>
    %381 = arith.addf %378, %380 : vector<32x32xf32>
    %c800 = arith.constant 800 : index
    %c0_133 = arith.constant 0 : index
    %382 = vector.load %arg4[%c800, %c0_133] : memref<960x128xf32, #tpu.memory_space<vmem>>, vector<32x32xf32>
    %cst_134 = arith.constant dense<0.000000e+00> : vector<32x32xf32>
    %383 = tpu.matmul %381, %382, %cst_134 {dimension_numbers = #tpu.dot_dimension_numbers<[1], [0], [0], [1], [0, 0, 1, 1], [], []>} : vector<32x32xf32>, vector<32x32xf32>, vector<32x32xf32> -> vector<32x32xf32>
    %c832 = arith.constant 832 : index
    %c0_135 = arith.constant 0 : index
    %384 = vector.load %arg4[%c832, %c0_135] : memref<960x128xf32, #tpu.memory_space<vmem>>, vector<1x32xf32>
    %385 = vector.broadcast %384 : vector<1x32xf32> to vector<32x32xf32>
    %386 = arith.addf %383, %385 : vector<32x32xf32>
    %cst_136 = arith.constant 0.000000e+00 : f32
    %387 = vector.broadcast %cst_136 : f32 to vector<32x32xf32>
    %388 = arith.maximumf %386, %387 : vector<32x32xf32>
    %c840 = arith.constant 840 : index
    %c0_137 = arith.constant 0 : index
    %389 = vector.load %arg4[%c840, %c0_137] : memref<960x128xf32, #tpu.memory_space<vmem>>, vector<32x32xf32>
    %cst_138 = arith.constant dense<0.000000e+00> : vector<32x32xf32>
    %390 = tpu.matmul %388, %389, %cst_138 {dimension_numbers = #tpu.dot_dimension_numbers<[1], [0], [0], [1], [0, 0, 1, 1], [], []>} : vector<32x32xf32>, vector<32x32xf32>, vector<32x32xf32> -> vector<32x32xf32>
    %c872 = arith.constant 872 : index
    %c0_139 = arith.constant 0 : index
    %391 = vector.load %arg4[%c872, %c0_139] : memref<960x128xf32, #tpu.memory_space<vmem>>, vector<1x32xf32>
    %392 = vector.broadcast %391 : vector<1x32xf32> to vector<32x32xf32>
    %393 = arith.addf %390, %392 : vector<32x32xf32>
    %cst_140 = arith.constant 0.000000e+00 : f32
    %394 = vector.broadcast %cst_140 : f32 to vector<32x32xf32>
    %395 = arith.maximumf %393, %394 : vector<32x32xf32>
    %c880 = arith.constant 880 : index
    %c0_141 = arith.constant 0 : index
    %396 = vector.load %arg4[%c880, %c0_141] : memref<960x128xf32, #tpu.memory_space<vmem>>, vector<32x8xf32>
    %cst_142 = arith.constant dense<0.000000e+00> : vector<32x8xf32>
    %397 = tpu.matmul %395, %396, %cst_142 {dimension_numbers = #tpu.dot_dimension_numbers<[1], [0], [0], [1], [0, 0, 1, 1], [], []>} : vector<32x32xf32>, vector<32x8xf32>, vector<32x8xf32> -> vector<32x8xf32>
    %c912 = arith.constant 912 : index
    %c0_143 = arith.constant 0 : index
    %398 = vector.load %arg4[%c912, %c0_143] : memref<960x128xf32, #tpu.memory_space<vmem>>, vector<1x8xf32>
    %399 = vector.broadcast %398 : vector<1x8xf32> to vector<32x8xf32>
    %400 = arith.addf %397, %399 : vector<32x8xf32>
    %c920 = arith.constant 920 : index
    %c0_144 = arith.constant 0 : index
    %401 = vector.load %arg4[%c920, %c0_144] : memref<960x128xf32, #tpu.memory_space<vmem>>, vector<32x4xf32>
    %cst_145 = arith.constant dense<0.000000e+00> : vector<32x4xf32>
    %402 = tpu.matmul %381, %401, %cst_145 {dimension_numbers = #tpu.dot_dimension_numbers<[1], [0], [0], [1], [0, 0, 1, 1], [], []>} : vector<32x32xf32>, vector<32x4xf32>, vector<32x4xf32> -> vector<32x4xf32>
    %c952 = arith.constant 952 : index
    %c0_146 = arith.constant 0 : index
    %403 = vector.load %arg4[%c952, %c0_146] : memref<960x128xf32, #tpu.memory_space<vmem>>, vector<1x4xf32>
    %404 = vector.broadcast %403 : vector<1x4xf32> to vector<32x4xf32>
    %405 = arith.addf %402, %404 : vector<32x4xf32>
    %406 = arith.addf %400, %1 : vector<32x8xf32>
    %407 = tpu.concatenate %406, %405 in 1 : vector<32x8xf32>, vector<32x4xf32> -> vector<32x12xf32>
    %c0_147 = arith.constant 0 : index
    %c0_148 = arith.constant 0 : index
    %408 = vector.load %arg5[%c0_147, %c0_148] : memref<32x12xf32, #tpu.memory_space<vmem>>, vector<32x12xf32>
    tpu.vector_store %arg5[%c0_147, %c0_148], %407 {strides = array<i32>} : memref<32x12xf32, #tpu.memory_space<vmem>>, vector<32x12xf32>,
    return
  }
  func.func @transform_0(%arg0: i32) -> (i32, i32) {
    %c0_i32 = arith.constant 0 : i32
    %c0_i32_0 = arith.constant 0 : i32
    %c0_i32_1 = arith.constant 0 : i32
    return %c0_i32, %c0_i32_0 : i32, i32
  }
  func.func @transform_1(%arg0: i32) -> (i32, i32) {
    %c0_i32 = arith.constant 0 : i32
    %c0_i32_0 = arith.constant 0 : i32
    %c0_i32_1 = arith.constant 0 : i32
    return %c0_i32, %c0_i32_0 : i32, i32
  }
  func.func @transform_2(%arg0: i32) -> (i32, i32) {
    %c0_i32 = arith.constant 0 : i32
    %c0_i32_0 = arith.constant 0 : i32
    %c0_i32_1 = arith.constant 0 : i32
    return %c0_i32, %c0_i32_0 : i32, i32
  }
  func.func @transform_3(%arg0: i32) -> (i32, i32) {
    %c0_i32 = arith.constant 0 : i32
    %c0_i32_0 = arith.constant 0 : i32
    %c0_i32_1 = arith.constant 0 : i32
    return %c0_i32, %c0_i32_0 : i32, i32
  }
  func.func @transform_4(%arg0: i32) -> (i32, i32) {
    %c0_i32 = arith.constant 0 : i32
    %c0_i32_0 = arith.constant 0 : i32
    %c0_i32_1 = arith.constant 0 : i32
    return %c0_i32, %c0_i32_0 : i32, i32
  }
}

</mosaic_0001>

<bundles_post_ra>
// kernel: tpu_custom_call.1
= control target key start
LH: loop header
LB: loop body
LE: loop exit
PB: predicated region body
PF: predicated region fallthrough
CT: control target
= control target key end

     0   :  { %9 = vsyncpa [#allocation3], 0  ;;  %s6585_s15 = smov [#allocation2]   ;;  %s7437_s0 = inlined_call_operand.vmem [shape: f32[32,32], index: 0, kind: input, shape index: {}]   ;;  %s7438_s1 = inlined_call_operand.vmem [shape: f32[32,8], index: 1, kind: input, shape index: {}]   ;;  %s7439_s2 = inlined_call_operand.vmem [shape: f32[160,32], index: 2, kind: input, shape index: {}]   ;;  %s7440_s3 = inlined_call_operand.hbm [shape: f32[960,128], index: 3, kind: input, shape index: {}]   ;;  %s7441_s4 = inlined_call_operand.vmem [shape: f32[32,12], index: 4, kind: output, shape index: {}]  }
   0x1   :  { %s21_s16 = sshll.u32 %s6585_s15, 4  ;;  %s6561_s19 = scalar_lea.hbm %s7440_s3, 15360  ;;  %s22_s16 = int_to_ptr.vmem [resolvable:$true] %s21_s16 }
   0x2   :  { %p6562_p0 = scmp.ne.s32.totalorder %s7440_s3, %s6561_s19  ;;  %p6565_p1 = scmp.lt.u32.totalorder %s6561_s19, %s7440_s3 }
   0x4   :  { %p6567_p2 = pnand %p6565_p1, %p6562_p0 }
   0x6   :  { %6570 = shalt.err (!%p6567_p2)
}
   0x7   :  { %s6571_s24 = scalar_lea.vmem %s22_s16, 15360  ;;  %p6576_p4 = scmp.lt.s32.totalorder %s22_s16, %s22_s16 }
   0x8   :  { %p6572_p3 = scmp.ne.s32.totalorder %s22_s16, %s6571_s24  ;;  %p6577_p5 = scmp.lt.s32.totalorder %s6571_s24, %s6571_s24 }
   0xa   :  { %p6578_p6 = por %p6577_p5, %p6576_p4 }
   0xc   :  { %p6579_p7 = pnand %p6578_p6, %p6572_p3 }
   0xe   :  { %6582 = shalt.err (!%p6579_p7)
}
   0xf   :  { %s6586_s25 = smov 128   ;;  %s6587_s26 = smov 8  }
  0x10   :  { %27 = dma.hbm_to_vmem [thread:$0]  %s7440_s3, 15360, %s22_s16, [#allocation3], %s6586_s25, %s6586_s25, %s6587_s26  }
  0x11   :  { %6583 = dma.done.wait [#allocation3], 15360  }
  0x12   :  { %6584 = vsyncadd [#allocation3], 4294951936  ;;  %vm69_vm0 = vcmask 64512   ;;  %v63_v0 = vld [vmem:[#allocation2] sm:$0xff]  ;;  %v36_v2 = vld [vmem:[%s7438_s1 + $0x8] sm:$0xff]  ;;  %vm180_vm1 = vcmask 261120  }
  0x13   :  { %v35_v1 = vld [vmem:[%s7438_s1] sm:$0xff]  ;;  %5264 = vmatprep.subr.mxu0 %v63_v0  ;;  %v37_v3 = vld [vmem:[%s7438_s1 + $0x10] sm:$0xff]  ;;  %v172_v5 = vld [vmem:[#allocation2 + $0x18] sm:$0xff]  ;;  %vm901_vm4 = vcmask 130048   ;;  %s6590_s18 = smov 64   ;;  %vm1631_vm5 = vcmask 654336  }
  0x14   :  { %5266 = vmatprep.mubr.msk.f32.mxu0 %vm69_vm0, %v35_v1  ;;  %v171_v4 = vld [vmem:[#allocation2 + $0x10] sm:$0xff]  ;;  %5265 = vmatpush3.msra.mxu0 %v63_v0  ;;  %v38_v7 = vld [vmem:[%s7438_s1 + $0x18] sm:$0xff]  ;;  %v173_v8 = vld [vmem:[#allocation2 + $0x20] sm:$0xff]  ;;  %vm2312_vm6 = vcmask 523264   ;;  %vm4726_vm7 = vcmask 97280  }
  0x15   :  { %5267 = vmatmul.mubr.msk.f32.vlgmr.msra.gmra.mrb[0].mxu0 %vm69_vm0, %v36_v2  ;;  %v5832_v6 = vpack.c.bf16 %v172_v5, %v171_v4  ;;  %v174_v9 = vld [vmem:[#allocation2 + $0x28] sm:$0xff]  ;;  %v278_v11 = vld [vmem:[#allocation2 + $0x178] sm:$0xff]  ;;  %v279_v12 = vld [vmem:[#allocation2 + $0x180] sm:$0xff] }
  0x16   :  { %5269 = vmatprep.mubr.msk.f32.mxu0 %vm69_vm0, %v37_v3  ;;  %v5836_v10 = vpack.c.bf16 %v174_v9, %v173_v8  ;;  %v379_v13 = vld [vmem:[#allocation2 + $0x2d8] sm:$0xff]  ;;  %v5840_v14 = vpack.c.bf16 %v279_v12, %v278_v11  ;;  %v380_v15 = vld [vmem:[#allocation2 + $0x2e0] sm:$0xff]  ;;  %v4736_v17 = vld [vmem:[#allocation2 + $0x8] ss:$0 sm:$0xff] }
  0x17   :  { %5833 = vmatprep.subr.bf16.mxu1 %v5832_v6  ;;  %v5848_v16 = vpack.c.bf16 %v380_v15, %v379_v13  ;;  %v280_v30 = vld [vmem:[#allocation2 + $0x188] sm:$0xff]  ;;  %v281_v31 = vld [vmem:[#allocation2 + $0x190] sm:$0xff]  ;;  %v702_v36 = vld [vmem:[#allocation2 + $0x38] sm:$0xff] }
  0x18   :  { %5835 = vmatpush3.bf16.msra.mxu1 %v5832_v6  ;;  %5841 = vmatprep.subr.bf16.mxu0 %v5840_v14  ;;  %v381_v32 = vld [vmem:[#allocation2 + $0x2e8] sm:$0xff]  ;;  %v5844_v33 = vpack.c.bf16 %v281_v31, %v280_v30  ;;  %v382_v34 = vld [vmem:[#allocation2 + $0x2f0] sm:$0xff]  ;;  %v703_v37 = vld [vmem:[#allocation2 + $0x40] sm:$0xff] }
  0x19   :  { %5270 = vmatmul.mubr.msk.f32.gmra.mrb[2].mxu0 %vm69_vm0, %v38_v7  ;;  %5837 = vmatprep.subr.bf16.mxu1 %v5836_v10  ;;  %v5852_v35 = vpack.c.bf16 %v382_v34, %v381_v32  ;;  %v5864_v38 = vpack.c.bf16 %v703_v37, %v702_v36  ;;  %v4741_v39 = vld [vmem:[#allocation2 + $0x30] ss:$0 sm:$0xff]  ;;  %v704_v41 = vld [vmem:[#allocation2 + $0x48] sm:$0xff]  ;;  %v6657_v51 = vld [vmem:[%s7437_s0] sm:$0xff] }
  0x1a   :  { %5843 = vmatpush3.bf16.msra.mxu0 %v5840_v14  ;;  %v705_v42 = vld [vmem:[#allocation2 + $0x50] sm:$0xff]  ;;  %v6668_v52 = vld [vmem:[%s7437_s0 + $0x8] sm:$0xff]  ;;  %v6682_v54 = vld [vmem:[%s7437_s0 + $0x18] sm:$0xff] }
  0x1b   :  { %5845 = vmatprep.subr.bf16.mxu0 %v5844_v33  ;;  %v5868_v46 = vpack.c.bf16 %v705_v42, %v704_v41  ;;  %v6673_v53 = vld [vmem:[%s7437_s0 + $0x10] sm:$0xff]  ;;  %v4775_v63 = vld [vmem:[#allocation2 + $0x58] ss:$0 sm:$0xff]  ;;  %s6588_s0 = smov 96   ;;  %vm6722_vm2 = vmpackc.low %vm180_vm1, %vm180_vm1 }
  0x1c   :  { %5839 = vmatpush3.bf16.msra.mxu1 %v5836_v10 }
  0x1d   :  { %5849 = vmatprep.subr.bf16.mxu1 %v5848_v16 }
  0x1e   :  { %5847 = vmatpush3.bf16.msra.mxu0 %v5844_v33 }
  0xe8   :  { %v5268_v18 = vpop.f32.mrb[0].mxu0 }
  0xe9   :  { %v154_v19 = vadd.f32 %v5268_v18, %v4736_v17  ;;  %v148_v20 = vpop.f32.mrb[1].mxu0 }
  0xea   :  { %v149_v21 = vadd.f32 %v4736_v17, %v148_v20  ;;  %v59_v20 = vlaneseq }
  0xeb   :  { %v168_v24 = vmax.f32 %v154_v19, 0.0 }
  0xec   :  { %v167_v22 = vmax.f32 %v149_v21, 0.0  ;;  %v5271_v23 = vpop.f32.mrb[2].mxu0  ;;  %v60_v21 = vand.u32 127, %v59_v20 }
  0xed   :  { %v164_v25 = vadd.f32 %v5271_v23, %v4736_v17  ;;  %v158_v26 = vpop.f32.mrb[3].mxu0 }
  0xee   :  { %v159_v27 = vadd.f32 %v4736_v17, %v158_v26  ;;  %5280 = vmatprep.mubr.msk.f32.mxu1 %vm180_vm1, %v167_v22  ;;  %vm61_vm3 = vcmp.lt.s32.totalorder %v60_v21, 10  ;;  %v6589_v22 = vmov -1e+09  }
  0xef   :  { %5281 = vmatmul.mubr.msk.f32.vlgmr.msra.gmra.mrb[0].mxu1 %vm180_vm1, %v168_v24  ;;  %v170_v29 = vmax.f32 %v164_v25, 0.0  ;;  %v6731_v23 = vsel %vm61_vm3, 0.0, %v6589_v22 }
  0xf0   :  { %v169_v28 = vmax.f32 %v159_v27, 0.0  ;;  %5851 = vmatpush3.bf16.msra.mxu1 %v5848_v16 }
  0xf1   :  { %5853 = vmatprep.subr.bf16.mxu1 %v5852_v35 }
  0xf2   :  { %5283 = vmatprep.mubr.msk.f32.mxu1 %vm180_vm1, %v169_v28 }
  0xf3   :  { %5284 = vmatmul.mubr.msk.f32.gmra.mrb[2].mxu1 %vm180_vm1, %v170_v29 }
  0xf4   :  { %5855 = vmatpush3.bf16.msra.mxu1 %v5852_v35 }
  0xf5   :  { %5865 = vmatprep.subr.bf16.mxu1 %v5864_v38 }
 0x1c2   :  { %v5282_v40 = vpop.f32.mrb[0].mxu1 }
 0x1c3   :  { %v259_v43 = vpop.f32.mrb[1].mxu1  ;;  %v265_v45 = vadd.f32 %v5282_v40, %v4741_v39 }
 0x1c4   :  { %v260_v44 = vadd.f32 %v4741_v39, %v259_v43 }
 0x1c6   :  { %v5285_v47 = vpop.f32.mrb[2].mxu1  ;;  %5294 = vmatprep.mubr.msk.f32.mxu0 %vm180_vm1, %v260_v44  ;;  %5308 = vmatprep.mubr.msk.f32.mxu1 %vm180_vm1, %v260_v44 }
 0x1c7   :  { %v269_v48 = vpop.f32.mrb[3].mxu1  ;;  %5295 = vmatmul.mubr.msk.f32.vlgmr.msra.gmra.mrb[4].mxu0 %vm180_vm1, %v265_v45  ;;  %5309 = vmatmul.mubr.msk.f32.vlgmr.msra.gmra.mrb[4].mxu1 %vm180_vm1, %v265_v45  ;;  %v275_v50 = vadd.f32 %v5285_v47, %v4741_v39 }
 0x1c8   :  { %v270_v49 = vadd.f32 %v4741_v39, %v269_v48  ;;  %5867 = vmatpush3.bf16.msra.mxu1 %v5864_v38 }
 0x1c9   :  { %5869 = vmatprep.subr.bf16.mxu1 %v5868_v46 }
 0x1ca   :  { %5297 = vmatprep.mubr.msk.f32.mxu0 %vm180_vm1, %v270_v49  ;;  %5311 = vmatprep.mubr.msk.f32.mxu1 %vm180_vm1, %v270_v49 }
 0x1cb   :  { %5298 = vmatmul.mubr.msk.f32.gmra.mrb[6].mxu0 %vm180_vm1, %v275_v50  ;;  %5312 = vmatmul.mubr.msk.f32.gmra.mrb[6].mxu1 %vm180_vm1, %v275_v50 }
 0x1cc   :  { %5871 = vmatpush3.bf16.msra.mxu1 %v5868_v46  ;;  %5360 = vmatprep.mubr.msk.f32.mxu1 %vm180_vm1, %v6657_v51 }
 0x1cf   :  { %5361 = vmatmul.mubr.msk.f32.vlgmr.msra.gmra.mrb[8].mxu1 %vm180_vm1, %v6668_v52 }
 0x1d0   :  { %5363 = vmatprep.mubr.msk.f32.mxu1 %vm180_vm1, %v6673_v53 }
 0x1d3   :  { %5364 = vmatmul.mubr.msk.f32.gmra.mrb[10].mxu1 %vm180_vm1, %v6682_v54 }
 0x29a   :  { %v6686_v55 = vpop.f32.mrb[4].mxu0  ;;  %v6688_v56 = vpop.f32.mrb[4].mxu1 }
 0x29b   :  { %v6690_v57 = vpop.f32.mrb[5].mxu0  ;;  %v6692_v58 = vpop.f32.mrb[5].mxu1 }
 0x29e   :  { %v6694_v59 = vpop.f32.mrb[6].mxu0  ;;  %v6696_v60 = vpop.f32.mrb[6].mxu1 }
 0x29f   :  { %v6698_v61 = vpop.f32.mrb[7].mxu0  ;;  %v6700_v62 = vpop.f32.mrb[7].mxu1 }
 0x2a2   :  { %v5362_v0 = vpop.f32.mrb[8].mxu1 }
 0x2a3   :  { %v795_v1 = vadd.f32 %v5362_v0, %v4775_v63  ;;  %v789_v2 = vpop.f32.mrb[9].mxu1 }
 0x2a4   :  { %v790_v3 = vadd.f32 %v4775_v63, %v789_v2 }
 0x2a5   :  { %v809_v4 = vadd.f32 %v6686_v55, %v795_v1 }
 0x2a6   :  { %v6260_v5 = vpack.i.bf16 %v795_v1, %v790_v3  ;;  %v808_v6 = vadd.f32 %v790_v3, %v6690_v57  ;;  %v5365_v7 = vpop.f32.mrb[10].mxu1 }
 0x2a7   :  { %v6704_v8 = vadd.f32 %v5365_v7, %v4775_v63  ;;  %v799_v9 = vpop.f32.mrb[11].mxu1 }
 0x2a8   :  { %v6706_v10 = vadd.f32 %v4775_v63, %v799_v9  ;;  %5370 = vmatprep.mubr.msk.f32.mxu1 %vm180_vm1, %v808_v6  ;;  %v6255_v11 = vpack.i.bf16 %v809_v4, %v808_v6 }
 0x2a9   :  { %v6711_v12 = vadd.f32 %v6694_v59, %v6704_v8 }
 0x2aa   :  { %v6270_v13 = vpack.i.bf16 %v6704_v8, %v6706_v10  ;;  %v6717_v14 = vadd.f32 %v6706_v10, %v6698_v61  ;;  %6256 = vrot.lane.b32.xlu0 %v6255_v11, %s6588_s0 }
 0x2ac   :  { %v6265_v44 = vpack.i.bf16 %v6711_v12, %v6717_v14 }
 0x31c   :  { %v6257_v15 = vpop.permute.xlu0 %6256 }
 0x31d   :  { %v6259_v16 = vunpack.i.h.bf16 %v6257_v15  ;;  %v6258_v17 = vunpack.i.l.bf16 %v6257_v15 }
 0x31f   :  { %v5872_v19 = vpack.c.bf16 %v6259_v16, %v6258_v17 }
 0x321   :  { %5874 = vmatprep.subr.msk.bf16.mxu1 %vm6722_vm2, %v5872_v19 }
 0x322   :  { %5877 = vmatpush3.bf16.xpose.msk.msra.mxu1 %vm6722_vm2, %v5872_v19 }
 0x329   :  { %5371 = vmatmul.mubr.msk.f32.vlgmr.msra.gmra.mrb[12].mxu1 %vm180_vm1, %v809_v4 }
 0x3fc   :  { %v5372_v24 = vpop.f32.mrb[12].mxu1 }
 0x3fd   :  { %v898_v25 = vadd.f32 %v5372_v24, %v6731_v23  ;;  %v892_v26 = vpop.f32.mrb[13].mxu1 }
 0x3fe   :  { %v893_v27 = vadd.f32 %v892_v26, %v6731_v23 }
 0x3ff   :  { %v905_v28 = vsel %vm901_vm4, %v898_v25, -inf }
 0x400   :  { %906 = vmax.xlane.f32.xlu1 %v905_v28  ;;  %v902_v29 = vsel %vm901_vm4, %v893_v27, -inf }
 0x401   :  { %903 = vmax.xlane.f32.xlu0 %v902_v29  ;;  %v1213_v29 = vld [vmem:[#allocation2 + $0x60] sm:$0xff] }
 0x411   :  { %6261 = vrot.lane.b32.xlu1 %v6260_v5, %s6590_s18 }
 0x48d   :  { %v907_v30 = vpop.xlane.xlu1 %906 }
 0x48e   :  { %v909_v31 = vsub.f32 %v898_v25, %v907_v30  ;;  %v904_v32 = vpop.xlane.xlu0 %903  ;;  %v1214_v30 = vld [vmem:[#allocation2 + $0x68] sm:$0xff] }
 0x48f   :  { %v908_v33 = vsub.f32 %v893_v27, %v904_v32 }
 0x490   :  { %v912_v34 = vmul.f32 1.442695, %v909_v31 }
 0x491   :  { %v910_v35 = vmul.f32 1.442695, %v908_v33  ;;  %v6262_v36 = vpop.permute.xlu1 %6261 }
 0x492   :  { %6445 = vpow2.f32 %v912_v34  ;;  %v6264_v37 = vunpack.i.h.bf16 %v6262_v36  ;;  %v6263_v38 = vunpack.i.l.bf16 %v6262_v36  ;;  %v5892_v34 = vpack.c.bf16 %v1214_v30, %v1213_v29  ;;  %v1215_v36 = vld [vmem:[#allocation2 + $0x70] sm:$0xff] }
 0x493   :  { %6447 = vpow2.f32 %v910_v35  ;;  %v49_v30 = vld [vmem:[%s7439_s2 + $0x50] sm:$0xff] }
 0x494   :  { %v5878_v39 = vpack.c.bf16 %v6264_v37, %v6263_v38  ;;  %v1216_v37 = vld [vmem:[#allocation2 + $0x78] sm:$0xff] }
 0x496   :  { %5879 = vmatprep.subr.bf16.mxu1 %v5878_v39 }
 0x497   :  { %5881 = vmatpush3.bf16.msra.mxu1 %v5878_v39 }
 0x49c   :  { %v6446_v40 = vpop.eup %6445 }
 0x49d   :  { %v917_v41 = vsel %vm901_vm4, %v6446_v40, 0.0  ;;  %v6448_v42 = vpop.eup %6447 }
 0x49e   :  { %918 = vadd.xlane.f32.xlu1 %v917_v41  ;;  %v914_v43 = vsel %vm901_vm4, %v6448_v42, 0.0  ;;  %v6769_v41 = vld [vmem:[#allocation2 + $0x80] ss:$0 sm:$0xff] }
 0x4a2   :  { %915 = vadd.xlane.f32.xlu1 %v914_v43 }
 0x4b3   :  { %6266 = vrot.lane.b32.xlu1 %v6265_v44, %s6588_s0 }
 0x52b   :  { %v919_v45 = vpop.xlane.xlu1 %918 }
 0x52c   :  { %6449 = vrcp.f32 %v919_v45 }
 0x52f   :  { %v916_v46 = vpop.xlane.xlu1 %915 }
 0x530   :  { %6451 = vrcp.f32 %v916_v46 }
 0x533   :  { %v6267_v47 = vpop.permute.xlu1 %6266 }
 0x534   :  { %v6269_v48 = vunpack.i.h.bf16 %v6267_v47  ;;  %v6268_v49 = vunpack.i.l.bf16 %v6267_v47 }
 0x536   :  { %v5882_v50 = vpack.c.bf16 %v6269_v48, %v6268_v49  ;;  %v6450_v63 = vpop.eup %6449 }
 0x537   :  { %v923_v2 = vmul.f32 %v6450_v63, %v6446_v40  ;;  %v469_v63 = vld [vmem:[#allocation2 + $0x300] sm:$0xff] }
 0x538   :  { %5884 = vmatprep.subr.msk.bf16.mxu1 %vm6722_vm2, %v5882_v50 }
 0x53a   :  { %v6452_v0 = vpop.eup %6451 }
 0x53b   :  { %v921_v1 = vmul.f32 %v6452_v0, %v6448_v42  ;;  %v470_v0 = vld [vmem:[#allocation2 + $0x308] sm:$0xff] }
 0x53d   :  { %5377 = vmatprep.mubr.msk.f32.mxu1 %vm901_vm4, %v921_v1 }
 0x53e   :  { %5378 = vmatmul.mubr.msk.f32.vlgmr.msra.gmra.mrb[14].mxu1 %vm901_vm4, %v923_v2  ;;  %v471_v2 = vld [vmem:[#allocation2 + $0x310] sm:$0xff] }
 0x53f   :  { %5887 = vmatpush3.bf16.xpose.msk.msra.mxu1 %vm6722_vm2, %v5882_v50  ;;  %5384 = vmatprep.mubr.msk.f32.mxu1 %vm180_vm1, %v6717_v14  ;;  %v468_v50 = vld [vmem:[#allocation2 + $0x2f8] sm:$0xff] }
 0x540   :  { %v5856_v1 = vpack.c.bf16 %v469_v63, %v468_v50 }
 0x542   :  { %5857 = vmatprep.subr.bf16.mxu0 %v5856_v1 }
 0x543   :  { %5859 = vmatpush3.bf16.msra.mxu0 %v5856_v1  ;;  %v6873_v1 = vld [vmem:[#allocation2 + $0x318] ss:$0 sm:$0xff] }
 0x546   :  { %5385 = vmatmul.mubr.msk.f32.vlgmr.msra.gmra.mrb[16].mxu1 %vm180_vm1, %v6711_v12 }
 0x611   :  { %v5379_v3 = vpop.f32.mrb[14].mxu1 }
 0x612   :  { %v1004_v4 = vpop.f32.mrb[15].mxu1 }
 0x619   :  { %v5386_v5 = vpop.f32.mrb[16].mxu1 }
 0x61a   :  { %v1099_v6 = vadd.f32 %v5386_v5, %v6731_v23  ;;  %v1093_v7 = vpop.f32.mrb[17].mxu1 }
 0x61b   :  { %v1094_v9 = vadd.f32 %v1093_v7, %v6731_v23  ;;  %v41_v7 = vld [vmem:[%s7439_s2 + $0x10] sm:$0xff] }
 0x61c   :  { %v1105_v11 = vsel %vm901_vm4, %v1099_v6, -inf }
 0x61d   :  { %1106 = vmax.xlane.f32.xlu0 %v1105_v11  ;;  %v1102_v15 = vsel %vm901_vm4, %v1094_v9, -inf  ;;  %v43_v11 = vld [vmem:[%s7439_s2 + $0x20] sm:$0xff] }
 0x61e   :  { %1103 = vmax.xlane.f32.xlu1 %v1102_v15  ;;  %v44_v15 = vld [vmem:[%s7439_s2 + $0x28] sm:$0xff] }
 0x6aa   :  { %v1107_v16 = vpop.xlane.xlu0 %1106 }
 0x6ab   :  { %v1109_v17 = vsub.f32 %v1099_v6, %v1107_v16  ;;  %v1104_v14 = vpop.xlane.xlu1 %1103  ;;  %v40_v6 = vld [vmem:[%s7439_s2 + $0x8] sm:$0xff]  ;;  %v45_v16 = vld [vmem:[%s7439_s2 + $0x30] sm:$0xff] }
 0x6ac   :  { %v1108_v19 = vsub.f32 %v1094_v9, %v1104_v14  ;;  %v42_v9 = vld [vmem:[%s7439_s2 + $0x18] sm:$0xff]  ;;  %v47_v14 = vld [vmem:[%s7439_s2 + $0x40] sm:$0xff] }
 0x6ad   :  { %v1112_v20 = vmul.f32 1.442695, %v1109_v17  ;;  %v46_v17 = vld [vmem:[%s7439_s2 + $0x38] sm:$0xff] }
 0x6ae   :  { %v1110_v12 = vmul.f32 1.442695, %v1108_v19  ;;  %v48_v19 = vld [vmem:[%s7439_s2 + $0x48] sm:$0xff] }
 0x6af   :  { %6453 = vpow2.f32 %v1112_v20 }
 0x6b0   :  { %6455 = vpow2.f32 %v1110_v12 }
 0x6b9   :  { %v6454_v21 = vpop.eup %6453 }
 0x6ba   :  { %v1117_v22 = vsel %vm901_vm4, %v6454_v21, 0.0  ;;  %v6456_v24 = vpop.eup %6455 }
 0x6bb   :  { %1118 = vadd.xlane.f32.xlu0 %v1117_v22  ;;  %v1114_v25 = vsel %vm901_vm4, %v6456_v24, 0.0 }
 0x6bf   :  { %1115 = vadd.xlane.f32.xlu0 %v1114_v25 }
 0x6d5   :  { %6271 = vrot.lane.b32.xlu0 %v6270_v13, %s6590_s18  ;;  %v5896_v13 = vpack.c.bf16 %v1216_v37, %v1215_v36  ;;  %v56_v36 = vld [vmem:[%s7439_s2 + $0x88] sm:$0xff]  ;;  %v1397_v37 = vld [vmem:[#allocation2 + $0xb0] sm:$0xff] }
 0x748   :  { %v1119_v26 = vpop.xlane.xlu0 %1118 }
 0x749   :  { %6457 = vrcp.f32 %v1119_v26 }
 0x74c   :  { %v1116_v27 = vpop.xlane.xlu0 %1115 }
 0x74d   :  { %6459 = vrcp.f32 %v1116_v27 }
 0x750   :  { %v6272_v28 = vpop.permute.xlu0 %6271 }
 0x751   :  { %v6274_v31 = vunpack.i.h.bf16 %v6272_v28  ;;  %v6273_v32 = vunpack.i.l.bf16 %v6272_v28 }
 0x753   :  { %v5888_v33 = vpack.c.bf16 %v6274_v31, %v6273_v32  ;;  %v6458_v35 = vpop.eup %6457  ;;  %v50_v31 = vld [vmem:[%s7439_s2 + $0x58] sm:$0xff]  ;;  %v51_v32 = vld [vmem:[%s7439_s2 + $0x60] sm:$0xff] }
 0x754   :  { %v1123_v10 = vmul.f32 %v6458_v35, %v6454_v21  ;;  %v55_v35 = vld [vmem:[%s7439_s2 + $0x80] sm:$0xff] }
 0x755   :  { %5889 = vmatprep.subr.bf16.mxu1 %v5888_v33 }
 0x756   :  { %5891 = vmatpush3.bf16.msra.mxu1 %v5888_v33  ;;  %v52_v33 = vld [vmem:[%s7439_s2 + $0x68] sm:$0xff] }
 0x757   :  { %v6460_v38 = vpop.eup %6459  ;;  %5893 = vmatprep.subr.bf16.mxu1 %v5892_v34 }
 0x758   :  { %v1121_v8 = vmul.f32 %v6460_v38, %v6456_v24  ;;  %v57_v38 = vld [vmem:[%s7439_s2 + $0x90] sm:$0xff] }
 0x75a   :  { %5391 = vmatprep.mubr.msk.f32.mxu1 %vm901_vm4, %v1121_v8 }
 0x75b   :  { %5392 = vmatmul.mubr.msk.f32.vlgmr.msra.gmra.mrb[18].mxu1 %vm901_vm4, %v1123_v10  ;;  %v58_v10 = vld [vmem:[%s7439_s2 + $0x98] sm:$0xff] }
 0x75c   :  { %5895 = vmatpush3.bf16.msra.mxu1 %v5892_v34  ;;  %5402 = vmatprep.mubr.msk.f32.mxu1 %vm180_vm1, %v1004_v4  ;;  %v5860_v4 = vpack.c.bf16 %v471_v2, %v470_v0  ;;  %v53_v34 = vld [vmem:[%s7439_s2 + $0x70] sm:$0xff]  ;;  %v6875_v2 = vld [vmem:[#allocation2 + $0x88] ss:$0 sm:$0xff] }
 0x75d   :  { %5897 = vmatprep.subr.bf16.mxu1 %v5896_v13 }
 0x75e   :  { %5861 = vmatprep.subr.bf16.mxu0 %v5860_v4 }
 0x75f   :  { %5863 = vmatpush3.bf16.msra.mxu0 %v5860_v4 }
 0x760   :  { %5899 = vmatpush3.bf16.msra.mxu1 %v5896_v13 }
 0x763   :  { %5403 = vmatmul.mubr.msk.f32.vlgmr.msra.gmra.mrb[20].mxu1 %vm180_vm1, %v5379_v3  ;;  %v39_v3 = vld [vmem:[%s7439_s2] sm:$0xff] }
 0x764   :  { %5322 = vmatprep.mubr.msk.f32.mxu0 %vm180_vm1, %v39_v3 }
 0x765   :  { %5323 = vmatmul.mubr.msk.f32.vlgmr.msra.gmra.mrb[8].mxu0 %vm180_vm1, %v40_v6 }
 0x766   :  { %5325 = vmatprep.mubr.msk.f32.mxu0 %vm180_vm1, %v41_v7 }
 0x769   :  { %5326 = vmatmul.mubr.msk.f32.gmra.mrb[10].mxu0 %vm180_vm1, %v42_v9 }
 0x76a   :  { %5328 = vmatprep.mubr.msk.f32.mxu0 %vm180_vm1, %v43_v11 }
 0x76d   :  { %5329 = vmatmul.mubr.msk.f32.gmra.mrb[12].mxu0 %vm180_vm1, %v44_v15 }
 0x76e   :  { %5331 = vmatprep.mubr.msk.f32.mxu0 %vm180_vm1, %v45_v16 }
 0x771   :  { %5332 = vmatmul.mubr.msk.f32.gmra.mrb[14].mxu0 %vm180_vm1, %v46_v17 }
 0x772   :  { %5334 = vmatprep.mubr.msk.f32.mxu0 %vm180_vm1, %v47_v14 }
 0x775   :  { %5335 = vmatmul.mubr.msk.f32.gmra.mrb[16].mxu0 %vm180_vm1, %v48_v19 }
 0x776   :  { %5337 = vmatprep.mubr.msk.f32.mxu0 %vm180_vm1, %v49_v30 }
 0x779   :  { %5338 = vmatmul.mubr.msk.f32.gmra.mrb[18].mxu0 %vm180_vm1, %v50_v31 }
 0x77a   :  { %5340 = vmatprep.mubr.msk.f32.mxu0 %vm180_vm1, %v51_v32 }
 0x77d   :  { %5341 = vmatmul.mubr.msk.f32.gmra.mrb[20].mxu0 %vm180_vm1, %v52_v33 }
 0x77e   :  { %5343 = vmatprep.mubr.msk.f32.mxu0 %vm180_vm1, %v53_v34 }
 0x82e   :  { %v5393_v39 = vpop.f32.mrb[18].mxu1 }
 0x82f   :  { %v1204_v40 = vpop.f32.mrb[19].mxu1 }
 0x830   :  { %5405 = vmatprep.mubr.msk.f32.mxu1 %vm180_vm1, %v1204_v40 }
 0x831   :  { %5406 = vmatmul.mubr.msk.f32.gmra.mrb[22].mxu1 %vm180_vm1, %v5393_v39 }
 0x836   :  { %v5404_v42 = vpop.f32.mrb[20].mxu1 }
 0x837   :  { %v1306_v43 = vadd.f32 %v5404_v42, %v6769_v41  ;;  %v1300_v44 = vpop.f32.mrb[21].mxu1 }
 0x838   :  { %v1301_v45 = vadd.f32 %v6769_v41, %v1300_v44 }
 0x839   :  { %v1320_v46 = vadd.f32 %v1306_v43, %v6668_v52  ;;  %v1395_v52 = vld [vmem:[#allocation2 + $0xa0] sm:$0xff] }
 0x83a   :  { %v1319_v47 = vadd.f32 %v1301_v45, %v6657_v51  ;;  %v1394_v51 = vld [vmem:[#allocation2 + $0x98] sm:$0xff] }
 0x83b   :  { %v1326_v48 = vsel %vm180_vm1, %v1320_v46, 0.0  ;;  %v5900_v5 = vpack.c.bf16 %v1395_v52, %v1394_v51  ;;  %v6879_v52 = vld [vmem:[#allocation2 + $0x90] ss:$0 sm:$0xff] }
 0x83c   :  { %1327 = vadd.xlane.f32.xlu1 %v1326_v48  ;;  %v1323_v49 = vsel %vm180_vm1, %v1319_v47, 0.0 }
 0x83d   :  { %1324 = vadd.xlane.f32.xlu0 %v1323_v49  ;;  %5901 = vmatprep.subr.bf16.mxu0 %v5900_v5 }
 0x83e   :  { %5903 = vmatpush3.bf16.msra.mxu0 %v5900_v5 }
 0x8c9   :  { %v1328_v20 = vpop.xlane.xlu1 %1327 }
 0x8ca   :  { %v1337_v12 = vmul.f32 0.03125, %v1328_v20  ;;  %v1325_v21 = vpop.xlane.xlu0 %1324 }
 0x8cb   :  { %v1336_v22 = vmul.f32 0.03125, %v1325_v21 }
 0x8cc   :  { %v6817_v24 = vsub.f32 %v1320_v46, %v1337_v12 }
 0x8cd   :  { %v1340_v25 = vsub.f32 %v1319_v47, %v1336_v22 }
 0x8ce   :  { %v1345_v28 = vmul.f32 %v6817_v24, %v6817_v24 }
 0x8cf   :  { %v1344_v26 = vmul.f32 %v1340_v25, %v1340_v25 }
 0x8d0   :  { %v1351_v29 = vsel %vm180_vm1, %v1345_v28, 0.0 }
 0x8d1   :  { %v1348_v27 = vsel %vm180_vm1, %v1344_v26, 0.0 }
 0x8d2   :  { %1349 = vadd.xlane.f32.xlu1 %v1348_v27 }
 0x8d6   :  { %1352 = vadd.xlane.f32.xlu1 %v1351_v29 }
 0x8e7   :  { %1504 = vrot.lane.b32.xlu1 %v6690_v57, %s6590_s18  ;;  %v54_v57 = vld [vmem:[%s7439_s2 + $0x78] sm:$0xff]  ;;  %s6591_s2 = smov 32  }
 0x8e8   :  { %5344 = vmatmul.mubr.msk.f32.gmra.mrb[22].mxu0 %vm180_vm1, %v54_v57 }
 0x8e9   :  { %5346 = vmatprep.mubr.msk.f32.mxu0 %vm180_vm1, %v55_v35 }
 0x8eb   :  { %1506 = vrot.lane.b32.xlu1 %v6686_v55, %s6590_s18  ;;  %v1396_v55 = vld [vmem:[#allocation2 + $0xa8] sm:$0xff] }
 0x8ec   :  { %5347 = vmatmul.mubr.msk.f32.gmra.mrb[24].mxu0 %vm180_vm1, %v56_v36  ;;  %v5904_v8 = vpack.c.bf16 %v1397_v37, %v1396_v55 }
 0x8ed   :  { %5349 = vmatprep.mubr.msk.f32.mxu0 %vm180_vm1, %v57_v38 }
 0x8ee   :  { %5905 = vmatprep.subr.bf16.mxu0 %v5904_v8 }
 0x8ef   :  { %5907 = vmatpush3.bf16.msra.mxu0 %v5904_v8 }
 0x8f0   :  { %5350 = vmatmul.mubr.msk.f32.gmra.mrb[26].mxu0 %vm180_vm1, %v58_v10 }
 0x904   :  { %v5407_v13 = vpop.f32.mrb[22].mxu1 }
 0x905   :  { %v1310_v39 = vpop.f32.mrb[23].mxu1  ;;  %v1316_v40 = vadd.f32 %v5407_v13, %v6769_v41 }
 0x906   :  { %v1311_v42 = vadd.f32 %v6769_v41, %v1310_v39  ;;  %v5324_v41 = vpop.f32.mrb[8].mxu0 }
 0x907   :  { %v1322_v45 = vadd.f32 %v1316_v40, %v6682_v54  ;;  %v609_v54 = vadd.f32 %v5324_v41, %v6873_v1  ;;  %v603_v3 = vpop.f32.mrb[9].mxu0 }
 0x908   :  { %v1321_v43 = vadd.f32 %v1311_v42, %v6673_v53  ;;  %v604_v51 = vadd.f32 %v6873_v1, %v603_v3  ;;  %v5327_v7 = vpop.f32.mrb[10].mxu0 }
 0x909   :  { %v1332_v46 = vsel %vm180_vm1, %v1322_v45, 0.0  ;;  %v619_v11 = vadd.f32 %v5327_v7, %v6873_v1  ;;  %v613_v15 = vpop.f32.mrb[11].mxu0 }
 0x90a   :  { %v1329_v44 = vsel %vm180_vm1, %v1321_v43, 0.0  ;;  %v5908_v6 = vpack.c.bf16 %v609_v54, %v604_v51  ;;  %v614_v14 = vadd.f32 %v6873_v1, %v613_v15  ;;  %v5330_v12 = vpop.f32.mrb[12].mxu0  ;;  %v6924_v8 = vpack.i.bf16 %v609_v54, %v604_v51 }
 0x90b   :  { %1330 = vadd.xlane.f32.xlu0 %v1329_v44  ;;  %v629_v21 = vadd.f32 %v5330_v12, %v6873_v1  ;;  %v623_v22 = vpop.f32.mrb[13].mxu0 }
 0x90c   :  { %5910 = vmatprep.subr.msk.bf16.mxu1 %vm6722_vm2, %v5908_v6  ;;  %v5914_v20 = vpack.c.bf16 %v619_v11, %v614_v14  ;;  %v5333_v27 = vpop.f32.mrb[14].mxu0  ;;  %v6928_v39 = vpack.i.bf16 %v619_v11, %v614_v14 }
 0x90d   :  { %5913 = vmatpush3.bf16.xpose.msk.msra.mxu1 %vm6722_vm2, %v5908_v6  ;;  %v633_v28 = vpop.f32.mrb[15].mxu0  ;;  %v639_v10 = vadd.f32 %v5333_v27, %v6873_v1 }
 0x90e   :  { %5916 = vmatprep.subr.msk.bf16.mxu1 %vm6722_vm2, %v5914_v20  ;;  %v634_v13 = vadd.f32 %v6873_v1, %v633_v28 }
 0x90f   :  { %1333 = vadd.xlane.f32.xlu1 %v1332_v46 }
 0x910   :  { %v5926_v40 = vpack.c.bf16 %v639_v10, %v634_v13  ;;  %v6937_v46 = vpack.i.bf16 %v639_v10, %v634_v13 }
 0x915   :  { %5919 = vmatpush3.bf16.xpose.msk.msra.mxu1 %vm6722_vm2, %v5914_v20 }
 0x95f   :  { %v1350_v47 = vpop.xlane.xlu1 %1349 }
 0x960   :  { %v1360_v48 = vmul.f32 0.03125, %v1350_v47 }
 0x962   :  { %v1364_v49 = vadd.f32 1e-05, %v1360_v48 }
 0x963   :  { %v1353_v50 = vpop.xlane.xlu1 %1352 }
 0x964   :  { %6461 = vrsqrt.f32 %v1364_v49  ;;  %v1361_v63 = vmul.f32 0.03125, %v1353_v50 }
 0x966   :  { %v1365_v0 = vadd.f32 1e-05, %v1361_v63 }
 0x967   :  { %v6910_v29 = vpop.permute.xlu1 %1504 }
 0x968   :  { %6463 = vrsqrt.f32 %v1365_v0 }
 0x96b   :  { %v6912_v30 = vpop.permute.xlu1 %1506 }
 0x96e   :  { %v6462_v53 = vpop.eup %6461 }
 0x96f   :  { %v1372_v4 = vmul.f32 %v6462_v53, %v1340_v25  ;;  %v624_v25 = vadd.f32 %v6873_v1, %v623_v22 }
 0x971   :  { %v1381_v5 = vmul.f32 %v6875_v2, %v1372_v4  ;;  %v5920_v26 = vpack.c.bf16 %v629_v21, %v624_v25  ;;  %v6930_v42 = vpack.i.bf16 %v629_v21, %v624_v25 }
 0x972   :  { %v6464_v9 = vpop.eup %6463 }
 0x973   :  { %v1373_v16 = vmul.f32 %v6464_v9, %v6817_v24  ;;  %v6885_v17 = vadd.f32 %v6879_v52, %v1381_v5  ;;  %5922 = vmatprep.subr.msk.bf16.mxu1 %vm6722_vm2, %v5920_v26 }
 0x974   :  { %5925 = vmatpush3.bf16.xpose.msk.msra.mxu1 %vm6722_vm2, %v5920_v26 }
 0x975   :  { %v1382_v19 = vmul.f32 %v6875_v2, %v1373_v16  ;;  %5416 = vmatprep.mubr.msk.f32.mxu0 %vm180_vm1, %v6885_v17  ;;  %5928 = vmatprep.subr.msk.bf16.mxu1 %vm6722_vm2, %v5926_v40 }
 0x977   :  { %v6897_v24 = vadd.f32 %v6879_v52, %v1382_v19 }
 0x979   :  { %5417 = vmatmul.mubr.msk.f32.vlgmr.msra.gmra.mrb[28].mxu0 %vm180_vm1, %v6897_v24 }
 0x97c   :  { %5931 = vmatpush3.bf16.xpose.msk.msra.mxu1 %vm6722_vm2, %v5926_v40 }
 0x998   :  { %v1331_v31 = vpop.xlane.xlu0 %1330 }
 0x999   :  { %v1338_v32 = vmul.f32 0.03125, %v1331_v31 }
 0x99b   :  { %v6914_v33 = vsub.f32 %v1321_v43, %v1338_v32  ;;  %v5336_v43 = vpop.f32.mrb[16].mxu0 }
 0x99c   :  { %v1334_v34 = vpop.xlane.xlu1 %1333  ;;  %v649_v44 = vadd.f32 %v5336_v43, %v6873_v1 }
 0x99d   :  { %v1339_v57 = vmul.f32 0.03125, %v1334_v34  ;;  %v1346_v35 = vmul.f32 %v6914_v33, %v6914_v33 }
 0x99f   :  { %v6918_v36 = vsub.f32 %v1322_v45, %v1339_v57  ;;  %v1354_v55 = vsel %vm180_vm1, %v1346_v35, 0.0  ;;  %v643_v45 = vpop.f32.mrb[17].mxu0 }
 0x9a0   :  { %1355 = vadd.xlane.f32.xlu0 %v1354_v55  ;;  %v644_v47 = vadd.f32 %v6873_v1, %v643_v45  ;;  %v5339_v49 = vpop.f32.mrb[18].mxu0 }
 0x9a1   :  { %v1347_v37 = vmul.f32 %v6918_v36, %v6918_v36  ;;  %v659_v63 = vadd.f32 %v5339_v49, %v6873_v1  ;;  %v653_v0 = vpop.f32.mrb[19].mxu0 }
 0x9a2   :  { %v5932_v48 = vpack.c.bf16 %v649_v44, %v644_v47  ;;  %v6940_v50 = vpack.i.bf16 %v649_v44, %v644_v47  ;;  %v654_v41 = vadd.f32 %v6873_v1, %v653_v0  ;;  %v5342_v53 = vpop.f32.mrb[20].mxu0 }
 0x9a3   :  { %v1357_v38 = vsel %vm180_vm1, %v1347_v37, 0.0  ;;  %v669_v4 = vadd.f32 %v5342_v53, %v6873_v1  ;;  %v663_v51 = vpop.f32.mrb[21].mxu0 }
 0x9a4   :  { %1358 = vadd.xlane.f32.xlu0 %v1357_v38  ;;  %5934 = vmatprep.subr.msk.bf16.mxu1 %vm6722_vm2, %v5932_v48  ;;  %v6948_v54 = vpack.c.bf16 %v659_v63, %v654_v41  ;;  %v6950_v3 = vpack.i.bf16 %v659_v63, %v654_v41  ;;  %v664_v5 = vadd.f32 %v6873_v1, %v663_v51 }
 0x9a5   :  { %5937 = vmatpush3.bf16.xpose.msk.msra.mxu1 %vm6722_vm2, %v5932_v48 }
 0x9a6   :  { %v6954_v7 = vpack.c.bf16 %v669_v4, %v664_v5  ;;  %v6956_v9 = vpack.i.bf16 %v669_v4, %v664_v5 }
 0x9bb   :  { %v5345_v6 = vpop.f32.mrb[22].mxu0 }
 0x9bc   :  { %v679_v11 = vadd.f32 %v5345_v6, %v6873_v1  ;;  %v673_v15 = vpop.f32.mrb[23].mxu0 }
 0x9bd   :  { %v674_v16 = vadd.f32 %v6873_v1, %v673_v15 }
 0x9bf   :  { %v5348_v14 = vpop.f32.mrb[24].mxu0  ;;  %v6960_v19 = vpack.c.bf16 %v679_v11, %v674_v16  ;;  %v6962_v20 = vpack.i.bf16 %v679_v11, %v674_v16 }
 0x9c0   :  { %v689_v12 = vadd.f32 %v5348_v14, %v6873_v1  ;;  %v683_v21 = vpop.f32.mrb[25].mxu0 }
 0x9c1   :  { %v684_v22 = vadd.f32 %v6873_v1, %v683_v21 }
 0x9c3   :  { %v5351_v25 = vpop.f32.mrb[26].mxu0  ;;  %v6966_v26 = vpack.c.bf16 %v689_v12, %v684_v22  ;;  %v6968_v27 = vpack.i.bf16 %v689_v12, %v684_v22 }
 0x9c4   :  { %v699_v28 = vadd.f32 %v5351_v25, %v6873_v1  ;;  %v693_v31 = vpop.f32.mrb[27].mxu0 }
 0x9c5   :  { %v694_v32 = vadd.f32 %v6873_v1, %v693_v31 }
 0x9c7   :  { %v6972_v34 = vpack.c.bf16 %v699_v28, %v694_v32  ;;  %v6974_v57 = vpack.i.bf16 %v699_v28, %v694_v32 }
 0xa2d   :  { %v1356_v35 = vpop.xlane.xlu0 %1355 }
 0xa2e   :  { %v1362_v55 = vmul.f32 0.03125, %v1356_v35 }
 0xa30   :  { %v1366_v37 = vadd.f32 1e-05, %v1362_v55 }
 0xa31   :  { %v1359_v38 = vpop.xlane.xlu0 %1358 }
 0xa32   :  { %6465 = vrsqrt.f32 %v1366_v37  ;;  %v1363_v10 = vmul.f32 0.03125, %v1359_v38 }
 0xa34   :  { %v1367_v13 = vadd.f32 1e-05, %v1363_v10 }
 0xa36   :  { %6467 = vrsqrt.f32 %v1367_v13 }
 0xa3c   :  { %v6466_v40 = vpop.eup %6465 }
 0xa3d   :  { %v1374_v43 = vmul.f32 %v6466_v40, %v6914_v33  ;;  %v6990_v33 = vld [vmem:[#allocation2 + $0xb8] ss:$0 sm:$0xff] }
 0xa3f   :  { %v1383_v44 = vmul.f32 %v6875_v2, %v1374_v43 }
 0xa40   :  { %v6468_v45 = vpop.eup %6467 }
 0xa41   :  { %v6979_v1 = vadd.f32 %v6879_v52, %v1383_v44  ;;  %v1375_v47 = vmul.f32 %v6468_v45, %v6918_v36 }
 0xa43   :  { %5419 = vmatprep.mubr.msk.f32.mxu0 %vm180_vm1, %v6979_v1  ;;  %v1384_v48 = vmul.f32 %v6875_v2, %v1375_v47 }
 0xa45   :  { %v6986_v49 = vadd.f32 %v6879_v52, %v1384_v48 }
 0xa47   :  { %5420 = vmatmul.mubr.msk.f32.gmra.mrb[30].mxu0 %vm180_vm1, %v6986_v49 }
 0xa4c   :  { %v5418_v63 = vpop.f32.mrb[28].mxu0 }
 0xa4d   :  { %v1487_v0 = vadd.f32 %v5418_v63, %v6990_v33  ;;  %v1481_v41 = vpop.f32.mrb[29].mxu0 }
 0xa4e   :  { %v1482_v53 = vadd.f32 %v6990_v33, %v1481_v41 }
 0xa4f   :  { %v1517_v4 = vadd.f32 %v6912_v30, %v1487_v0 }
 0xa50   :  { %v1516_v36 = vadd.f32 %v6910_v29, %v1482_v53 }
 0xa52   :  { %5442 = vmatprep.mubr.msk.f32.mxu1 %vm180_vm1, %v1516_v36 }
 0xa53   :  { %5443 = vmatmul.mubr.msk.f32.vlgmr.msra.gmra.mrb[24].mxu1 %vm180_vm1, %v1517_v4 }
 0xb1a   :  { %v6998_v2 = vpop.f32.mrb[30].mxu0 }
 0xb1b   :  { %v7000_v52 = vpop.f32.mrb[31].mxu0 }
 0xb26   :  { %v5444_v51 = vpop.f32.mrb[24].mxu1 }
 0xb27   :  { %v1622_v5 = vpop.f32.mrb[25].mxu1  ;;  %v1635_v11 = vsel %vm1631_vm5, %v5444_v51, -inf }
 0xb28   :  { %v1632_v6 = vsel %vm1631_vm5, %v1622_v5, -inf }
 0xb29   :  { %1633 = vmax.xlane.f32.xlu0 %v1632_v6 }
 0xb2d   :  { %1636 = vmax.xlane.f32.xlu0 %v1635_v11 }
 0xb43   :  { %6276 = vrot.lane.b32.xlu0 %v6924_v8, %s6588_s0 }
 0xb47   :  { %6286 = vrot.lane.b32.xlu0 %v6930_v42, %s6588_s0 }
 0xb4b   :  { %6291 = vrot.lane.b32.xlu0 %v6937_v46, %s6588_s0 }
 0xbb6   :  { %v1634_v29 = vpop.xlane.xlu0 %1633 }
 0xbb7   :  { %v1638_v30 = vsub.f32 %v1622_v5, %v1634_v29  ;;  %v1492_v29 = vadd.f32 %v6990_v33, %v7000_v52 }
 0xbb9   :  { %v1640_v15 = vmul.f32 1.442695, %v1638_v30 }
 0xbba   :  { %v1637_v16 = vpop.xlane.xlu0 %1636 }
 0xbbb   :  { %6469 = vpow2.f32 %v1640_v15  ;;  %v1639_v14 = vsub.f32 %v5444_v51, %v1637_v16 }
 0xbbd   :  { %v1642_v12 = vmul.f32 1.442695, %v1639_v14 }
 0xbbe   :  { %v6277_v21 = vpop.permute.xlu0 %6276 }
 0xbbf   :  { %6471 = vpow2.f32 %v1642_v12  ;;  %v6279_v22 = vunpack.i.h.bf16 %v6277_v21  ;;  %v6278_v25 = vunpack.i.l.bf16 %v6277_v21 }
 0xbc1   :  { %v5938_v28 = vpack.c.bf16 %v6279_v22, %v6278_v25 }
 0xbc2   :  { %v6287_v37 = vpop.permute.xlu0 %6286 }
 0xbc3   :  { %5939 = vmatprep.subr.bf16.mxu0 %v5938_v28  ;;  %v6289_v43 = vunpack.i.h.bf16 %v6287_v37  ;;  %v6288_v44 = vunpack.i.l.bf16 %v6287_v37 }
 0xbc4   :  { %5941 = vmatpush3.bf16.msra.mxu0 %v5938_v28 }
 0xbc5   :  { %v6470_v31 = vpop.eup %6469 }
 0xbc6   :  { %v1644_v32 = vsel %vm1631_vm5, %v6470_v31, 0.0  ;;  %v6292_v38 = vpop.permute.xlu0 %6291 }
 0xbc7   :  { %1645 = vadd.xlane.f32.xlu0 %v1644_v32  ;;  %v6294_v41 = vunpack.i.h.bf16 %v6292_v38  ;;  %v6293_v53 = vunpack.i.l.bf16 %v6292_v38 }
 0xbc9   :  { %v6472_v35 = vpop.eup %6471  ;;  %v5950_v51 = vpack.c.bf16 %v6294_v41, %v6293_v53 }
 0xbca   :  { %v1647_v55 = vsel %vm1631_vm5, %v6472_v35, 0.0 }
 0xbcb   :  { %1648 = vadd.xlane.f32.xlu1 %v1647_v55 }
 0xbdc   :  { %6281 = vrot.lane.b32.xlu1 %v6928_v39, %s6588_s0 }
 0xbdd   :  { %6296 = vrot.lane.b32.xlu0 %v6940_v50, %s6588_s0 }
 0xbe0   :  { %1510 = vrot.lane.b32.xlu1 %v6694_v59, %s6590_s18  ;;  %v5946_v59 = vpack.c.bf16 %v6289_v43, %v6288_v44 }
 0xbe1   :  { %1508 = vrot.lane.b32.xlu0 %v6698_v61, %s6590_s18 }
 0xc54   :  { %v1646_v10 = vpop.xlane.xlu0 %1645 }
 0xc55   :  { %6473 = vrcp.f32 %v1646_v10 }
 0xc58   :  { %v1649_v13 = vpop.xlane.xlu1 %1648  ;;  %v6297_v36 = vpop.permute.xlu0 %6296 }
 0xc59   :  { %6475 = vrcp.f32 %v1649_v13  ;;  %v6299_v61 = vunpack.i.h.bf16 %v6297_v36  ;;  %v6298_v4 = vunpack.i.l.bf16 %v6297_v36 }
 0xc5b   :  { %v5954_v5 = vpack.c.bf16 %v6299_v61, %v6298_v4 }
 0xc5c   :  { %v6282_v40 = vpop.permute.xlu1 %6281  ;;  %v1509_v11 = vpop.permute.xlu0 %1508 }
 0xc5d   :  { %v6284_v45 = vunpack.i.h.bf16 %v6282_v40  ;;  %v6283_v47 = vunpack.i.l.bf16 %v6282_v40  ;;  %v1518_v15 = vadd.f32 %v1509_v11, %v1492_v29 }
 0xc5f   :  { %v6474_v48 = vpop.eup %6473  ;;  %v5942_v63 = vpack.c.bf16 %v6284_v45, %v6283_v47 }
 0xc60   :  { %v1651_v0 = vmul.f32 %v6474_v48, %v6470_v31 }
 0xc61   :  { %5943 = vmatprep.subr.bf16.mxu0 %v5942_v63 }
 0xc62   :  { %5945 = vmatpush3.bf16.msra.mxu0 %v5942_v63  ;;  %5465 = vmatprep.mubr.msk.f32.mxu0 %vm1631_vm5, %v1651_v0 }
 0xc63   :  { %5947 = vmatprep.subr.bf16.mxu0 %v5946_v59  ;;  %v6476_v6 = vpop.eup %6475 }
 0xc64   :  { %v1653_v30 = vmul.f32 %v6476_v6, %v6472_v35  ;;  %v2010_v6 = vld [vmem:[#allocation2 + $0xc8] sm:$0xff] }
 0xc66   :  { %5949 = vmatpush3.bf16.msra.mxu0 %v5946_v59 }
 0xc67   :  { %5951 = vmatprep.subr.bf16.mxu0 %v5950_v51 }
 0xc6a   :  { %5953 = vmatpush3.bf16.msra.mxu0 %v5950_v51 }
 0xc6b   :  { %5955 = vmatprep.subr.bf16.mxu0 %v5954_v5 }
 0xc6e   :  { %5957 = vmatpush3.bf16.msra.mxu0 %v5954_v5  ;;  %v2009_v5 = vld [vmem:[#allocation2 + $0xc0] sm:$0xff] }
 0xc6f   :  { %5960 = vmatprep.subr.msk.bf16.mxu0 %vm6722_vm2, %v6948_v54 }
 0xc71   :  { %5466 = vmatmul.mubr.msk.f32.vlgmr.msra.gmra.mrb[32].mxu0 %vm1631_vm5, %v1653_v30 }
 0xc72   :  { %5488 = vmatprep.mubr.msk.f32.mxu0 %vm180_vm1, %v1518_v15  ;;  %v6008_v15 = vpack.c.bf16 %v2010_v6, %v2009_v5 }
 0xc77   :  { %5963 = vmatpush3.bf16.xpose.msk.msra.mxu0 %vm6722_vm2, %v6948_v54  ;;  %v1511_v54 = vpop.permute.xlu1 %1510 }
 0xc78   :  { %5966 = vmatprep.subr.msk.bf16.mxu0 %vm6722_vm2, %v6954_v7 }
 0xc7f   :  { %5969 = vmatpush3.bf16.xpose.msk.msra.mxu0 %vm6722_vm2, %v6954_v7  ;;  %v1497_v7 = vadd.f32 %v6998_v2, %v6990_v33 }
 0xc80   :  { %5972 = vmatprep.subr.msk.bf16.mxu0 %vm6722_vm2, %v6960_v19 }
 0xc87   :  { %5975 = vmatpush3.bf16.xpose.msk.msra.mxu0 %vm6722_vm2, %v6960_v19  ;;  %v1519_v19 = vadd.f32 %v1511_v54, %v1497_v7  ;;  %v2011_v7 = vld [vmem:[#allocation2 + $0xd0] sm:$0xff] }
 0xc88   :  { %5978 = vmatprep.subr.msk.bf16.mxu0 %vm6722_vm2, %v6966_v26 }
 0xc8f   :  { %5981 = vmatpush3.bf16.xpose.msk.msra.mxu0 %vm6722_vm2, %v6966_v26 }
 0xc90   :  { %5984 = vmatprep.subr.msk.bf16.mxu0 %vm6722_vm2, %v6972_v34 }
 0xc97   :  { %5987 = vmatpush3.bf16.xpose.msk.msra.mxu0 %vm6722_vm2, %v6972_v34 }
 0xc9e   :  { %5489 = vmatmul.mubr.msk.f32.vlgmr.msra.gmra.mrb[34].mxu0 %vm180_vm1, %v1519_v19  ;;  %v2012_v19 = vld [vmem:[#allocation2 + $0xd8] sm:$0xff] }
 0xd44   :  { %v7058_v52 = vpop.f32.mrb[32].mxu0 }
 0xd45   :  { %v7060_v16 = vpop.f32.mrb[33].mxu0 }
 0xd71   :  { %v5490_v26 = vpop.f32.mrb[34].mxu0 }
 0xd72   :  { %v1867_v14 = vpop.f32.mrb[35].mxu0  ;;  %v1879_v12 = vsel %vm1631_vm5, %v5490_v26, -inf }
 0xd73   :  { %1880 = vmax.xlane.f32.xlu1 %v1879_v12  ;;  %v1876_v21 = vsel %vm1631_vm5, %v1867_v14, -inf }
 0xd74   :  { %1877 = vmax.xlane.f32.xlu0 %v1876_v21  ;;  %v6012_v21 = vpack.c.bf16 %v2012_v19, %v2011_v7 }
 0xd84   :  { %6301 = vrot.lane.b32.xlu1 %v6950_v3, %s6588_s0 }
 0xd88   :  { %6311 = vrot.lane.b32.xlu1 %v6962_v20, %s6588_s0 }
 0xd8a   :  { %6306 = vrot.lane.b32.xlu0 %v6956_v9, %s6588_s0 }
 0xd8c   :  { %6316 = vrot.lane.b32.xlu1 %v6968_v27, %s6588_s0 }
 0xe00   :  { %v1881_v34 = vpop.xlane.xlu1 %1880 }
 0xe01   :  { %v1883_v33 = vsub.f32 %v5490_v26, %v1881_v34  ;;  %v1878_v2 = vpop.xlane.xlu0 %1877 }
 0xe02   :  { %v1882_v22 = vsub.f32 %v1867_v14, %v1878_v2  ;;  %v4832_v2 = vld [vmem:[#allocation2 + $0xe0] ss:$0 sm:$0xff] }
 0xe03   :  { %v1886_v25 = vmul.f32 1.442695, %v1883_v33 }
 0xe04   :  { %v1884_v28 = vmul.f32 1.442695, %v1882_v22  ;;  %v6302_v31 = vpop.permute.xlu1 %6301 }
 0xe05   :  { %6477 = vpow2.f32 %v1886_v25  ;;  %v6304_v32 = vunpack.i.h.bf16 %v6302_v31  ;;  %v6303_v35 = vunpack.i.l.bf16 %v6302_v31  ;;  %v6307_v55 = vpop.permute.xlu0 %6306 }
 0xe06   :  { %v6309_v37 = vunpack.i.h.bf16 %v6307_v55  ;;  %v6308_v38 = vunpack.i.l.bf16 %v6307_v55  ;;  %6479 = vpow2.f32 %v1884_v28 }
 0xe07   :  { %v5988_v10 = vpack.c.bf16 %v6304_v32, %v6303_v35 }
 0xe08   :  { %v5992_v13 = vpack.c.bf16 %v6309_v37, %v6308_v38  ;;  %v6312_v40 = vpop.permute.xlu1 %6311 }
 0xe09   :  { %v6314_v43 = vunpack.i.h.bf16 %v6312_v40  ;;  %v6313_v44 = vunpack.i.l.bf16 %v6312_v40  ;;  %5989 = vmatprep.subr.bf16.mxu1 %v5988_v10 }
 0xe0a   :  { %5991 = vmatpush3.bf16.msra.mxu1 %v5988_v10 }
 0xe0b   :  { %5993 = vmatprep.subr.bf16.mxu1 %v5992_v13  ;;  %v5996_v47 = vpack.c.bf16 %v6314_v43, %v6313_v44 }
 0xe0c   :  { %v6317_v45 = vpop.permute.xlu1 %6316 }
 0xe0d   :  { %v6319_v48 = vunpack.i.h.bf16 %v6317_v45  ;;  %v6318_v63 = vunpack.i.l.bf16 %v6317_v45 }
 0xe0e   :  { %5995 = vmatpush3.bf16.msra.mxu1 %v5992_v13 }
 0xe0f   :  { %v6478_v0 = vpop.eup %6477  ;;  %5997 = vmatprep.subr.bf16.mxu1 %v5996_v47  ;;  %v6000_v59 = vpack.c.bf16 %v6319_v48, %v6318_v63  ;;  %v2191_v63 = vld [vmem:[#allocation2 + $0x108] sm:$0xff] }
 0xe10   :  { %v1891_v41 = vsel %vm1631_vm5, %v6478_v0, 0.0  ;;  %v6480_v53 = vpop.eup %6479 }
 0xe11   :  { %1892 = vadd.xlane.f32.xlu0 %v1891_v41  ;;  %v1888_v36 = vsel %vm1631_vm5, %v6480_v53, 0.0 }
 0xe12   :  { %5999 = vmatpush3.bf16.msra.mxu1 %v5996_v47  ;;  %v2190_v47 = vld [vmem:[#allocation2 + $0x100] sm:$0xff] }
 0xe13   :  { %6001 = vmatprep.subr.bf16.mxu1 %v6000_v59 }
 0xe15   :  { %1889 = vadd.xlane.f32.xlu0 %v1888_v36 }
 0xe16   :  { %6003 = vmatpush3.bf16.msra.mxu1 %v6000_v59 }
 0xe2b   :  { %6321 = vrot.lane.b32.xlu0 %v6974_v57, %s6588_s0 }
 0xe9e   :  { %v1893_v61 = vpop.xlane.xlu0 %1892 }
 0xe9f   :  { %6481 = vrcp.f32 %v1893_v61 }
 0xea2   :  { %v1890_v4 = vpop.xlane.xlu0 %1889 }
 0xea3   :  { %6483 = vrcp.f32 %v1890_v4 }
 0xea6   :  { %v6322_v51 = vpop.permute.xlu0 %6321 }
 0xea7   :  { %v6324_v11 = vunpack.i.h.bf16 %v6322_v51  ;;  %v6323_v29 = vunpack.i.l.bf16 %v6322_v51 }
 0xea9   :  { %v6004_v30 = vpack.c.bf16 %v6324_v11, %v6323_v29  ;;  %v6482_v54 = vpop.eup %6481 }
 0xeaa   :  { %v1897_v12 = vmul.f32 %v6482_v54, %v6478_v0  ;;  %v2192_v0 = vld [vmem:[#allocation2 + $0x110] sm:$0xff] }
 0xeab   :  { %6005 = vmatprep.subr.bf16.mxu1 %v6004_v30  ;;  %v6020_v41 = vpack.c.bf16 %v2192_v0, %v2191_v63 }
 0xeac   :  { %6007 = vmatpush3.bf16.msra.mxu1 %v6004_v30 }
 0xead   :  { %v6484_v26 = vpop.eup %6483  ;;  %6009 = vmatprep.subr.bf16.mxu1 %v6008_v15 }
 0xeae   :  { %v1895_v14 = vmul.f32 %v6484_v26, %v6480_v53  ;;  %v4837_v26 = vld [vmem:[#allocation2 + $0xe8] ss:$0 sm:$0xff] }
 0xeb0   :  { %5511 = vmatprep.mubr.msk.f32.mxu1 %vm1631_vm5, %v1895_v14 }
 0xeb1   :  { %5512 = vmatmul.mubr.msk.f32.vlgmr.msra.gmra.mrb[26].mxu1 %vm1631_vm5, %v1897_v12 }
 0xeb2   :  { %6011 = vmatpush3.bf16.msra.mxu1 %v6008_v15  ;;  %5522 = vmatprep.mubr.msk.f32.mxu1 %vm180_vm1, %v7060_v16 }
 0xeb3   :  { %6013 = vmatprep.subr.bf16.mxu1 %v6012_v21 }
 0xeb6   :  { %6015 = vmatpush3.bf16.msra.mxu1 %v6012_v21 }
 0xeb9   :  { %5523 = vmatmul.mubr.msk.f32.vlgmr.msra.gmra.mrb[28].mxu1 %vm180_vm1, %v7058_v52 }
 0xf84   :  { %v5513_v34 = vpop.f32.mrb[26].mxu1 }
 0xf85   :  { %v2000_v33 = vpop.f32.mrb[27].mxu1 }
 0xf86   :  { %5525 = vmatprep.mubr.msk.f32.mxu1 %vm180_vm1, %v2000_v33 }
 0xf87   :  { %5526 = vmatmul.mubr.msk.f32.gmra.mrb[30].mxu1 %vm180_vm1, %v5513_v34 }
 0xf8c   :  { %v5524_v22 = vpop.f32.mrb[28].mxu1 }
 0xf8d   :  { %v2102_v25 = vadd.f32 %v5524_v22, %v4832_v2  ;;  %v2096_v28 = vpop.f32.mrb[29].mxu1 }
 0xf8e   :  { %v2097_v31 = vadd.f32 %v4832_v2, %v2096_v28 }
 0xf8f   :  { %v2116_v32 = vadd.f32 %v2102_v25, %v6897_v24 }
 0xf90   :  { %v2115_v16 = vadd.f32 %v2097_v31, %v6885_v17  ;;  %v2189_v17 = vld [vmem:[#allocation2 + $0xf8] sm:$0xff] }
 0xf91   :  { %v2122_v35 = vsel %vm180_vm1, %v2116_v32, 0.0  ;;  %v6016_v48 = vpack.c.bf16 %v2190_v47, %v2189_v17  ;;  %v2305_v47 = vld [vmem:[#allocation2 + $0x150] sm:$0xff] }
 0xf92   :  { %2123 = vadd.xlane.f32.xlu0 %v2122_v35  ;;  %v2119_v52 = vsel %vm180_vm1, %v2115_v16, 0.0 }
 0xf93   :  { %2120 = vadd.xlane.f32.xlu1 %v2119_v52  ;;  %6017 = vmatprep.subr.bf16.mxu0 %v6016_v48 }
 0xf94   :  { %6019 = vmatpush3.bf16.msra.mxu0 %v6016_v48  ;;  %v2306_v48 = vld [vmem:[#allocation2 + $0x158] sm:$0xff] }
 0xf95   :  { %6021 = vmatprep.subr.bf16.mxu0 %v6020_v41  ;;  %v6036_v63 = vpack.c.bf16 %v2306_v48, %v2305_v47 }
 0xf98   :  { %6023 = vmatpush3.bf16.msra.mxu0 %v6020_v41 }
0x101f   :  { %v2124_v55 = vpop.xlane.xlu0 %2123 }
0x1020   :  { %v2132_v37 = vmul.f32 0.03125, %v2124_v55  ;;  %v2121_v38 = vpop.xlane.xlu1 %2120 }
0x1021   :  { %v2131_v10 = vmul.f32 0.03125, %v2121_v38  ;;  %v2299_v38 = vld [vmem:[#allocation2 + $0x120] sm:$0xff] }
0x1022   :  { %v2136_v13 = vsub.f32 %v2116_v32, %v2132_v37 }
0x1023   :  { %v2135_v40 = vsub.f32 %v2115_v16, %v2131_v10  ;;  %v2300_v10 = vld [vmem:[#allocation2 + $0x128] sm:$0xff] }
0x1024   :  { %v2140_v43 = vmul.f32 %v2136_v13, %v2136_v13 }
0x1025   :  { %v2139_v44 = vmul.f32 %v2135_v40, %v2135_v40 }
0x1026   :  { %v2146_v45 = vsel %vm180_vm1, %v2140_v43, 0.0  ;;  %v2302_v43 = vld [vmem:[#allocation2 + $0x138] sm:$0xff] }
0x1027   :  { %2147 = vadd.xlane.f32.xlu1 %v2146_v45  ;;  %v2143_v24 = vsel %vm180_vm1, %v2139_v44, 0.0  ;;  %v2303_v45 = vld [vmem:[#allocation2 + $0x140] sm:$0xff] }
0x1028   :  { %2144 = vadd.xlane.f32.xlu0 %v2143_v24  ;;  %v2304_v24 = vld [vmem:[#allocation2 + $0x148] sm:$0xff] }
0x1029   :  { %v6032_v17 = vpack.c.bf16 %v2304_v24, %v2303_v45 }
0x105a   :  { %v5527_v53 = vpop.f32.mrb[30].mxu1 }
0x105b   :  { %v2112_v59 = vadd.f32 %v5527_v53, %v4832_v2  ;;  %v2106_v36 = vpop.f32.mrb[31].mxu1 }
0x105c   :  { %v2107_v61 = vadd.f32 %v4832_v2, %v2106_v36 }
0x105d   :  { %v2118_v4 = vadd.f32 %v2112_v59, %v6986_v49 }
0x105e   :  { %v2117_v51 = vadd.f32 %v2107_v61, %v6979_v1  ;;  %v4838_v1 = vld [vmem:[#allocation2 + $0xf0] ss:$0 sm:$0xff] }
0x105f   :  { %v2128_v5 = vsel %vm180_vm1, %v2118_v4, 0.0 }
0x1060   :  { %2129 = vadd.xlane.f32.xlu1 %v2128_v5  ;;  %v2125_v6 = vsel %vm180_vm1, %v2117_v51, 0.0 }
0x1061   :  { %2126 = vadd.xlane.f32.xlu0 %v2125_v6 }
0x10b4   :  { %v2148_v11 = vpop.xlane.xlu1 %2147 }
0x10b5   :  { %v2156_v29 = vmul.f32 0.03125, %v2148_v11  ;;  %v2145_v30 = vpop.xlane.xlu0 %2144 }
0x10b6   :  { %v2155_v15 = vmul.f32 0.03125, %v2145_v30 }
0x10b7   :  { %v2160_v54 = vadd.f32 1e-05, %v2156_v29 }
0x10b8   :  { %v2159_v7 = vadd.f32 1e-05, %v2155_v15 }
0x10b9   :  { %6485 = vrsqrt.f32 %v2160_v54  ;;  %v4839_v54 = vld [vmem:[#allocation2 + $0x118] ss:$0 sm:$0xff] }
0x10ba   :  { %6487 = vrsqrt.f32 %v2159_v7 }
0x10c3   :  { %v6486_v19 = vpop.eup %6485 }
0x10c4   :  { %v6488_v14 = vpop.eup %6487  ;;  %v2168_v49 = vmul.f32 %v6486_v19, %v2136_v13  ;;  %v6024_v13 = vpack.c.bf16 %v2300_v10, %v2299_v38 }
0x10c5   :  { %v2167_v12 = vmul.f32 %v6488_v14, %v2135_v40  ;;  %v2301_v40 = vld [vmem:[#allocation2 + $0x130] sm:$0xff] }
0x10c6   :  { %v2177_v21 = vmul.f32 %v4837_v26, %v2168_v49  ;;  %6025 = vmatprep.subr.bf16.mxu1 %v6024_v13  ;;  %v6028_v44 = vpack.c.bf16 %v2302_v43, %v2301_v40 }
0x10c7   :  { %v2176_v34 = vmul.f32 %v4837_v26, %v2167_v12  ;;  %6027 = vmatpush3.bf16.msra.mxu1 %v6024_v13 }
0x10c8   :  { %v7096_v2 = vadd.f32 %v4838_v1, %v2177_v21  ;;  %6029 = vmatprep.subr.bf16.mxu1 %v6028_v44 }
0x10c9   :  { %v7094_v33 = vadd.f32 %v4838_v1, %v2176_v34 }
0x10cb   :  { %5536 = vmatprep.mubr.msk.f32.mxu0 %vm180_vm1, %v7094_v33  ;;  %6031 = vmatpush3.bf16.msra.mxu1 %v6028_v44 }
0x10cc   :  { %5537 = vmatmul.mubr.msk.f32.vlgmr.msra.gmra.mrb[36].mxu0 %vm180_vm1, %v7096_v2  ;;  %6033 = vmatprep.subr.bf16.mxu1 %v6032_v17 }
0x10cf   :  { %6035 = vmatpush3.bf16.msra.mxu1 %v6032_v17 }
0x10d0   :  { %6037 = vmatprep.subr.bf16.mxu1 %v6036_v63 }
0x10d3   :  { %6039 = vmatpush3.bf16.msra.mxu1 %v6036_v63  ;;  %v2485_v63 = vld [vmem:[#allocation2 + $0x1a0] sm:$0xff] }
0x10ed   :  { %v2130_v22 = vpop.xlane.xlu1 %2129 }
0x10ee   :  { %v2134_v25 = vmul.f32 0.03125, %v2130_v22  ;;  %v2127_v28 = vpop.xlane.xlu0 %2126 }
0x10ef   :  { %v2133_v31 = vmul.f32 0.03125, %v2127_v28 }
0x10f0   :  { %v2138_v32 = vsub.f32 %v2118_v4, %v2134_v25 }
0x10f1   :  { %v2137_v16 = vsub.f32 %v2117_v51, %v2133_v31  ;;  %v4844_v31 = vld [vmem:[#allocation2 + $0x160] ss:$0 sm:$0xff] }
0x10f2   :  { %v2142_v35 = vmul.f32 %v2138_v32, %v2138_v32 }
0x10f3   :  { %v2141_v52 = vmul.f32 %v2137_v16, %v2137_v16 }
0x10f4   :  { %v2152_v55 = vsel %vm180_vm1, %v2142_v35, 0.0 }
0x10f5   :  { %2153 = vadd.xlane.f32.xlu1 %v2152_v55  ;;  %v2149_v37 = vsel %vm180_vm1, %v2141_v52, 0.0 }
0x10f6   :  { %2150 = vadd.xlane.f32.xlu0 %v2149_v37 }
0x1182   :  { %v2154_v0 = vpop.xlane.xlu1 %2153 }
0x1183   :  { %v2158_v41 = vmul.f32 0.03125, %v2154_v0  ;;  %v2151_v53 = vpop.xlane.xlu0 %2150 }
0x1184   :  { %v2157_v59 = vmul.f32 0.03125, %v2151_v53  ;;  %v2487_v53 = vld [vmem:[#allocation2 + $0x1b0] sm:$0xff] }
0x1185   :  { %v2162_v36 = vadd.f32 1e-05, %v2158_v41  ;;  %v2486_v41 = vld [vmem:[#allocation2 + $0x1a8] sm:$0xff] }
0x1186   :  { %v2161_v61 = vadd.f32 1e-05, %v2157_v59  ;;  %v6044_v59 = vpack.c.bf16 %v2487_v53, %v2486_v41 }
0x1187   :  { %6489 = vrsqrt.f32 %v2162_v36 }
0x1188   :  { %6491 = vrsqrt.f32 %v2161_v61 }
0x1191   :  { %v6490_v4 = vpop.eup %6489 }
0x1192   :  { %v6492_v51 = vpop.eup %6491  ;;  %v2170_v5 = vmul.f32 %v6490_v4, %v2138_v32 }
0x1193   :  { %v2169_v6 = vmul.f32 %v6492_v51, %v2137_v16 }
0x1194   :  { %v2179_v11 = vmul.f32 %v4837_v26, %v2170_v5 }
0x1195   :  { %v2178_v29 = vmul.f32 %v4837_v26, %v2169_v6 }
0x1196   :  { %v2188_v15 = vadd.f32 %v4838_v1, %v2179_v11 }
0x1197   :  { %v2187_v30 = vadd.f32 %v4838_v1, %v2178_v29 }
0x1199   :  { %5539 = vmatprep.mubr.msk.f32.mxu0 %vm180_vm1, %v2187_v30 }
0x119a   :  { %5540 = vmatmul.mubr.msk.f32.gmra.mrb[38].mxu0 %vm180_vm1, %v2188_v15 }
0x119f   :  { %v5538_v7 = vpop.f32.mrb[36].mxu0 }
0x11a0   :  { %v2282_v19 = vadd.f32 %v5538_v7, %v4839_v54  ;;  %v2276_v14 = vpop.f32.mrb[37].mxu0 }
0x11a1   :  { %v2277_v49 = vadd.f32 %v4839_v54, %v2276_v14 }
0x11a2   :  { %v2296_v21 = vmax.f32 %v2282_v19, 0.0 }
0x11a3   :  { %v2295_v12 = vmax.f32 %v2277_v49, 0.0 }
0x11a5   :  { %5558 = vmatprep.mubr.msk.f32.mxu1 %vm2312_vm6, %v2295_v12 }
0x11a6   :  { %5559 = vmatmul.mubr.msk.f32.vlgmr.msra.gmra.mrb[32].mxu1 %vm2312_vm6, %v2296_v21 }
0x126d   :  { %v5541_v34 = vpop.f32.mrb[38].mxu0 }
0x126e   :  { %v2292_v26 = vadd.f32 %v5541_v34, %v4839_v54  ;;  %v2286_v22 = vpop.f32.mrb[39].mxu0  ;;  %v4849_v34 = vld [vmem:[#allocation2 + $0x168] ss:$0 sm:$0xff] }
0x126f   :  { %v2287_v1 = vadd.f32 %v4839_v54, %v2286_v22 }
0x1270   :  { %v2298_v28 = vmax.f32 %v2292_v26, 0.0 }
0x1271   :  { %v2297_v25 = vmax.f32 %v2287_v1, 0.0  ;;  %v4850_v1 = vld [vmem:[#allocation2 + $0x170] ss:$0 sm:$0xff] }
0x1273   :  { %5561 = vmatprep.mubr.msk.f32.mxu1 %vm2312_vm6, %v2297_v25 }
0x1274   :  { %5562 = vmatmul.mubr.msk.f32.gmra.mrb[34].mxu1 %vm2312_vm6, %v2298_v28 }
0x1279   :  { %v5560_v32 = vpop.f32.mrb[32].mxu1 }
0x127a   :  { %v2397_v16 = vadd.f32 %v5560_v32, %v4844_v31  ;;  %v2391_v35 = vpop.f32.mrb[33].mxu1 }
0x127b   :  { %v2392_v52 = vadd.f32 %v4844_v31, %v2391_v35 }
0x127c   :  { %v2411_v55 = vadd.f32 %v2397_v16, %v7096_v2 }
0x127d   :  { %v2410_v37 = vadd.f32 %v2392_v52, %v7094_v33  ;;  %v2484_v33 = vld [vmem:[#allocation2 + $0x198] sm:$0xff] }
0x127e   :  { %v2417_v38 = vsel %vm180_vm1, %v2411_v55, 0.0  ;;  %v6040_v0 = vpack.c.bf16 %v2485_v63, %v2484_v33 }
0x127f   :  { %2418 = vadd.xlane.f32.xlu1 %v2417_v38  ;;  %v2414_v10 = vsel %vm180_vm1, %v2410_v37, 0.0 }
0x1280   :  { %2415 = vadd.xlane.f32.xlu0 %v2414_v10  ;;  %6041 = vmatprep.subr.bf16.mxu0 %v6040_v0 }
0x1281   :  { %6043 = vmatpush3.bf16.msra.mxu0 %v6040_v0 }
0x1282   :  { %6045 = vmatprep.subr.bf16.mxu0 %v6044_v59 }
0x1285   :  { %6047 = vmatpush3.bf16.msra.mxu0 %v6044_v59 }
0x130c   :  { %v2419_v13 = vpop.xlane.xlu1 %2418 }
0x130d   :  { %v2427_v40 = vmul.f32 0.03125, %v2419_v13  ;;  %v2416_v43 = vpop.xlane.xlu0 %2415 }
0x130e   :  { %v2426_v44 = vmul.f32 0.03125, %v2416_v43 }
0x130f   :  { %v2431_v45 = vsub.f32 %v2411_v55, %v2427_v40 }
0x1310   :  { %v2430_v24 = vsub.f32 %v2410_v37, %v2426_v44 }
0x1311   :  { %v2435_v17 = vmul.f32 %v2431_v45, %v2431_v45 }
0x1312   :  { %v2434_v47 = vmul.f32 %v2430_v24, %v2430_v24 }
0x1313   :  { %v2441_v48 = vsel %vm180_vm1, %v2435_v17, 0.0 }
0x1314   :  { %2442 = vadd.xlane.f32.xlu1 %v2441_v48  ;;  %v2438_v2 = vsel %vm180_vm1, %v2434_v47, 0.0 }
0x1315   :  { %2439 = vadd.xlane.f32.xlu0 %v2438_v2 }
0x1347   :  { %v5563_v36 = vpop.f32.mrb[34].mxu1 }
0x1348   :  { %v2407_v61 = vadd.f32 %v5563_v36, %v4844_v31  ;;  %v2401_v4 = vpop.f32.mrb[35].mxu1  ;;  %v4851_v36 = vld [vmem:[#allocation2 + $0x1b8] ss:$0 sm:$0xff] }
0x1349   :  { %v2402_v51 = vadd.f32 %v4844_v31, %v2401_v4 }
0x134a   :  { %v2413_v5 = vadd.f32 %v2407_v61, %v2188_v15 }
0x134b   :  { %v2412_v6 = vadd.f32 %v2402_v51, %v2187_v30 }
0x134c   :  { %v2423_v11 = vsel %vm180_vm1, %v2413_v5, 0.0 }
0x134d   :  { %2424 = vadd.xlane.f32.xlu1 %v2423_v11  ;;  %v2420_v29 = vsel %vm180_vm1, %v2412_v6, 0.0 }
0x134e   :  { %2421 = vadd.xlane.f32.xlu0 %v2420_v29 }
0x13a1   :  { %v2443_v54 = vpop.xlane.xlu1 %2442 }
0x13a2   :  { %v2451_v7 = vmul.f32 0.03125, %v2443_v54  ;;  %v2440_v19 = vpop.xlane.xlu0 %2439 }
0x13a3   :  { %v2450_v14 = vmul.f32 0.03125, %v2440_v19 }
0x13a4   :  { %v2455_v49 = vadd.f32 1e-05, %v2451_v7 }
0x13a5   :  { %v2454_v12 = vadd.f32 1e-05, %v2450_v14 }
0x13a6   :  { %6493 = vrsqrt.f32 %v2455_v49 }
0x13a7   :  { %6495 = vrsqrt.f32 %v2454_v12 }
0x13b0   :  { %v6494_v21 = vpop.eup %6493 }
0x13b1   :  { %v6496_v26 = vpop.eup %6495  ;;  %v2463_v22 = vmul.f32 %v6494_v21, %v2431_v45 }
0x13b2   :  { %v2462_v15 = vmul.f32 %v6496_v26, %v2430_v24 }
0x13b3   :  { %v2472_v30 = vmul.f32 %v4849_v34, %v2463_v22 }
0x13b4   :  { %v2471_v25 = vmul.f32 %v4849_v34, %v2462_v15 }
0x13b5   :  { %v7120_v31 = vadd.f32 %v4850_v1, %v2472_v30 }
0x13b6   :  { %v7118_v28 = vadd.f32 %v4850_v1, %v2471_v25 }
0x13b8   :  { %5572 = vmatprep.mubr.msk.f32.mxu0 %vm180_vm1, %v7118_v28 }
0x13b9   :  { %5573 = vmatmul.mubr.msk.f32.vlgmr.msra.gmra.mrb[40].mxu0 %vm180_vm1, %v7120_v31 }
0x13da   :  { %v2425_v32 = vpop.xlane.xlu1 %2424 }
0x13db   :  { %v2429_v16 = vmul.f32 0.03125, %v2425_v32  ;;  %v2422_v35 = vpop.xlane.xlu0 %2421 }
0x13dc   :  { %v2428_v52 = vmul.f32 0.03125, %v2422_v35 }
0x13dd   :  { %v2433_v55 = vsub.f32 %v2413_v5, %v2429_v16 }
0x13de   :  { %v2432_v37 = vsub.f32 %v2412_v6, %v2428_v52 }
0x13df   :  { %v2437_v38 = vmul.f32 %v2433_v55, %v2433_v55 }
0x13e0   :  { %v2436_v10 = vmul.f32 %v2432_v37, %v2432_v37 }
0x13e1   :  { %v2447_v13 = vsel %vm180_vm1, %v2437_v38, 0.0 }
0x13e2   :  { %2448 = vadd.xlane.f32.xlu1 %v2447_v13  ;;  %v2444_v40 = vsel %vm180_vm1, %v2436_v10, 0.0 }
0x13e3   :  { %2445 = vadd.xlane.f32.xlu0 %v2444_v40 }
0x146f   :  { %v2449_v43 = vpop.xlane.xlu1 %2448 }
0x1470   :  { %v2453_v44 = vmul.f32 0.03125, %v2449_v43  ;;  %v2446_v45 = vpop.xlane.xlu0 %2445 }
0x1471   :  { %v2452_v24 = vmul.f32 0.03125, %v2446_v45 }
0x1472   :  { %v2457_v17 = vadd.f32 1e-05, %v2453_v44 }
0x1473   :  { %v2456_v47 = vadd.f32 1e-05, %v2452_v24 }
0x1474   :  { %6497 = vrsqrt.f32 %v2457_v17 }
0x1475   :  { %6499 = vrsqrt.f32 %v2456_v47 }
0x147e   :  { %v6498_v48 = vpop.eup %6497 }
0x147f   :  { %v6500_v2 = vpop.eup %6499  ;;  %v2465_v33 = vmul.f32 %v6498_v48, %v2433_v55 }
0x1480   :  { %v2464_v63 = vmul.f32 %v6500_v2, %v2432_v37 }
0x1481   :  { %v2474_v0 = vmul.f32 %v4849_v34, %v2465_v33 }
0x1482   :  { %v2473_v41 = vmul.f32 %v4849_v34, %v2464_v63 }
0x1483   :  { %v7130_v59 = vadd.f32 %v4850_v1, %v2474_v0 }
0x1484   :  { %v7128_v53 = vadd.f32 %v4850_v1, %v2473_v41 }
0x1486   :  { %5575 = vmatprep.mubr.msk.f32.mxu0 %vm180_vm1, %v7128_v53 }
0x1487   :  { %5576 = vmatmul.mubr.msk.f32.gmra.mrb[42].mxu0 %vm180_vm1, %v7130_v59 }
0x148c   :  { %v5574_v61 = vpop.f32.mrb[40].mxu0 }
0x148d   :  { %v2577_v4 = vadd.f32 %v5574_v61, %v4851_v36  ;;  %v2571_v51 = vpop.f32.mrb[41].mxu0 }
0x148e   :  { %v2572_v5 = vadd.f32 %v4851_v36, %v2571_v51 }
0x148f   :  { %v2591_v6 = vadd.f32 %v6688_v56, %v2577_v4 }
0x1490   :  { %v6330_v11 = vpack.i.bf16 %v2577_v4, %v2572_v5  ;;  %v2590_v29 = vadd.f32 %v2572_v5, %v6692_v58 }
0x1492   :  { %5582 = vmatprep.mubr.msk.f32.mxu0 %vm180_vm1, %v2590_v29  ;;  %v6325_v54 = vpack.i.bf16 %v2591_v6, %v2590_v29 }
0x1494   :  { %6326 = vrot.lane.b32.xlu0 %v6325_v54, %s6588_s0 }
0x1506   :  { %v6327_v7 = vpop.permute.xlu0 %6326 }
0x1507   :  { %v6329_v19 = vunpack.i.h.bf16 %v6327_v7  ;;  %v6328_v14 = vunpack.i.l.bf16 %v6327_v7 }
0x1509   :  { %v6048_v49 = vpack.c.bf16 %v6329_v19, %v6328_v14 }
0x150b   :  { %6050 = vmatprep.subr.msk.bf16.mxu0 %vm6722_vm2, %v6048_v49 }
0x150c   :  { %6053 = vmatpush3.bf16.xpose.msk.msra.mxu0 %vm6722_vm2, %v6048_v49 }
0x1513   :  { %5583 = vmatmul.mubr.msk.f32.vlgmr.msra.gmra.mrb[44].mxu0 %vm180_vm1, %v2591_v6 }
0x155a   :  { %v5577_v12 = vpop.f32.mrb[42].mxu0 }
0x155b   :  { %v7145_v21 = vadd.f32 %v5577_v12, %v4851_v36  ;;  %v2581_v34 = vpop.f32.mrb[43].mxu0 }
0x155c   :  { %v7147_v26 = vadd.f32 %v4851_v36, %v2581_v34 }
0x155d   :  { %v2593_v22 = vadd.f32 %v6696_v60, %v7145_v21 }
0x155e   :  { %v6340_v15 = vpack.i.bf16 %v7145_v21, %v7147_v26  ;;  %v2592_v30 = vadd.f32 %v7147_v26, %v6700_v62 }
0x1560   :  { %5596 = vmatprep.mubr.msk.f32.mxu1 %vm180_vm1, %v2592_v30  ;;  %v6335_v1 = vpack.i.bf16 %v2593_v22, %v2592_v30 }
0x1562   :  { %6336 = vrot.lane.b32.xlu0 %v6335_v1, %s6588_s0 }
0x15d4   :  { %v6337_v25 = vpop.permute.xlu0 %6336 }
0x15d5   :  { %v6339_v32 = vunpack.i.h.bf16 %v6337_v25  ;;  %v6338_v16 = vunpack.i.l.bf16 %v6337_v25 }
0x15d7   :  { %v6058_v35 = vpack.c.bf16 %v6339_v32, %v6338_v16 }
0x15d9   :  { %6060 = vmatprep.subr.msk.bf16.mxu1 %vm6722_vm2, %v6058_v35 }
0x15da   :  { %6063 = vmatpush3.bf16.xpose.msk.msra.mxu1 %vm6722_vm2, %v6058_v35 }
0x15e1   :  { %5597 = vmatmul.mubr.msk.f32.vlgmr.msra.gmra.mrb[36].mxu1 %vm180_vm1, %v2593_v22 }
0x15e6   :  { %v5584_v52 = vpop.f32.mrb[44].mxu0 }
0x15e7   :  { %v2674_v55 = vpop.f32.mrb[45].mxu0  ;;  %v2680_v38 = vadd.f32 %v5584_v52, %v6731_v23  ;;  %v2994_v52 = vld [vmem:[#allocation2 + $0x1c0] sm:$0xff] }
0x15e8   :  { %v2675_v37 = vadd.f32 %v2674_v55, %v6731_v23  ;;  %v2995_v55 = vld [vmem:[#allocation2 + $0x1c8] sm:$0xff] }
0x15e9   :  { %v2686_v13 = vsel %vm901_vm4, %v2680_v38, -inf }
0x15ea   :  { %v2683_v10 = vsel %vm901_vm4, %v2675_v37, -inf }
0x15eb   :  { %2684 = vmax.xlane.f32.xlu1 %v2683_v10  ;;  %v2997_v10 = vld [vmem:[#allocation2 + $0x1d8] sm:$0xff] }
0x15ef   :  { %2687 = vmax.xlane.f32.xlu1 %v2686_v13 }
0x1678   :  { %v2685_v40 = vpop.xlane.xlu1 %2684 }
0x1679   :  { %v2689_v43 = vsub.f32 %v2675_v37, %v2685_v40  ;;  %v6068_v37 = vpack.c.bf16 %v2995_v55, %v2994_v52 }
0x167b   :  { %v2691_v24 = vmul.f32 1.442695, %v2689_v43  ;;  %6069 = vmatprep.subr.bf16.mxu1 %v6068_v37 }
0x167c   :  { %v2688_v44 = vpop.xlane.xlu1 %2687  ;;  %6071 = vmatpush3.bf16.msra.mxu1 %v6068_v37 }
0x167d   :  { %v2690_v45 = vsub.f32 %v2680_v38, %v2688_v44  ;;  %v2996_v38 = vld [vmem:[#allocation2 + $0x1d0] sm:$0xff] }
0x167e   :  { %v6072_v13 = vpack.c.bf16 %v2997_v10, %v2996_v38 }
0x167f   :  { %v2693_v17 = vmul.f32 1.442695, %v2690_v45 }
0x1680   :  { %6073 = vmatprep.subr.bf16.mxu1 %v6072_v13 }
0x1681   :  { %6501 = vpow2.f32 %v2693_v17  ;;  %6075 = vmatpush3.bf16.msra.mxu1 %v6072_v13 }
0x1682   :  { %6503 = vpow2.f32 %v2691_v24 }
0x168b   :  { %v6502_v47 = vpop.eup %6501 }
0x168c   :  { %v2698_v48 = vsel %vm901_vm4, %v6502_v47, 0.0  ;;  %v6504_v2 = vpop.eup %6503 }
0x168d   :  { %2699 = vadd.xlane.f32.xlu1 %v2698_v48  ;;  %v2695_v33 = vsel %vm901_vm4, %v6504_v2, 0.0 }
0x1691   :  { %2696 = vadd.xlane.f32.xlu1 %v2695_v33 }
0x16a2   :  { %6331 = vrot.lane.b32.xlu1 %v6330_v11, %s6590_s18 }
0x16b4   :  { %v5598_v63 = vpop.f32.mrb[36].mxu1 }
0x16b5   :  { %v2874_v0 = vpop.f32.mrb[37].mxu1  ;;  %v2880_v61 = vadd.f32 %v5598_v63, %v6731_v23 }
0x16b6   :  { %v2875_v41 = vadd.f32 %v2874_v0, %v6731_v23 }
0x16b7   :  { %v2886_v4 = vsel %vm901_vm4, %v2880_v61, -inf }
0x16b8   :  { %v2883_v36 = vsel %vm901_vm4, %v2875_v41, -inf }
0x16b9   :  { %2884 = vmax.xlane.f32.xlu0 %v2883_v36 }
0x16c6   :  { %2887 = vmax.xlane.f32.xlu1 %v2886_v4 }
0x171a   :  { %v2700_v51 = vpop.xlane.xlu1 %2699 }
0x171b   :  { %6505 = vrcp.f32 %v2700_v51 }
0x171e   :  { %v2697_v5 = vpop.xlane.xlu1 %2696 }
0x171f   :  { %6507 = vrcp.f32 %v2697_v5 }
0x1722   :  { %v6332_v6 = vpop.permute.xlu1 %6331 }
0x1723   :  { %v6334_v29 = vunpack.i.h.bf16 %v6332_v6  ;;  %v6333_v54 = vunpack.i.l.bf16 %v6332_v6 }
0x1725   :  { %v6054_v11 = vpack.c.bf16 %v6334_v29, %v6333_v54  ;;  %v6506_v7 = vpop.eup %6505 }
0x1726   :  { %v2704_v49 = vmul.f32 %v6506_v7, %v6502_v47 }
0x1727   :  { %6055 = vmatprep.subr.bf16.mxu0 %v6054_v11 }
0x1728   :  { %6057 = vmatpush3.bf16.msra.mxu0 %v6054_v11 }
0x1729   :  { %v6508_v19 = vpop.eup %6507 }
0x172a   :  { %v2702_v14 = vmul.f32 %v6508_v19, %v6504_v2 }
0x172c   :  { %5589 = vmatprep.mubr.msk.f32.mxu0 %vm901_vm4, %v2702_v14 }
0x172d   :  { %5590 = vmatmul.mubr.msk.f32.vlgmr.msra.gmra.mrb[46].mxu0 %vm901_vm4, %v2704_v49 }
0x1746   :  { %v2885_v23 = vpop.xlane.xlu0 %2884 }
0x1747   :  { %v2889_v12 = vsub.f32 %v2875_v41, %v2885_v23  ;;  %v4868_v41 = vld [vmem:[#allocation2 + $0x1e0] ss:$0 sm:$0xff] }
0x1749   :  { %v2891_v30 = vmul.f32 1.442695, %v2889_v12 }
0x1753   :  { %v2888_v34 = vpop.xlane.xlu1 %2887 }
0x1754   :  { %v2890_v22 = vsub.f32 %v2880_v61, %v2888_v34 }
0x1756   :  { %v2893_v1 = vmul.f32 1.442695, %v2890_v22 }
0x1758   :  { %6509 = vpow2.f32 %v2893_v1 }
0x1759   :  { %6511 = vpow2.f32 %v2891_v30 }
0x1762   :  { %v6510_v25 = vpop.eup %6509 }
0x1763   :  { %v2898_v32 = vsel %vm901_vm4, %v6510_v25, 0.0  ;;  %v6512_v16 = vpop.eup %6511 }
0x1764   :  { %2899 = vadd.xlane.f32.xlu0 %v2898_v32  ;;  %v2895_v35 = vsel %vm901_vm4, %v6512_v16, 0.0 }
0x1768   :  { %2896 = vadd.xlane.f32.xlu0 %v2895_v35  ;;  %v3177_v35 = vld [vmem:[#allocation2 + $0x210] sm:$0xff] }
0x177e   :  { %6341 = vrot.lane.b32.xlu0 %v6340_v15, %s6590_s18 }
0x1782   :  { %6346 = vrot.lane.b32.xlu0 %v6924_v8, %s6590_s18 }
0x1786   :  { %6356 = vrot.lane.b32.xlu0 %v6930_v42, %s6590_s18 }
0x178a   :  { %6361 = vrot.lane.b32.xlu0 %v6937_v46, %s6590_s18 }
0x178e   :  { %6366 = vrot.lane.b32.xlu0 %v6940_v50, %s6590_s18 }
0x1792   :  { %3284 = vrot.lane.b32.xlu0 %v6692_v58, %s6590_s18 }
0x17f1   :  { %v2900_v40 = vpop.xlane.xlu0 %2899 }
0x17f2   :  { %6513 = vrcp.f32 %v2900_v40 }
0x17f5   :  { %v2897_v43 = vpop.xlane.xlu0 %2896 }
0x17f6   :  { %6515 = vrcp.f32 %v2897_v43 }
0x17f9   :  { %v6342_v21 = vpop.permute.xlu0 %6341 }
0x17fa   :  { %v6344_v26 = vunpack.i.h.bf16 %v6342_v21  ;;  %v6343_v15 = vunpack.i.l.bf16 %v6342_v21 }
0x17fc   :  { %v6064_v44 = vpack.c.bf16 %v6344_v26, %v6343_v15  ;;  %v6514_v47 = vpop.eup %6513 }
0x17fd   :  { %v6347_v45 = vpop.permute.xlu0 %6346  ;;  %v2904_v58 = vmul.f32 %v6514_v47, %v6510_v25  ;;  %v3175_v25 = vld [vmem:[#allocation2 + $0x200] sm:$0xff] }
0x17fe   :  { %v6349_v24 = vunpack.i.h.bf16 %v6347_v45  ;;  %v6348_v17 = vunpack.i.l.bf16 %v6347_v45  ;;  %6065 = vmatprep.subr.bf16.mxu0 %v6064_v44 }
0x17ff   :  { %6067 = vmatpush3.bf16.msra.mxu0 %v6064_v44 }
0x1800   :  { %v6516_v48 = vpop.eup %6515  ;;  %v6084_v2 = vpack.c.bf16 %v6349_v24, %v6348_v17  ;;  %v5591_v33 = vpop.f32.mrb[46].mxu0 }
0x1801   :  { %v2785_v63 = vpop.f32.mrb[47].mxu0  ;;  %v2902_v0 = vmul.f32 %v6516_v48, %v6512_v16  ;;  %v3176_v16 = vld [vmem:[#allocation2 + $0x208] sm:$0xff]  ;;  %v6357_v45 = vpop.permute.xlu0 %6356 }
0x1802   :  { %5614 = vmatprep.mubr.msk.f32.mxu1 %vm180_vm1, %v2785_v63  ;;  %6086 = vmatprep.subr.msk.bf16.mxu1 %vm6722_vm2, %v6084_v2  ;;  %v6080_v52 = vpack.c.bf16 %v3177_v35, %v3176_v16  ;;  %v6359_v47 = vunpack.i.h.bf16 %v6357_v45 }
0x1803   :  { %5603 = vmatprep.mubr.msk.f32.mxu0 %vm901_vm4, %v2902_v0  ;;  %5615 = vmatmul.mubr.msk.f32.vlgmr.msra.gmra.mrb[38].mxu1 %vm180_vm1, %v5591_v33 }
0x1804   :  { %6089 = vmatpush3.bf16.xpose.msk.msra.mxu1 %vm6722_vm2, %v6084_v2  ;;  %5604 = vmatmul.mubr.msk.f32.vlgmr.msra.gmra.mrb[48].mxu0 %vm901_vm4, %v2904_v58  ;;  %v6358_v2 = vunpack.i.l.bf16 %v6357_v45 }
0x1805   :  { %v6362_v0 = vpop.permute.xlu0 %6361 }
0x1806   :  { %v6096_v63 = vpack.c.bf16 %v6359_v47, %v6358_v2 }
0x18d6   :  { %v5616_v36 = vpop.f32.mrb[38].mxu1 }
0x18d7   :  { %v5605_v61 = vpop.f32.mrb[48].mxu0  ;;  %v3081_v4 = vpop.f32.mrb[39].mxu1  ;;  %v3087_v51 = vadd.f32 %v5616_v36, %v4868_v41 }
0x18d8   :  { %v3082_v5 = vadd.f32 %v4868_v41, %v3081_v4  ;;  %v2985_v6 = vpop.f32.mrb[49].mxu0  ;;  %v6363_v4 = vunpack.i.l.bf16 %v6362_v0 }
0x18d9   :  { %5617 = vmatprep.mubr.msk.f32.mxu1 %vm180_vm1, %v2985_v6  ;;  %v3101_v11 = vadd.f32 %v3087_v51, %v7120_v31  ;;  %v3174_v31 = vld [vmem:[#allocation2 + $0x1f8] sm:$0xff]  ;;  %v4874_v51 = vld [vmem:[#allocation2 + $0x1f0] ss:$0 sm:$0xff] }
0x18da   :  { %5618 = vmatmul.mubr.msk.f32.gmra.mrb[40].mxu1 %vm180_vm1, %v5605_v61  ;;  %v3100_v29 = vadd.f32 %v3082_v5, %v7118_v28  ;;  %v6076_v32 = vpack.c.bf16 %v3175_v25, %v3174_v31  ;;  %v6364_v61 = vunpack.i.h.bf16 %v6362_v0 }
0x18db   :  { %v3107_v7 = vsel %vm180_vm1, %v3101_v11, 0.0 }
0x18dc   :  { %v3104_v54 = vsel %vm180_vm1, %v3100_v29, 0.0  ;;  %6077 = vmatprep.subr.bf16.mxu0 %v6076_v32 }
0x18dd   :  { %3105 = vadd.xlane.f32.xlu1 %v3104_v54  ;;  %6079 = vmatpush3.bf16.msra.mxu0 %v6076_v32 }
0x18de   :  { %6081 = vmatprep.subr.bf16.mxu0 %v6080_v52 }
0x18e1   :  { %3108 = vadd.xlane.f32.xlu1 %v3107_v7  ;;  %6083 = vmatpush3.bf16.msra.mxu0 %v6080_v52  ;;  %v6367_v7 = vpop.permute.xlu0 %6366 }
0x196a   :  { %v3106_v19 = vpop.xlane.xlu1 %3105 }
0x196b   :  { %v3116_v14 = vmul.f32 0.03125, %v3106_v19 }
0x196d   :  { %v3120_v49 = vsub.f32 %v3100_v29, %v3116_v14 }
0x196e   :  { %v3109_v23 = vpop.xlane.xlu1 %3108 }
0x196f   :  { %v3117_v12 = vmul.f32 0.03125, %v3109_v23  ;;  %v3124_v34 = vmul.f32 %v3120_v49, %v3120_v49  ;;  %v6368_v23 = vunpack.i.l.bf16 %v6367_v7 }
0x1971   :  { %v3121_v22 = vsub.f32 %v3101_v11, %v3117_v12  ;;  %v3128_v30 = vsel %vm180_vm1, %v3124_v34, 0.0  ;;  %v6102_v11 = vpack.c.bf16 %v6364_v61, %v6363_v4 }
0x1972   :  { %3129 = vadd.xlane.f32.xlu1 %v3128_v30 }
0x1973   :  { %v3125_v1 = vmul.f32 %v3121_v22, %v3121_v22 }
0x1975   :  { %v3131_v28 = vsel %vm180_vm1, %v3125_v1, 0.0 }
0x1976   :  { %3132 = vadd.xlane.f32.xlu1 %v3131_v28 }
0x1987   :  { %6351 = vrot.lane.b32.xlu1 %v6928_v39, %s6590_s18 }
0x198b   :  { %3286 = vrot.lane.b32.xlu1 %v6688_v56, %s6590_s18 }
0x19ad   :  { %v5619_v55 = vpop.f32.mrb[40].mxu1 }
0x19ae   :  { %v3097_v37 = vadd.f32 %v5619_v55, %v4868_v41  ;;  %v3091_v38 = vpop.f32.mrb[41].mxu1 }
0x19af   :  { %v3092_v10 = vadd.f32 %v4868_v41, %v3091_v38  ;;  %v4873_v41 = vld [vmem:[#allocation2 + $0x1e8] ss:$0 sm:$0xff] }
0x19b0   :  { %v3103_v13 = vadd.f32 %v3097_v37, %v7130_v59 }
0x19b1   :  { %v3102_v40 = vadd.f32 %v3092_v10, %v7128_v53 }
0x19b2   :  { %v3113_v56 = vsel %vm180_vm1, %v3103_v13, 0.0 }
0x19b3   :  { %3114 = vadd.xlane.f32.xlu1 %v3113_v56  ;;  %v3110_v43 = vsel %vm180_vm1, %v3102_v40, 0.0 }
0x19b4   :  { %3111 = vadd.xlane.f32.xlu0 %v3110_v43 }
0x19ff   :  { %v3130_v21 = vpop.xlane.xlu1 %3129 }
0x1a00   :  { %v3140_v26 = vmul.f32 0.03125, %v3130_v21 }
0x1a02   :  { %v3144_v15 = vadd.f32 1e-05, %v3140_v26 }
0x1a03   :  { %v3133_v44 = vpop.xlane.xlu1 %3132 }
0x1a04   :  { %6517 = vrsqrt.f32 %v3144_v15  ;;  %v3141_v24 = vmul.f32 0.03125, %v3133_v44  ;;  %v7241_v44 = vld [vmem:[#allocation2 + $0x218] ss:$0 sm:$0xff] }
0x1a06   :  { %v3145_v17 = vadd.f32 1e-05, %v3141_v24 }
0x1a07   :  { %v6352_v48 = vpop.permute.xlu1 %6351 }
0x1a08   :  { %6519 = vrsqrt.f32 %v3145_v17  ;;  %v6354_v59 = vunpack.i.h.bf16 %v6352_v48  ;;  %v6353_v53 = vunpack.i.l.bf16 %v6352_v48 }
0x1a0a   :  { %v6090_v33 = vpack.c.bf16 %v6354_v59, %v6353_v53 }
0x1a0b   :  { %v3287_v34 = vpop.permute.xlu1 %3286 }
0x1a0c   :  { %6092 = vmatprep.subr.msk.bf16.mxu1 %vm6722_vm2, %v6090_v33 }
0x1a0d   :  { %6095 = vmatpush3.bf16.xpose.msk.msra.mxu1 %vm6722_vm2, %v6090_v33 }
0x1a0e   :  { %v6518_v58 = vpop.eup %6517  ;;  %6098 = vmatprep.subr.msk.bf16.mxu1 %vm6722_vm2, %v6096_v63 }
0x1a0f   :  { %v3152_v36 = vmul.f32 %v6518_v58, %v3120_v49  ;;  %v6369_v49 = vunpack.i.h.bf16 %v6367_v7 }
0x1a11   :  { %v3161_v5 = vmul.f32 %v4873_v41, %v3152_v36  ;;  %v6108_v12 = vpack.c.bf16 %v6369_v49, %v6368_v23 }
0x1a12   :  { %v6520_v6 = vpop.eup %6519 }
0x1a13   :  { %v3153_v29 = vmul.f32 %v6520_v6, %v3121_v22  ;;  %v7221_v54 = vadd.f32 %v4874_v51, %v3161_v5  ;;  %v3285_v22 = vpop.permute.xlu0 %3284 }
0x1a15   :  { %5628 = vmatprep.mubr.msk.f32.mxu0 %vm180_vm1, %v7221_v54  ;;  %6101 = vmatpush3.bf16.xpose.msk.msra.mxu1 %vm6722_vm2, %v6096_v63  ;;  %v3162_v19 = vmul.f32 %v4873_v41, %v3153_v29 }
0x1a16   :  { %6104 = vmatprep.subr.msk.bf16.mxu1 %vm6722_vm2, %v6102_v11 }
0x1a17   :  { %v7229_v14 = vadd.f32 %v4874_v51, %v3162_v19 }
0x1a19   :  { %5629 = vmatmul.mubr.msk.f32.vlgmr.msra.gmra.mrb[50].mxu0 %vm180_vm1, %v7229_v14 }
0x1a1d   :  { %6107 = vmatpush3.bf16.xpose.msk.msra.mxu1 %vm6722_vm2, %v6102_v11 }
0x1a1e   :  { %6110 = vmatprep.subr.msk.bf16.mxu1 %vm6722_vm2, %v6108_v12 }
0x1a25   :  { %6113 = vmatpush3.bf16.xpose.msk.msra.mxu1 %vm6722_vm2, %v6108_v12 }
0x1a40   :  { %v3115_v30 = vpop.xlane.xlu1 %3114 }
0x1a41   :  { %v3119_v1 = vmul.f32 0.03125, %v3115_v30  ;;  %v3112_v28 = vpop.xlane.xlu0 %3111 }
0x1a42   :  { %v3118_v31 = vmul.f32 0.03125, %v3112_v28 }
0x1a43   :  { %v3123_v25 = vsub.f32 %v3103_v13, %v3119_v1 }
0x1a44   :  { %v3122_v32 = vsub.f32 %v3102_v40, %v3118_v31 }
0x1a45   :  { %v3127_v52 = vmul.f32 %v3123_v25, %v3123_v25 }
0x1a46   :  { %v3126_v16 = vmul.f32 %v3122_v32, %v3122_v32 }
0x1a47   :  { %v3137_v55 = vsel %vm180_vm1, %v3127_v52, 0.0 }
0x1a48   :  { %v3134_v35 = vsel %vm180_vm1, %v3126_v16, 0.0 }
0x1a49   :  { %3135 = vadd.xlane.f32.xlu0 %v3134_v35 }
0x1a4d   :  { %3138 = vadd.xlane.f32.xlu0 %v3137_v55 }
0x1ad6   :  { %v3136_v37 = vpop.xlane.xlu0 %3135 }
0x1ad7   :  { %v3142_v38 = vmul.f32 0.03125, %v3136_v37 }
0x1ad9   :  { %v3146_v10 = vadd.f32 1e-05, %v3142_v38 }
0x1ada   :  { %v3139_v56 = vpop.xlane.xlu0 %3138 }
0x1adb   :  { %6521 = vrsqrt.f32 %v3146_v10  ;;  %v3143_v43 = vmul.f32 0.03125, %v3139_v56 }
0x1add   :  { %v3147_v21 = vadd.f32 1e-05, %v3143_v43 }
0x1adf   :  { %6523 = vrsqrt.f32 %v3147_v21 }
0x1ae5   :  { %v6522_v26 = vpop.eup %6521 }
0x1ae6   :  { %v3154_v15 = vmul.f32 %v6522_v26, %v3122_v32 }
0x1ae8   :  { %v3163_v13 = vmul.f32 %v4873_v41, %v3154_v15 }
0x1ae9   :  { %v6524_v40 = vpop.eup %6523 }
0x1aea   :  { %v7243_v45 = vadd.f32 %v4874_v51, %v3163_v13  ;;  %v3155_v24 = vmul.f32 %v6524_v40, %v3123_v25 }
0x1aec   :  { %v5630_v17 = vpop.f32.mrb[50].mxu0  ;;  %5631 = vmatprep.mubr.msk.f32.mxu0 %vm180_vm1, %v7243_v45  ;;  %v3164_v47 = vmul.f32 %v4873_v41, %v3155_v24 }
0x1aed   :  { %v3267_v48 = vadd.f32 %v5630_v17, %v7241_v44  ;;  %v3261_v2 = vpop.f32.mrb[51].mxu0 }
0x1aee   :  { %v3262_v59 = vadd.f32 %v7241_v44, %v3261_v2  ;;  %v7249_v53 = vadd.f32 %v4874_v51, %v3164_v47 }
0x1aef   :  { %v3297_v63 = vadd.f32 %v3287_v34, %v3267_v48 }
0x1af0   :  { %v3296_v33 = vadd.f32 %v3285_v22, %v3262_v59  ;;  %5632 = vmatmul.mubr.msk.f32.gmra.mrb[52].mxu0 %vm180_vm1, %v7249_v53 }
0x1af2   :  { %5654 = vmatprep.mubr.msk.f32.mxu1 %vm180_vm1, %v3296_v33 }
0x1af3   :  { %5655 = vmatmul.mubr.msk.f32.vlgmr.msra.gmra.mrb[42].mxu1 %vm180_vm1, %v3297_v63 }
0x1bc3   :  { %v7255_v0 = vpop.f32.mrb[52].mxu0 }
0x1bc4   :  { %v7257_v58 = vpop.f32.mrb[53].mxu0 }
0x1bc6   :  { %v5656_v41 = vpop.f32.mrb[42].mxu1 }
0x1bc7   :  { %v3412_v36 = vpop.f32.mrb[43].mxu1  ;;  %v3424_v61 = vsel %vm1631_vm5, %v5656_v41, -inf }
0x1bc8   :  { %3425 = vmax.xlane.f32.xlu0 %v3424_v61  ;;  %v3421_v4 = vsel %vm1631_vm5, %v3412_v36, -inf }
0x1bc9   :  { %3422 = vmax.xlane.f32.xlu1 %v3421_v4 }
0x1bda   :  { %6376 = vrot.lane.b32.xlu1 %v6928_v39, %s6591_s2 }
0x1bde   :  { %6386 = vrot.lane.b32.xlu1 %v6937_v46, %s6591_s2  ;;  %6371 = vrot.lane.b32.xlu0 %v6924_v8, %s6591_s2 }
0x1be2   :  { %6381 = vrot.lane.b32.xlu0 %v6930_v42, %s6591_s2 }
0x1be6   :  { %6391 = vrot.lane.b32.xlu0 %v6940_v50, %s6591_s2 }
0x1bea   :  { %6401 = vrot.lane.b32.xlu0 %v6956_v9, %s6590_s18 }
0x1bee   :  { %6411 = vrot.lane.b32.xlu0 %v6968_v27, %s6590_s18 }
0x1bf2   :  { %3288 = vrot.lane.b32.xlu0 %v6700_v62, %s6590_s18 }
0x1c55   :  { %v3426_v39 = vpop.xlane.xlu0 %3425 }
0x1c56   :  { %v3428_v46 = vsub.f32 %v5656_v41, %v3426_v39  ;;  %v3423_v51 = vpop.xlane.xlu1 %3422 }
0x1c57   :  { %v3427_v5 = vsub.f32 %v3412_v36, %v3423_v51 }
0x1c58   :  { %v3431_v8 = vmul.f32 1.442695, %v3428_v46 }
0x1c59   :  { %v3429_v6 = vmul.f32 1.442695, %v3427_v5  ;;  %v6372_v29 = vpop.permute.xlu0 %6371 }
0x1c5a   :  { %6525 = vpow2.f32 %v3431_v8  ;;  %v6374_v42 = vunpack.i.h.bf16 %v6372_v29  ;;  %v6373_v11 = vunpack.i.l.bf16 %v6372_v29  ;;  %v6377_v50 = vpop.permute.xlu1 %6376 }
0x1c5b   :  { %v6379_v7 = vunpack.i.h.bf16 %v6377_v50  ;;  %v6378_v19 = vunpack.i.l.bf16 %v6377_v50  ;;  %6527 = vpow2.f32 %v3429_v6 }
0x1c5c   :  { %v6114_v49 = vpack.c.bf16 %v6374_v42, %v6373_v11  ;;  %v3277_v11 = vadd.f32 %v7255_v0, %v7241_v44 }
0x1c5d   :  { %v6118_v23 = vpack.c.bf16 %v6379_v7, %v6378_v19  ;;  %v6382_v12 = vpop.permute.xlu0 %6381 }
0x1c5e   :  { %v6384_v34 = vunpack.i.h.bf16 %v6382_v12  ;;  %v6383_v22 = vunpack.i.l.bf16 %v6382_v12  ;;  %6115 = vmatprep.subr.bf16.mxu0 %v6114_v49  ;;  %v6387_v62 = vpop.permute.xlu1 %6386 }
0x1c5f   :  { %6117 = vmatpush3.bf16.msra.mxu0 %v6114_v49  ;;  %v6389_v1 = vunpack.i.h.bf16 %v6387_v62  ;;  %v6388_v28 = vunpack.i.l.bf16 %v6387_v62 }
0x1c60   :  { %6119 = vmatprep.subr.bf16.mxu0 %v6118_v23  ;;  %v6122_v30 = vpack.c.bf16 %v6384_v34, %v6383_v22 }
0x1c61   :  { %v6392_v31 = vpop.permute.xlu0 %6391  ;;  %v6126_v35 = vpack.c.bf16 %v6389_v1, %v6388_v28 }
0x1c62   :  { %v6394_v52 = vunpack.i.h.bf16 %v6392_v31  ;;  %v6393_v55 = vunpack.i.l.bf16 %v6392_v31 }
0x1c63   :  { %6121 = vmatpush3.bf16.msra.mxu0 %v6118_v23 }
0x1c64   :  { %v6526_v25 = vpop.eup %6525  ;;  %6123 = vmatprep.subr.bf16.mxu0 %v6122_v30  ;;  %v6130_v38 = vpack.c.bf16 %v6394_v52, %v6393_v55 }
0x1c65   :  { %v3436_v32 = vsel %vm1631_vm5, %v6526_v25, 0.0  ;;  %v6528_v16 = vpop.eup %6527  ;;  %v6402_v56 = vpop.permute.xlu0 %6401 }
0x1c66   :  { %3437 = vadd.xlane.f32.xlu1 %v3436_v32  ;;  %v3433_v37 = vsel %vm1631_vm5, %v6528_v16, 0.0  ;;  %v6404_v47 = vunpack.i.h.bf16 %v6402_v56  ;;  %v6403_v48 = vunpack.i.l.bf16 %v6402_v56 }
0x1c67   :  { %6125 = vmatpush3.bf16.msra.mxu0 %v6122_v30 }
0x1c68   :  { %6127 = vmatprep.subr.bf16.mxu0 %v6126_v35  ;;  %v6140_v41 = vpack.c.bf16 %v6404_v47, %v6403_v48 }
0x1c69   :  { %v6412_v26 = vpop.permute.xlu0 %6411 }
0x1c6a   :  { %3434 = vadd.xlane.f32.xlu1 %v3433_v37  ;;  %v6414_v39 = vunpack.i.h.bf16 %v6412_v26  ;;  %v6413_v46 = vunpack.i.l.bf16 %v6412_v26 }
0x1c6b   :  { %6129 = vmatpush3.bf16.msra.mxu0 %v6126_v35 }
0x1c6c   :  { %6131 = vmatprep.subr.bf16.mxu0 %v6130_v38  ;;  %v6152_v51 = vpack.c.bf16 %v6414_v39, %v6413_v46  ;;  %v4908_v39 = vld [vmem:[#allocation2 + $0x240] ss:$0 sm:$0xff] }
0x1c6d   :  { %v3289_v2 = vpop.permute.xlu0 %3288 }
0x1c6f   :  { %6133 = vmatpush3.bf16.msra.mxu0 %v6130_v38 }
0x1c7b   :  { %6396 = vrot.lane.b32.xlu1 %v6950_v3, %s6590_s18 }
0x1c7f   :  { %6406 = vrot.lane.b32.xlu1 %v6962_v20, %s6590_s18 }
0x1c83   :  { %6416 = vrot.lane.b32.xlu1 %v6974_v57, %s6590_s18 }
0x1c87   :  { %3290 = vrot.lane.b32.xlu1 %v6696_v60, %s6590_s18  ;;  %v3272_v60 = vadd.f32 %v7241_v44, %v7257_v58 }
0x1c89   :  { %v3298_v63 = vadd.f32 %v3289_v2, %v3272_v60 }
0x1cf3   :  { %v3438_v10 = vpop.xlane.xlu1 %3437 }
0x1cf4   :  { %6529 = vrcp.f32 %v3438_v10 }
0x1cf7   :  { %v3435_v43 = vpop.xlane.xlu1 %3434 }
0x1cf8   :  { %6531 = vrcp.f32 %v3435_v43 }
0x1cfb   :  { %v6397_v21 = vpop.permute.xlu1 %6396 }
0x1cfc   :  { %v6399_v15 = vunpack.i.h.bf16 %v6397_v21  ;;  %v6398_v13 = vunpack.i.l.bf16 %v6397_v21 }
0x1cfe   :  { %v6134_v40 = vpack.c.bf16 %v6399_v15, %v6398_v13  ;;  %v6530_v24 = vpop.eup %6529 }
0x1cff   :  { %v3442_v33 = vmul.f32 %v6530_v24, %v6526_v25  ;;  %v6407_v36 = vpop.permute.xlu1 %6406  ;;  %v3808_v24 = vld [vmem:[#allocation2 + $0x220] sm:$0xff] }
0x1d00   :  { %6136 = vmatprep.subr.msk.bf16.mxu0 %vm6722_vm2, %v6134_v40  ;;  %v6409_v61 = vunpack.i.h.bf16 %v6407_v36  ;;  %v6408_v4 = vunpack.i.l.bf16 %v6407_v36 }
0x1d02   :  { %v6532_v17 = vpop.eup %6531  ;;  %v6146_v58 = vpack.c.bf16 %v6409_v61, %v6408_v4 }
0x1d03   :  { %v3440_v59 = vmul.f32 %v6532_v17, %v6528_v16  ;;  %v6417_v5 = vpop.permute.xlu1 %6416  ;;  %v3809_v17 = vld [vmem:[#allocation2 + $0x228] sm:$0xff] }
0x1d04   :  { %v6419_v8 = vunpack.i.h.bf16 %v6417_v5  ;;  %v6418_v6 = vunpack.i.l.bf16 %v6417_v5  ;;  %v6184_v60 = vpack.c.bf16 %v3809_v17, %v3808_v24  ;;  %v4913_v17 = vld [vmem:[#allocation2 + $0x248] ss:$0 sm:$0xff] }
0x1d05   :  { %5677 = vmatprep.mubr.msk.f32.mxu0 %vm1631_vm5, %v3440_v59 }
0x1d06   :  { %5678 = vmatmul.mubr.msk.f32.vlgmr.msra.gmra.mrb[54].mxu0 %vm1631_vm5, %v3442_v33  ;;  %v6158_v29 = vpack.c.bf16 %v6419_v8, %v6418_v6  ;;  %v3810_v33 = vld [vmem:[#allocation2 + $0x230] sm:$0xff] }
0x1d07   :  { %6139 = vmatpush3.bf16.xpose.msk.msra.mxu0 %vm6722_vm2, %v6134_v40  ;;  %5700 = vmatprep.mubr.msk.f32.mxu0 %vm180_vm1, %v3298_v63  ;;  %v3291_v42 = vpop.permute.xlu1 %3290  ;;  %v3811_v63 = vld [vmem:[#allocation2 + $0x238] sm:$0xff] }
0x1d08   :  { %6142 = vmatprep.subr.msk.bf16.mxu0 %vm6722_vm2, %v6140_v41  ;;  %v3299_v50 = vadd.f32 %v3291_v42, %v3277_v11  ;;  %v6188_v61 = vpack.c.bf16 %v3811_v63, %v3810_v33 }
0x1d0f   :  { %6145 = vmatpush3.bf16.xpose.msk.msra.mxu0 %vm6722_vm2, %v6140_v41 }
0x1d10   :  { %6148 = vmatprep.subr.msk.bf16.mxu0 %vm6722_vm2, %v6146_v58 }
0x1d17   :  { %6151 = vmatpush3.bf16.xpose.msk.msra.mxu0 %vm6722_vm2, %v6146_v58 }
0x1d18   :  { %6154 = vmatprep.subr.msk.bf16.mxu0 %vm6722_vm2, %v6152_v51 }
0x1d1f   :  { %6157 = vmatpush3.bf16.xpose.msk.msra.mxu0 %vm6722_vm2, %v6152_v51 }
0x1d20   :  { %6160 = vmatprep.subr.msk.bf16.mxu0 %vm6722_vm2, %v6158_v29 }
0x1d27   :  { %6163 = vmatpush3.bf16.xpose.msk.msra.mxu0 %vm6722_vm2, %v6158_v29 }
0x1d2e   :  { %5701 = vmatmul.mubr.msk.f32.vlgmr.msra.gmra.mrb[56].mxu0 %vm180_vm1, %v3299_v50 }
0x1dd9   :  { %v7315_v7 = vpop.f32.mrb[54].mxu0 }
0x1dda   :  { %v7317_v19 = vpop.f32.mrb[55].mxu0 }
0x1e01   :  { %v5702_v49 = vpop.f32.mrb[56].mxu0 }
0x1e02   :  { %v3666_v23 = vpop.f32.mrb[57].mxu0  ;;  %v3678_v12 = vsel %vm1631_vm5, %v5702_v49, -inf }
0x1e03   :  { %3679 = vmax.xlane.f32.xlu1 %v3678_v12  ;;  %v3675_v34 = vsel %vm1631_vm5, %v3666_v23, -inf }
0x1e04   :  { %3676 = vmax.xlane.f32.xlu0 %v3675_v34 }
0x1e14   :  { %6421 = vrot.lane.b32.xlu1 %v6950_v3, %s6591_s2 }
0x1e18   :  { %6431 = vrot.lane.b32.xlu1 %v6962_v20, %s6591_s2 }
0x1e1a   :  { %6426 = vrot.lane.b32.xlu0 %v6956_v9, %s6591_s2 }
0x1e1c   :  { %6436 = vrot.lane.b32.xlu1 %v6968_v27, %s6591_s2 }
0x1e90   :  { %v3680_v18 = vpop.xlane.xlu1 %3679 }
0x1e91   :  { %v3682_v44 = vsub.f32 %v5702_v49, %v3680_v18  ;;  %v3677_v0 = vpop.xlane.xlu0 %3676 }
0x1e92   :  { %v3681_v22 = vsub.f32 %v3666_v23, %v3677_v0 }
0x1e93   :  { %v3685_v62 = vmul.f32 1.442695, %v3682_v44 }
0x1e94   :  { %v3683_v30 = vmul.f32 1.442695, %v3681_v22  ;;  %v6422_v1 = vpop.permute.xlu1 %6421 }
0x1e95   :  { %6533 = vpow2.f32 %v3685_v62  ;;  %v6424_v28 = vunpack.i.h.bf16 %v6422_v1  ;;  %v6423_v31 = vunpack.i.l.bf16 %v6422_v1  ;;  %v6427_v3 = vpop.permute.xlu0 %6426 }
0x1e96   :  { %v6429_v25 = vunpack.i.h.bf16 %v6427_v3  ;;  %v6428_v32 = vunpack.i.l.bf16 %v6427_v3  ;;  %6535 = vpow2.f32 %v3683_v30  ;;  %v3988_v3 = vld [vmem:[#allocation2 + $0x258] sm:$0xff] }
0x1e97   :  { %v6164_v20 = vpack.c.bf16 %v6424_v28, %v6423_v31 }
0x1e98   :  { %v6168_v16 = vpack.c.bf16 %v6429_v25, %v6428_v32  ;;  %v6432_v9 = vpop.permute.xlu1 %6431  ;;  %v3989_v25 = vld [vmem:[#allocation2 + $0x260] sm:$0xff] }
0x1e99   :  { %v6434_v35 = vunpack.i.h.bf16 %v6432_v9  ;;  %v6433_v52 = vunpack.i.l.bf16 %v6432_v9  ;;  %6165 = vmatprep.subr.bf16.mxu1 %v6164_v20  ;;  %v6192_v32 = vpack.c.bf16 %v3989_v25, %v3988_v3 }
0x1e9a   :  { %6167 = vmatpush3.bf16.msra.mxu1 %v6164_v20  ;;  %v3991_v20 = vld [vmem:[#allocation2 + $0x270] sm:$0xff] }
0x1e9b   :  { %6169 = vmatprep.subr.bf16.mxu1 %v6168_v16  ;;  %v6172_v55 = vpack.c.bf16 %v6434_v35, %v6433_v52  ;;  %6193 = vmatprep.subr.bf16.mxu0 %v6192_v32 }
0x1e9c   :  { %v6437_v27 = vpop.permute.xlu1 %6436  ;;  %6195 = vmatpush3.bf16.msra.mxu0 %v6192_v32 }
0x1e9d   :  { %v6439_v37 = vunpack.i.h.bf16 %v6437_v27  ;;  %v6438_v38 = vunpack.i.l.bf16 %v6437_v27 }
0x1e9e   :  { %6171 = vmatpush3.bf16.msra.mxu1 %v6168_v16 }
0x1e9f   :  { %v6534_v10 = vpop.eup %6533  ;;  %6173 = vmatprep.subr.bf16.mxu1 %v6172_v55  ;;  %v6176_v21 = vpack.c.bf16 %v6439_v37, %v6438_v38 }
0x1ea0   :  { %v3690_v56 = vsel %vm1631_vm5, %v6534_v10, 0.0  ;;  %v6536_v43 = vpop.eup %6535 }
0x1ea1   :  { %3691 = vadd.xlane.f32.xlu0 %v3690_v56  ;;  %v3687_v26 = vsel %vm1631_vm5, %v6536_v43, 0.0 }
0x1ea2   :  { %6175 = vmatpush3.bf16.msra.mxu1 %v6172_v55 }
0x1ea3   :  { %6177 = vmatprep.subr.bf16.mxu1 %v6176_v21 }
0x1ea5   :  { %3688 = vadd.xlane.f32.xlu0 %v3687_v26 }
0x1ea6   :  { %6179 = vmatpush3.bf16.msra.mxu1 %v6176_v21 }
0x1ebb   :  { %6441 = vrot.lane.b32.xlu0 %v6974_v57, %s6591_s2 }
0x1f2e   :  { %v3692_v15 = vpop.xlane.xlu0 %3691 }
0x1f2f   :  { %6537 = vrcp.f32 %v3692_v15 }
0x1f32   :  { %v3689_v13 = vpop.xlane.xlu0 %3688 }
0x1f33   :  { %6539 = vrcp.f32 %v3689_v13 }
0x1f36   :  { %v6442_v40 = vpop.permute.xlu0 %6441 }
0x1f37   :  { %v6444_v47 = vunpack.i.h.bf16 %v6442_v40  ;;  %v6443_v48 = vunpack.i.l.bf16 %v6442_v40 }
0x1f39   :  { %v6180_v2 = vpack.c.bf16 %v6444_v47, %v6443_v48  ;;  %v6538_v59 = vpop.eup %6537 }
0x1f3a   :  { %v3696_v57 = vmul.f32 %v6538_v59, %v6534_v10 }
0x1f3b   :  { %6181 = vmatprep.subr.bf16.mxu1 %v6180_v2 }
0x1f3c   :  { %6183 = vmatpush3.bf16.msra.mxu1 %v6180_v2 }
0x1f3d   :  { %v6540_v41 = vpop.eup %6539  ;;  %6185 = vmatprep.subr.bf16.mxu1 %v6184_v60 }
0x1f3e   :  { %v3694_v36 = vmul.f32 %v6540_v41, %v6536_v43 }
0x1f40   :  { %5723 = vmatprep.mubr.msk.f32.mxu1 %vm1631_vm5, %v3694_v36  ;;  %v4098_v36 = vld [vmem:[#allocation2 + $0x280] sm:$0xff] }
0x1f41   :  { %5724 = vmatmul.mubr.msk.f32.vlgmr.msra.gmra.mrb[44].mxu1 %vm1631_vm5, %v3696_v57  ;;  %v4099_v57 = vld [vmem:[#allocation2 + $0x288] sm:$0xff] }
0x1f42   :  { %6187 = vmatpush3.bf16.msra.mxu1 %v6184_v60  ;;  %5734 = vmatprep.mubr.msk.f32.mxu1 %vm180_vm1, %v7317_v19  ;;  %v4914_v60 = vld [vmem:[#allocation2 + $0x250] ss:$0 sm:$0xff] }
0x1f43   :  { %6189 = vmatprep.subr.bf16.mxu1 %v6188_v61 }
0x1f46   :  { %6191 = vmatpush3.bf16.msra.mxu1 %v6188_v61  ;;  %v4100_v61 = vld [vmem:[#allocation2 + $0x290] sm:$0xff] }
0x1f49   :  { %5735 = vmatmul.mubr.msk.f32.vlgmr.msra.gmra.mrb[46].mxu1 %vm180_vm1, %v7315_v7 }
0x2014   :  { %v5725_v4 = vpop.f32.mrb[44].mxu1 }
0x2015   :  { %v3799_v58 = vpop.f32.mrb[45].mxu1 }
0x2016   :  { %5737 = vmatprep.mubr.msk.f32.mxu1 %vm180_vm1, %v3799_v58  ;;  %v4101_v58 = vld [vmem:[#allocation2 + $0x298] sm:$0xff] }
0x2017   :  { %5738 = vmatmul.mubr.msk.f32.gmra.mrb[48].mxu1 %vm180_vm1, %v5725_v4  ;;  %v6200_v4 = vpack.c.bf16 %v4099_v57, %v4098_v36 }
0x2019   :  { %6201 = vmatprep.subr.bf16.mxu1 %v6200_v4 }
0x201a   :  { %6203 = vmatpush3.bf16.msra.mxu1 %v6200_v4  ;;  %v4283_v4 = vld [vmem:[#allocation2 + $0x328] sm:$0xff] }
0x201c   :  { %v5736_v46 = vpop.f32.mrb[46].mxu1 }
0x201d   :  { %v3901_v51 = vadd.f32 %v5736_v46, %v4908_v39  ;;  %v3895_v5 = vpop.f32.mrb[47].mxu1  ;;  %v4102_v46 = vld [vmem:[#allocation2 + $0x2a0] sm:$0xff] }
0x201e   :  { %v3896_v8 = vadd.f32 %v4908_v39, %v3895_v5 }
0x201f   :  { %v3915_v6 = vadd.f32 %v3901_v51, %v7229_v14  ;;  %v4103_v51 = vld [vmem:[#allocation2 + $0x2a8] sm:$0xff] }
0x2020   :  { %v3914_v29 = vadd.f32 %v3896_v8, %v7221_v54  ;;  %v6208_v5 = vpack.c.bf16 %v4103_v51, %v4102_v46  ;;  %v4104_v8 = vld [vmem:[#allocation2 + $0x2b0] sm:$0xff]  ;;  %v4285_v46 = vld [vmem:[#allocation2 + $0x338] sm:$0xff] }
0x2021   :  { %v3921_v42 = vsel %vm180_vm1, %v3915_v6, 0.0 }
0x2022   :  { %3922 = vadd.xlane.f32.xlu0 %v3921_v42  ;;  %v3918_v11 = vsel %vm180_vm1, %v3914_v29, 0.0 }
0x2023   :  { %3919 = vadd.xlane.f32.xlu1 %v3918_v11 }
0x20af   :  { %v3923_v50 = vpop.xlane.xlu0 %3922 }
0x20b0   :  { %v3920_v7 = vpop.xlane.xlu1 %3919  ;;  %v3931_v19 = vmul.f32 0.03125, %v3923_v50 }
0x20b1   :  { %v3930_v49 = vmul.f32 0.03125, %v3920_v7 }
0x20b2   :  { %v3935_v12 = vsub.f32 %v3915_v6, %v3931_v19  ;;  %v4105_v6 = vld [vmem:[#allocation2 + $0x2b8] sm:$0xff] }
0x20b3   :  { %v3934_v44 = vsub.f32 %v3914_v29, %v3930_v49  ;;  %v6212_v29 = vpack.c.bf16 %v4105_v6, %v4104_v8 }
0x20b4   :  { %v3939_v62 = vmul.f32 %v3935_v12, %v3935_v12 }
0x20b5   :  { %v3938_v1 = vmul.f32 %v3934_v44, %v3934_v44 }
0x20b6   :  { %v3945_v28 = vsel %vm180_vm1, %v3939_v62, 0.0 }
0x20b7   :  { %v3942_v31 = vsel %vm180_vm1, %v3938_v1, 0.0 }
0x20ea   :  { %v5739_v23 = vpop.f32.mrb[48].mxu1 }
0x20eb   :  { %v3911_v34 = vadd.f32 %v5739_v23, %v4908_v39  ;;  %v3905_v18 = vpop.f32.mrb[49].mxu1 }
0x20ec   :  { %v3906_v0 = vadd.f32 %v4908_v39, %v3905_v18  ;;  %v6204_v39 = vpack.c.bf16 %v4101_v58, %v4100_v61  ;;  %v4282_v61 = vld [vmem:[#allocation2 + $0x320] sm:$0xff] }
0x20ed   :  { %v3917_v14 = vadd.f32 %v3911_v34, %v7249_v53  ;;  %v3990_v53 = vld [vmem:[#allocation2 + $0x268] sm:$0xff]  ;;  %v6216_v58 = vpack.c.bf16 %v4283_v4, %v4282_v61  ;;  %v4502_v4 = vld [vmem:[#allocation2 + $0x370] sm:$0xff] }
0x20ee   :  { %v3916_v54 = vadd.f32 %v3906_v0, %v7243_v45  ;;  %v6196_v45 = vpack.c.bf16 %v3991_v20, %v3990_v53  ;;  %6205 = vmatprep.subr.bf16.mxu1 %v6204_v39 }
0x20ef   :  { %v3927_v22 = vsel %vm180_vm1, %v3917_v14, 0.0  ;;  %6207 = vmatpush3.bf16.msra.mxu1 %v6204_v39  ;;  %v4284_v39 = vld [vmem:[#allocation2 + $0x330] sm:$0xff] }
0x20f0   :  { %3928 = vadd.xlane.f32.xlu1 %v3927_v22  ;;  %v3924_v30 = vsel %vm180_vm1, %v3916_v54, 0.0  ;;  %6197 = vmatprep.subr.bf16.mxu0 %v6196_v45  ;;  %v4915_v22 = vld [vmem:[#allocation2 + $0x278] ss:$0 sm:$0xff]  ;;  %v6220_v51 = vpack.c.bf16 %v4285_v46, %v4284_v39  ;;  %v4504_v46 = vld [vmem:[#allocation2 + $0x380] sm:$0xff] }
0x20f1   :  { %3925 = vadd.xlane.f32.xlu0 %v3924_v30  ;;  %6199 = vmatpush3.bf16.msra.mxu0 %v6196_v45 }
0x20f2   :  { %6209 = vmatprep.subr.bf16.mxu1 %v6208_v5  ;;  %6217 = vmatprep.subr.bf16.mxu0 %v6216_v58 }
0x20f3   :  { %6211 = vmatpush3.bf16.msra.mxu1 %v6208_v5 }
0x20f4   :  { %3946 = vadd.xlane.f32.xlu1 %v3945_v28  ;;  %6213 = vmatprep.subr.bf16.mxu1 %v6212_v29 }
0x20f5   :  { %3943 = vadd.xlane.f32.xlu0 %v3942_v31 }
0x20f7   :  { %6215 = vmatpush3.bf16.msra.mxu1 %v6212_v29 }
0x217d   :  { %v3929_v16 = vpop.xlane.xlu1 %3928 }
0x217e   :  { %v3933_v9 = vmul.f32 0.03125, %v3929_v16  ;;  %v3926_v35 = vpop.xlane.xlu0 %3925 }
0x217f   :  { %v3932_v52 = vmul.f32 0.03125, %v3926_v35 }
0x2180   :  { %v3937_v27 = vsub.f32 %v3917_v14, %v3933_v9  ;;  %v4920_v9 = vld [vmem:[#allocation2 + $0x2c0] ss:$0 sm:$0xff] }
0x2181   :  { %v3936_v55 = vsub.f32 %v3916_v54, %v3932_v52  ;;  %v3947_v37 = vpop.xlane.xlu1 %3946 }
0x2182   :  { %v3955_v38 = vmul.f32 0.03125, %v3947_v37  ;;  %v3944_v10 = vpop.xlane.xlu0 %3943  ;;  %v3941_v56 = vmul.f32 %v3937_v27, %v3937_v27 }
0x2183   :  { %v3954_v43 = vmul.f32 0.03125, %v3944_v10  ;;  %v3940_v21 = vmul.f32 %v3936_v55, %v3936_v55 }
0x2184   :  { %v3959_v26 = vadd.f32 1e-05, %v3955_v38  ;;  %v3951_v15 = vsel %vm180_vm1, %v3941_v56, 0.0 }
0x2185   :  { %v3958_v13 = vadd.f32 1e-05, %v3954_v43  ;;  %3952 = vadd.xlane.f32.xlu1 %v3951_v15  ;;  %v3948_v40 = vsel %vm180_vm1, %v3940_v21, 0.0 }
0x2186   :  { %6541 = vrsqrt.f32 %v3959_v26  ;;  %3949 = vadd.xlane.f32.xlu0 %v3948_v40 }
0x2187   :  { %6543 = vrsqrt.f32 %v3958_v13 }
0x2190   :  { %v6542_v24 = vpop.eup %6541 }
0x2191   :  { %v6544_v47 = vpop.eup %6543  ;;  %v3967_v48 = vmul.f32 %v6542_v24, %v3935_v12 }
0x2192   :  { %v3966_v2 = vmul.f32 %v6544_v47, %v3934_v44 }
0x2193   :  { %v3976_v59 = vmul.f32 %v4913_v17, %v3967_v48 }
0x2194   :  { %v3975_v33 = vmul.f32 %v4913_v17, %v3966_v2 }
0x2195   :  { %v7355_v41 = vadd.f32 %v4914_v60, %v3976_v59 }
0x2196   :  { %v7353_v63 = vadd.f32 %v4914_v60, %v3975_v33 }
0x2198   :  { %5748 = vmatprep.mubr.msk.f32.mxu0 %vm180_vm1, %v7353_v63 }
0x2199   :  { %5749 = vmatmul.mubr.msk.f32.vlgmr.msra.gmra.mrb[58].mxu0 %vm180_vm1, %v7355_v41 }
0x219a   :  { %6219 = vmatpush3.bf16.msra.mxu0 %v6216_v58  ;;  %v4503_v58 = vld [vmem:[#allocation2 + $0x378] sm:$0xff] }
0x219b   :  { %6221 = vmatprep.subr.bf16.mxu0 %v6220_v51  ;;  %v6232_v39 = vpack.c.bf16 %v4503_v58, %v4502_v4 }
0x219d   :  { %6233 = vmatprep.subr.bf16.mxu1 %v6232_v39 }
0x219e   :  { %6223 = vmatpush3.bf16.msra.mxu0 %v6220_v51  ;;  %v4505_v51 = vld [vmem:[#allocation2 + $0x388] sm:$0xff] }
0x2212   :  { %v3953_v42 = vpop.xlane.xlu1 %3952 }
0x2213   :  { %v3957_v11 = vmul.f32 0.03125, %v3953_v42  ;;  %v3950_v50 = vpop.xlane.xlu0 %3949 }
0x2214   :  { %v3956_v7 = vmul.f32 0.03125, %v3950_v50 }
0x2215   :  { %v3961_v19 = vadd.f32 1e-05, %v3957_v11 }
0x2216   :  { %v3960_v49 = vadd.f32 1e-05, %v3956_v7 }
0x2217   :  { %6545 = vrsqrt.f32 %v3961_v19 }
0x2218   :  { %6547 = vrsqrt.f32 %v3960_v49 }
0x2221   :  { %v6546_v23 = vpop.eup %6545 }
0x2222   :  { %v6548_v12 = vpop.eup %6547  ;;  %v3969_v34 = vmul.f32 %v6546_v23, %v3937_v27 }
0x2223   :  { %v3968_v18 = vmul.f32 %v6548_v12, %v3936_v55 }
0x2224   :  { %v3978_v44 = vmul.f32 %v4913_v17, %v3969_v34 }
0x2225   :  { %v3977_v0 = vmul.f32 %v4913_v17, %v3968_v18 }
0x2226   :  { %v3987_v54 = vadd.f32 %v4914_v60, %v3978_v44 }
0x2227   :  { %v3986_v14 = vadd.f32 %v4914_v60, %v3977_v0 }
0x2229   :  { %5751 = vmatprep.mubr.msk.f32.mxu0 %vm180_vm1, %v3986_v14 }
0x222a   :  { %5752 = vmatmul.mubr.msk.f32.gmra.mrb[60].mxu0 %vm180_vm1, %v3987_v54 }
0x226c   :  { %v5750_v62 = vpop.f32.mrb[58].mxu0 }
0x226d   :  { %v4081_v30 = vadd.f32 %v5750_v62, %v4915_v22  ;;  %v4075_v1 = vpop.f32.mrb[59].mxu0 }
0x226e   :  { %v4076_v28 = vadd.f32 %v4915_v22, %v4075_v1 }
0x226f   :  { %v4095_v3 = vmax.f32 %v4081_v30, 0.0 }
0x2270   :  { %v4094_v31 = vmax.f32 %v4076_v28, 0.0  ;;  %v4926_v28 = vld [vmem:[#allocation2 + $0x2d0] ss:$0 sm:$0xff] }
0x2272   :  { %5770 = vmatprep.mubr.msk.f32.mxu1 %vm2312_vm6, %v4094_v31 }
0x2273   :  { %5771 = vmatmul.mubr.msk.f32.vlgmr.msra.gmra.mrb[50].mxu1 %vm2312_vm6, %v4095_v3 }
0x2274   :  { %6235 = vmatpush3.bf16.msra.mxu1 %v6232_v39 }
0x22fd   :  { %v5753_v25 = vpop.f32.mrb[60].mxu0 }
0x22fe   :  { %v4091_v32 = vadd.f32 %v5753_v25, %v4915_v22  ;;  %v4085_v53 = vpop.f32.mrb[61].mxu0 }
0x22ff   :  { %v4086_v20 = vadd.f32 %v4915_v22, %v4085_v53  ;;  %v4393_v53 = vld [vmem:[#allocation2 + $0x350] sm:$0xff] }
0x2300   :  { %v4097_v16 = vmax.f32 %v4091_v32, 0.0  ;;  %v4392_v32 = vld [vmem:[#allocation2 + $0x348] sm:$0xff] }
0x2301   :  { %v4096_v45 = vmax.f32 %v4086_v20, 0.0  ;;  %v6224_v20 = vpack.c.bf16 %v4393_v53, %v4392_v32 }
0x2303   :  { %5773 = vmatprep.mubr.msk.f32.mxu1 %vm2312_vm6, %v4096_v45  ;;  %6225 = vmatprep.subr.bf16.mxu0 %v6224_v20  ;;  %v4394_v45 = vld [vmem:[#allocation2 + $0x358] sm:$0xff] }
0x2304   :  { %5774 = vmatmul.mubr.msk.f32.gmra.mrb[52].mxu1 %vm2312_vm6, %v4097_v16  ;;  %v4395_v16 = vld [vmem:[#allocation2 + $0x360] sm:$0xff] }
0x2346   :  { %v5772_v35 = vpop.f32.mrb[50].mxu1 }
0x2347   :  { %v4195_v52 = vadd.f32 %v5772_v35, %v4920_v9  ;;  %v4189_v27 = vpop.f32.mrb[51].mxu1 }
0x2348   :  { %v4190_v55 = vadd.f32 %v4920_v9, %v4189_v27 }
0x2349   :  { %v4209_v37 = vadd.f32 %v4195_v52, %v7355_v41 }
0x234a   :  { %v4208_v38 = vadd.f32 %v4190_v55, %v7353_v63 }
0x234b   :  { %v4215_v10 = vsel %vm180_vm1, %v4209_v37, 0.0 }
0x234c   :  { %4216 = vadd.xlane.f32.xlu1 %v4215_v10  ;;  %v4212_v56 = vsel %vm180_vm1, %v4208_v38, 0.0 }
0x234d   :  { %4213 = vadd.xlane.f32.xlu0 %v4212_v56 }
0x23d7   :  { %v5775_v43 = vpop.f32.mrb[52].mxu1 }
0x23d8   :  { %v4205_v21 = vadd.f32 %v5775_v43, %v4920_v9  ;;  %v4199_v26 = vpop.f32.mrb[53].mxu1 }
0x23d9   :  { %v4200_v15 = vadd.f32 %v4920_v9, %v4199_v26  ;;  %v4217_v13 = vpop.xlane.xlu1 %4216  ;;  %v6228_v9 = vpack.c.bf16 %v4395_v16, %v4394_v45 }
0x23da   :  { %v4211_v40 = vadd.f32 %v4205_v21, %v3987_v54  ;;  %v4225_v24 = vmul.f32 0.03125, %v4217_v13  ;;  %v4214_v17 = vpop.xlane.xlu0 %4213  ;;  %v4925_v54 = vld [vmem:[#allocation2 + $0x2c8] ss:$0 sm:$0xff] }
0x23db   :  { %v4210_v47 = vadd.f32 %v4200_v15, %v3986_v14  ;;  %v4224_v48 = vmul.f32 0.03125, %v4214_v17 }
0x23dc   :  { %v4229_v2 = vsub.f32 %v4209_v37, %v4225_v24  ;;  %v4221_v60 = vsel %vm180_vm1, %v4211_v40, 0.0  ;;  %v4927_v24 = vld [vmem:[#allocation2 + $0x340] ss:$0 sm:$0xff] }
0x23dd   :  { %v4228_v59 = vsub.f32 %v4208_v38, %v4224_v48  ;;  %4222 = vadd.xlane.f32.xlu1 %v4221_v60  ;;  %v4218_v33 = vsel %vm180_vm1, %v4210_v47, 0.0 }
0x23de   :  { %4219 = vadd.xlane.f32.xlu0 %v4218_v33  ;;  %v4233_v63 = vmul.f32 %v4229_v2, %v4229_v2  ;;  %v4608_v33 = vld [vmem:[#allocation2 + $0x398] sm:$0xff] }
0x23df   :  { %v4232_v41 = vmul.f32 %v4228_v59, %v4228_v59 }
0x23e0   :  { %v4239_v36 = vsel %vm180_vm1, %v4233_v63, 0.0  ;;  %v4609_v63 = vld [vmem:[#allocation2 + $0x3a0] sm:$0xff] }
0x23e1   :  { %4240 = vadd.xlane.f32.xlu1 %v4239_v36  ;;  %v4236_v57 = vsel %vm180_vm1, %v4232_v41, 0.0  ;;  %v6240_v41 = vpack.c.bf16 %v4609_v63, %v4608_v33  ;;  %v4610_v36 = vld [vmem:[#allocation2 + $0x3a8] sm:$0xff] }
0x23e2   :  { %4237 = vadd.xlane.f32.xlu0 %v4236_v57  ;;  %v4611_v57 = vld [vmem:[#allocation2 + $0x3b0] sm:$0xff] }
0x23e3   :  { %v6244_v61 = vpack.c.bf16 %v4611_v57, %v4610_v36 }
0x246a   :  { %v4223_v5 = vpop.xlane.xlu1 %4222 }
0x246b   :  { %v4227_v8 = vmul.f32 0.03125, %v4223_v5  ;;  %v4220_v6 = vpop.xlane.xlu0 %4219  ;;  %v6236_v5 = vpack.c.bf16 %v4505_v51, %v4504_v46 }
0x246c   :  { %v4226_v29 = vmul.f32 0.03125, %v4220_v6 }
0x246d   :  { %v4231_v42 = vsub.f32 %v4211_v40, %v4227_v8  ;;  %6237 = vmatprep.subr.bf16.mxu1 %v6236_v5 }
0x246e   :  { %v4230_v11 = vsub.f32 %v4210_v47, %v4226_v29  ;;  %v4241_v50 = vpop.xlane.xlu1 %4240  ;;  %6239 = vmatpush3.bf16.msra.mxu1 %v6236_v5 }
0x246f   :  { %v4249_v7 = vmul.f32 0.03125, %v4241_v50  ;;  %v4238_v19 = vpop.xlane.xlu0 %4237  ;;  %v4235_v49 = vmul.f32 %v4231_v42, %v4231_v42 }
0x2470   :  { %v4248_v23 = vmul.f32 0.03125, %v4238_v19  ;;  %v4234_v12 = vmul.f32 %v4230_v11, %v4230_v11 }
0x2471   :  { %v4253_v34 = vadd.f32 1e-05, %v4249_v7  ;;  %v4245_v18 = vsel %vm180_vm1, %v4235_v49, 0.0  ;;  %v4932_v7 = vld [vmem:[#allocation2 + $0x368] ss:$0 sm:$0xff] }
0x2472   :  { %v4252_v44 = vadd.f32 1e-05, %v4248_v23  ;;  %4246 = vadd.xlane.f32.xlu1 %v4245_v18  ;;  %v4242_v0 = vsel %vm180_vm1, %v4234_v12, 0.0 }
0x2473   :  { %6549 = vrsqrt.f32 %v4253_v34  ;;  %4243 = vadd.xlane.f32.xlu0 %v4242_v0 }
0x2474   :  { %6551 = vrsqrt.f32 %v4252_v44 }
0x247d   :  { %v6550_v14 = vpop.eup %6549 }
0x247e   :  { %v6552_v22 = vpop.eup %6551  ;;  %v4261_v62 = vmul.f32 %v6550_v14, %v4229_v2 }
0x247f   :  { %v4260_v30 = vmul.f32 %v6552_v22, %v4228_v59  ;;  %v4942_v22 = vld [vmem:[#allocation2 + $0x3b8] ss:$0 sm:$0xff] }
0x2480   :  { %v4270_v1 = vmul.f32 %v4925_v54, %v4261_v62 }
0x2481   :  { %v4269_v31 = vmul.f32 %v4925_v54, %v4260_v30 }
0x2482   :  { %v7379_v25 = vadd.f32 %v4926_v28, %v4270_v1 }
0x2483   :  { %v7377_v3 = vadd.f32 %v4926_v28, %v4269_v31 }
0x2485   :  { %5784 = vmatprep.mubr.msk.f32.mxu0 %vm180_vm1, %v7377_v3 }
0x2486   :  { %5785 = vmatmul.mubr.msk.f32.vlgmr.msra.gmra.mrb[62].mxu0 %vm180_vm1, %v7379_v25 }
0x2487   :  { %6227 = vmatpush3.bf16.msra.mxu0 %v6224_v20 }
0x2488   :  { %6229 = vmatprep.subr.bf16.mxu0 %v6228_v9 }
0x248b   :  { %6231 = vmatpush3.bf16.msra.mxu0 %v6228_v9  ;;  %v4937_v9 = vld [vmem:[#allocation2 + $0x390] ss:$0 sm:$0xff] }
0x248c   :  { %6241 = vmatprep.subr.bf16.mxu0 %v6240_v41 }
0x24ff   :  { %v4247_v35 = vpop.xlane.xlu1 %4246 }
0x2500   :  { %v4251_v52 = vmul.f32 0.03125, %v4247_v35  ;;  %v4244_v27 = vpop.xlane.xlu0 %4243 }
0x2501   :  { %v4250_v55 = vmul.f32 0.03125, %v4244_v27  ;;  %v6557_v27 = vld [vmem:[%s7438_s1 + $0x8] sm:$0xff] }
0x2502   :  { %v4255_v37 = vadd.f32 1e-05, %v4251_v52 }
0x2503   :  { %v4254_v38 = vadd.f32 1e-05, %v4250_v55 }
0x2504   :  { %6553 = vrsqrt.f32 %v4255_v37  ;;  %v6558_v37 = vld [vmem:[%s7438_s1] sm:$0xff] }
0x2505   :  { %6555 = vrsqrt.f32 %v4254_v38 }
0x250e   :  { %v6554_v10 = vpop.eup %6553 }
0x250f   :  { %v6556_v56 = vpop.eup %6555  ;;  %v4263_v43 = vmul.f32 %v6554_v10, %v4231_v42 }
0x2510   :  { %v4262_v21 = vmul.f32 %v6556_v56, %v4230_v11 }
0x2511   :  { %v4272_v26 = vmul.f32 %v4925_v54, %v4263_v43 }
0x2512   :  { %v4271_v15 = vmul.f32 %v4925_v54, %v4262_v21 }
0x2513   :  { %v4281_v40 = vadd.f32 %v4926_v28, %v4272_v26 }
0x2514   :  { %v4280_v13 = vadd.f32 %v4926_v28, %v4271_v15 }
0x2516   :  { %5787 = vmatprep.mubr.msk.f32.mxu0 %vm180_vm1, %v4280_v13 }
0x2517   :  { %5788 = vmatmul.mubr.msk.f32.gmra.mrb[64].mxu0 %vm180_vm1, %v4281_v40 }
0x2559   :  { %v5786_v17 = vpop.f32.mrb[62].mxu0 }
0x255a   :  { %v4375_v47 = vadd.f32 %v5786_v17, %v4927_v24  ;;  %v4369_v48 = vpop.f32.mrb[63].mxu0 }
0x255b   :  { %v4370_v2 = vadd.f32 %v4927_v24, %v4369_v48  ;;  %v6560_v48 = vld [vmem:[%s7438_s1 + $0x10] sm:$0xff] }
0x255c   :  { %v4389_v59 = vmax.f32 %v4375_v47, 0.0 }
0x255d   :  { %v4388_v60 = vmax.f32 %v4370_v2, 0.0 }
0x255f   :  { %5798 = vmatprep.mubr.msk.f32.mxu0 %vm180_vm1, %v4388_v60 }
0x2560   :  { %5799 = vmatmul.mubr.msk.f32.vlgmr.msra.gmra.mrb[66].mxu0 %vm180_vm1, %v4389_v59 }
0x2561   :  { %6243 = vmatpush3.bf16.msra.mxu0 %v6240_v41 }
0x2562   :  { %6245 = vmatprep.subr.bf16.mxu0 %v6244_v61 }
0x2565   :  { %6247 = vmatpush3.bf16.msra.mxu0 %v6244_v61 }
0x25ea   :  { %v5789_v8 = vpop.f32.mrb[64].mxu0 }
0x25eb   :  { %v4385_v6 = vadd.f32 %v5789_v8, %v4927_v24  ;;  %v4379_v29 = vpop.f32.mrb[65].mxu0 }
0x25ec   :  { %v4380_v42 = vadd.f32 %v4927_v24, %v4379_v29  ;;  %v6559_v24 = vld [vmem:[%s7438_s1 + $0x18] sm:$0xff] }
0x25ed   :  { %v4391_v50 = vmax.f32 %v4385_v6, 0.0 }
0x25ee   :  { %v4390_v11 = vmax.f32 %v4380_v42, 0.0 }
0x25f0   :  { %5801 = vmatprep.mubr.msk.f32.mxu0 %vm180_vm1, %v4390_v11 }
0x25f1   :  { %5802 = vmatmul.mubr.msk.f32.gmra.mrb[68].mxu0 %vm180_vm1, %v4391_v50 }
0x25f2   :  { %5826 = vmatprep.mubr.msk.f32.mxu0 %vm180_vm1, %v7377_v3 }
0x25f5   :  { %5827 = vmatmul.mubr.msk.f32.vlgmr.msra.gmra.mrb[70].mxu0 %vm180_vm1, %v7379_v25 }
0x25f6   :  { %5829 = vmatprep.mubr.msk.f32.mxu0 %vm180_vm1, %v4280_v13 }
0x25f9   :  { %5830 = vmatmul.mubr.msk.f32.gmra.mrb[72].mxu0 %vm180_vm1, %v4281_v40 }
0x2633   :  { %v5800_v19 = vpop.f32.mrb[66].mxu0 }
0x2634   :  { %v4485_v49 = vadd.f32 %v5800_v19, %v4932_v7  ;;  %v4479_v23 = vpop.f32.mrb[67].mxu0 }
0x2635   :  { %v4480_v12 = vadd.f32 %v4932_v7, %v4479_v23 }
0x2636   :  { %v4499_v18 = vmax.f32 %v4485_v49, 0.0 }
0x2637   :  { %v4498_v34 = vmax.f32 %v4480_v12, 0.0 }
0x2639   :  { %5812 = vmatprep.mubr.msk.f32.mxu1 %vm180_vm1, %v4498_v34 }
0x263a   :  { %5813 = vmatmul.mubr.msk.f32.vlgmr.msra.gmra.mrb[54].mxu1 %vm180_vm1, %v4499_v18 }
0x26c4   :  { %v5803_v44 = vpop.f32.mrb[68].mxu0 }
0x26c5   :  { %v4495_v0 = vadd.f32 %v5803_v44, %v4932_v7  ;;  %v4489_v14 = vpop.f32.mrb[69].mxu0 }
0x26c6   :  { %v4490_v54 = vadd.f32 %v4932_v7, %v4489_v14 }
0x26c7   :  { %v4501_v1 = vmax.f32 %v4495_v0, 0.0 }
0x26c8   :  { %v4500_v62 = vmax.f32 %v4490_v54, 0.0  ;;  %v5828_v30 = vpop.f32.mrb[70].mxu0 }
0x26c9   :  { %v4689_v28 = vadd.f32 %v5828_v30, %v4942_v22  ;;  %v4683_v31 = vpop.f32.mrb[71].mxu0 }
0x26ca   :  { %v4684_v3 = vadd.f32 %v4942_v22, %v4683_v31  ;;  %5815 = vmatprep.mubr.msk.f32.mxu1 %vm180_vm1, %v4500_v62 }
0x26cb   :  { %4712 = vrot.lane.b32.xlu1 %v4689_v28, %s6587_s26  ;;  %5816 = vmatmul.mubr.msk.f32.gmra.mrb[56].mxu1 %vm180_vm1, %v4501_v1 }
0x26cc   :  { %v5831_v25 = vpop.f32.mrb[72].mxu0  ;;  %4710 = vrot.lane.b32.xlu0 %v4684_v3, %s6587_s26 }
0x26cd   :  { %v4699_v32 = vadd.f32 %v5831_v25, %v4942_v22  ;;  %v4693_v53 = vpop.f32.mrb[73].mxu0 }
0x26ce   :  { %v4694_v20 = vadd.f32 %v4942_v22, %v4693_v53 }
0x26d0   :  { %4714 = vrot.lane.b32.xlu1 %v4694_v20, %s6587_s26  ;;  %4716 = vrot.lane.b32.xlu0 %v4699_v32, %s6587_s26 }
0x270d   :  { %v5814_v45 = vpop.f32.mrb[54].mxu1 }
0x270e   :  { %v4589_v16 = vpop.f32.mrb[55].mxu1  ;;  %v4595_v35 = vadd.f32 %v5814_v45, %v4937_v9 }
0x270f   :  { %v4590_v52 = vadd.f32 %v4937_v9, %v4589_v16 }
0x2710   :  { %v4703_v55 = vadd.f32 %v6557_v27, %v4595_v35 }
0x2711   :  { %v4702_v38 = vadd.f32 %v6558_v37, %v4590_v52 }
0x273d   :  { %v4713_v10 = vpop.permute.xlu1 %4712 }
0x273e   :  { %v4723_v56 = vsel %vm69_vm0, %v4703_v55, %v4713_v10  ;;  %v4711_v43 = vpop.permute.xlu0 %4710 }
0x273f   :  { %4728 = vst.msk [vmem:[%s7441_s4 + $0x8] sm:$0xff] %vm4726_vm7, %v4723_v56  ;;  %v4722_v21 = vsel %vm69_vm0, %v4702_v38, %v4711_v43 }
0x2740   :  { %4727 = vst.msk [vmem:[%s7441_s4] sm:$0xff] %vm4726_vm7, %v4722_v21 }
0x2742   :  { %v4717_v47 = vpop.permute.xlu0 %4716  ;;  %v4715_v60 = vpop.permute.xlu1 %4714 }
0x279e   :  { %v5817_v26 = vpop.f32.mrb[56].mxu1 }
0x279f   :  { %v4605_v15 = vadd.f32 %v5817_v26, %v4937_v9  ;;  %v4599_v13 = vpop.f32.mrb[57].mxu1 }
0x27a0   :  { %v4600_v40 = vadd.f32 %v4937_v9, %v4599_v13 }
0x27a1   :  { %v4705_v17 = vadd.f32 %v6559_v24, %v4605_v15 }
0x27a2   :  { %v4704_v2 = vadd.f32 %v6560_v48, %v4600_v40 }
0x27a3   :  { %v4725_v59 = vsel %vm69_vm0, %v4705_v17, %v4717_v47 }
0x27a4   :  { %4730 = vst.msk [vmem:[%s7441_s4 + $0x18] sm:$0xff] %vm4726_vm7, %v4725_v59  ;;  %v4724_v33 = vsel %vm69_vm0, %v4704_v2, %v4715_v60 }
0x27a5   :  { %4729 = vst.msk [vmem:[%s7441_s4 + $0x10] sm:$0xff] %vm4726_vm7, %v4724_v33 }
0x27a6   :  { %4735 = vsyncpa [#allocation3], 1 }

</bundles_post_ra>
